<compile_context>
chip_gen: v5e
topology: v5e:2x2
jax: 0.10.0
libtpu: 0.0.40
codegen_flags: <defaults>
</compile_context>

<pallas_src>
import functools

import jax
import jax.numpy as jnp
from jax.experimental import pallas as pl
from jax.experimental.pallas import tpu as pltpu


# TODO(synk): ImageEncoder source not provided; negative_slope=0.02 assumed
#             (PyTorch nn.LeakyReLU default would be 0.01).
NEGATIVE_SLOPE = 0.02

_LANE = 128


def _round_up(x, m):
    return (x + m - 1) // m * m


# ------------------------------ Pallas kernel ---------------------------------
def _fused_encoder_kernel(
    patches_ref, w1_ref, w2_ref, w3_ref, wf_ref, bias_ref, out_ref, h1_ref,
    *, negative_slope, n_groups, group_k, c1_lanes, n2, n3, nf,
):
    """Fused image encoder for one batch tile, fully VMEM-resident.

    Layer 1 : im2col GEMM — n_groups x ([TB, group_k] @ [group_k, 128]) against a
              block-diagonal copy of the raw 3x3 conv1 weight; output written to a
              VMEM scratch in NHWC-flat order (all slices 128-lane aligned).
    Layer 2 : folded conv2 dense operator whose rows were pre-permuted at init so it
              consumes the NHWC-flat layer-1 activations directly (no in-kernel relayout).
    Layer 3 : folded conv3 dense operator (NCHW-flat in / out, matches x.view(B, -1)).
    FC      : [256, 128] zero-padded weight -> lane-dense unmasked output stores.
    """
    def lrelu(y):                                   # f32 epilogue (v5e-safe)
        return jnp.where(y > 0, y, negative_slope * y)

    o2 = c1_lanes
    o3 = o2 + n2
    o4 = o3 + n3

    w1 = w1_ref[...]                                # [group_k, 128] bf16, hoisted
    b1 = bias_ref[:, 0:c1_lanes]                    # [1, 128] f32, hoisted

    # ---- layer 1: im2col GEMM, one 128-lane output group (8 spatial positions) per step
    for g in range(n_groups):
        pg = patches_ref[:, g * group_k:(g + 1) * group_k]            # [TB, group_k] bf16
        acc = jnp.dot(pg, w1, preferred_element_type=jnp.float32)     # [TB, 128] f32
        h1_ref[:, g * c1_lanes:(g + 1) * c1_lanes] = lrelu(acc + b1)  # aligned store

    h1 = h1_ref[...].astype(jnp.bfloat16)           # [TB, 1024] NHWC-flat layer-1 activations

    # ---- layer 2 (folded conv2, rows permuted for NHWC-flat input) ----
    h2 = jnp.dot(h1, w2_ref[...], preferred_element_type=jnp.float32)
    h2 = lrelu(h2 + bias_ref[:, o2:o3]).astype(jnp.bfloat16)          # [TB, 512]

    # ---- layer 3 (folded conv3, NCHW-flat) ----
    h3 = jnp.dot(h2, w3_ref[...], preferred_element_type=jnp.float32)
    h3 = lrelu(h3 + bias_ref[:, o3:o4]).astype(jnp.bfloat16)          # [TB, 256]

    # ---- final FC, zero-padded to a lane-dense 128-wide output ----
    out = jnp.dot(h3, wf_ref[...], preferred_element_type=jnp.float32)
    out_ref[...] = (out + bias_ref[:, o4:o4 + nf]).astype(out_ref.dtype)


def fused_image_encoder(patches, w1_bd, m2, m3, wf, bias_packed, *, batch_tile,
                        negative_slope=NEGATIVE_SLOPE):
    """patches: [B_pad, n_groups*group_k] bf16; weights prepped once at init."""
    b_pad, pk = patches.shape
    assert b_pad % batch_tile == 0
    group_k, c1_lanes = w1_bd.shape
    n_groups = pk // group_k
    h1_dim = n_groups * c1_lanes
    n2, n3, nf = m2.shape[1], m3.shape[1], wf.shape[1]
    assert h1_dim == m2.shape[0]
    assert bias_packed.shape[1] == c1_lanes + n2 + n3 + nf

    kernel = functools.partial(
        _fused_encoder_kernel, negative_slope=negative_slope, n_groups=n_groups,
        group_k=group_k, c1_lanes=c1_lanes, n2=n2, n3=n3, nf=nf)

    return pl.pallas_call(
        kernel,
        out_shape=jax.ShapeDtypeStruct((b_pad, nf), jnp.float32),
        grid=(b_pad // batch_tile,),
        in_specs=[
            # activations: one block per batch tile
            pl.BlockSpec((batch_tile, pk), lambda i: (i, 0)),
            # weights/biases: constant block index -> stay VMEM-resident across batch tiles
            pl.BlockSpec(w1_bd.shape, lambda i: (0, 0)),
            pl.BlockSpec(m2.shape, lambda i: (0, 0)),
            pl.BlockSpec(m3.shape, lambda i: (0, 0)),
            pl.BlockSpec(wf.shape, lambda i: (0, 0)),
            pl.BlockSpec(bias_packed.shape, lambda i: (0, 0)),
        ],
        out_specs=pl.BlockSpec((batch_tile, nf), lambda i: (i, 0)),
        scratch_shapes=[pltpu.VMEM((batch_tile, h1_dim), jnp.float32)],
        compiler_params=pltpu.CompilerParams(
            # batch tiles are independent -> shard across v7x's 2 TCs; free on v5e/v6e.
            dimension_semantics=("parallel",)),
    )(patches, w1_bd, m2, m3, wf, bias_packed)


# ---------------------- init-time weight preprocessing -------------------------
def conv_as_dense_operator(w_oihw, h, w, *, stride, pad):
    """Fold a conv layer into a dense operator M: y_nchw_flat = x_nchw_flat @ M."""
    cout, cin, kh, kw = w_oihw.shape
    k_in = cin * h * w
    basis = jnp.eye(k_in, dtype=jnp.float32).reshape(k_in, cin, h, w)
    y = jax.lax.conv_general_dilated(
        basis, w_oihw,
        window_strides=(stride, stride),
        padding=((pad, pad), (pad, pad)),
        dimension_numbers=("NCHW", "OIHW", "NCHW"),
    )
    ho, wo = y.shape[2], y.shape[3]
    return y.reshape(k_in, cout * ho * wo), ho, wo


def init_image_encoder_params(key, in_ch=4, ef_dim=16, emb_dim=64, img_hw=16):
    # 3 stride-2 3x3 convs: in_ch -> ef -> 2ef -> 4ef, then FC -> emb_dim.
    chans = [in_ch, ef_dim, 2 * ef_dim, 4 * ef_dim]
    keys = jax.random.split(key, 8)
    params = {"convs": []}
    for li in range(3):
        cin, cout = chans[li], chans[li + 1]
        scale = 1.0 / jnp.sqrt(cin * 9.0)
        w = jax.random.normal(keys[2 * li], (cout, cin, 3, 3), jnp.float32) * scale
        b = jax.random.normal(keys[2 * li + 1], (cout,), jnp.float32) * 0.01
        params["convs"].append((w, b))
    final_hw = img_hw // 8
    fc_in = chans[-1] * final_hw * final_hw
    scale = 1.0 / jnp.sqrt(float(fc_in))
    params["fc_w"] = jax.random.normal(keys[6], (fc_in, emb_dim), jnp.float32) * scale
    params["fc_b"] = jax.random.normal(keys[7], (emb_dim,), jnp.float32) * 0.01
    return params


def prepare_fused_params(params, *, in_ch=4, img_hw=16):
    """One-time weight prep (runs outside the hot path)."""
    (w1, b1), (w2, b2), (w3, b3) = params["convs"]
    c1 = w1.shape[0]                       # 16 conv1 output channels
    h1_hw = img_hw // 2                    # 8
    n_pos = h1_hw * h1_hw                  # 64 conv1 output positions
    patch_k = in_ch * 9                    # 36 patch elements (ci*9 + kh*3 + kw)
    assert _LANE % c1 == 0
    group_pos = _LANE // c1                # 8 positions -> one 128-lane output group
    assert n_pos % group_pos == 0
    n_groups = n_pos // group_pos          # 8
    group_k = _round_up(group_pos * patch_k, _LANE)   # 288 -> 384 (lane-aligned)

    # --- layer 1: raw conv1 weight as a small block-diagonal im2col operator ---
    w1r = w1.reshape(c1, patch_k).T        # [36, 16], k = ci*9 + kh*3 + kw
    w1_bd = jnp.zeros((group_k, _LANE), jnp.float32)
    for p in range(group_pos):
        w1_bd = w1_bd.at[p * patch_k:(p + 1) * patch_k, p * c1:(p + 1) * c1].set(w1r)
    b1_tile = jnp.tile(b1, group_pos)      # [128], lane = p*16 + c

    # --- layer 2: folded conv2 operator; fold the NHWC->NCHW-flat permutation into its rows ---
    m2, h2_hw, _ = conv_as_dense_operator(w2, h1_hw, h1_hw, stride=2, pad=1)   # [1024, 512]
    perm = jnp.arange(n_pos * c1)
    perm = (perm % c1) * n_pos + perm // c1          # NHWC-flat index j -> NCHW-flat index
    m2 = m2[perm, :]
    b2_flat = jnp.repeat(b2, h2_hw * h2_hw)          # NCHW-flat bias

    # --- layer 3: folded conv3 operator (NCHW-flat, matches PyTorch x.view(B, -1)) ---
    m3, h3_hw, _ = conv_as_dense_operator(w3, h2_hw, h2_hw, stride=2, pad=1)   # [512, 256]
    b3_flat = jnp.repeat(b3, h3_hw * h3_hw)

    # --- final FC: zero-pad to a lane-dense 128-wide output ---
    emb_dim = params["fc_w"].shape[1]
    nf = _round_up(emb_dim, _LANE)
    wf = jnp.pad(params["fc_w"], ((0, 0), (0, nf - emb_dim)))
    bf = jnp.pad(params["fc_b"], (0, nf - emb_dim))

    # --- all four biases packed into one lane-aligned f32 row (single tiny DMA) ---
    bias_packed = jnp.concatenate([b1_tile, b2_flat, b3_flat, bf])[None, :].astype(jnp.float32)
    assert bias_packed.shape[1] % _LANE == 0

    return {
        "w1_bd": w1_bd.astype(jnp.bfloat16),
        "m2": m2.astype(jnp.bfloat16),
        "m3": m3.astype(jnp.bfloat16),
        "wf": wf.astype(jnp.bfloat16),
        "bias": bias_packed,
        "emb_dim": emb_dim,
        "group_pos": group_pos,
        "patch_k": patch_k,
        "group_k": group_k,
    }


# --------------------------------- forward ------------------------------------
def _im2col_grouped_patches(images, *, group_pos, patch_k, group_k):
    """NCHW images -> per-image, lane-aligned im2col patch groups [B, n_groups*group_k].

    Column layout inside group g:  p*patch_k + (ci*9 + kh*3 + kw)  for output position
    s = g*group_pos + p (zero padding up to group_k), matching the block-diagonal
    layer-1 operator built in prepare_fused_params.
    """
    b, c, h, w = images.shape
    ho, wo = h // 2, w // 2
    xp = jnp.pad(images, ((0, 0), (0, 0), (1, 1), (1, 1)))
    taps = []
    for kh in range(3):
        for kw in range(3):
            taps.append(xp[:, :, kh:kh + 2 * ho:2, kw:kw + 2 * wo:2])   # [B, C, Ho, Wo]
    p = jnp.stack(taps, axis=2)                      # [B, C, 9, Ho, Wo]
    p = p.reshape(b, c * 9, ho * wo)                 # k = ci*9 + kh*3 + kw
    p = jnp.transpose(p, (0, 2, 1))                  # [B, S, K]
    n_groups = (ho * wo) // group_pos
    p = p.reshape(b, n_groups, group_pos * patch_k)
    p = jnp.pad(p, ((0, 0), (0, 0), (0, group_k - group_pos * patch_k)))
    return p.reshape(b, n_groups * group_k)


def image_auto_encoder_end_to_end_forward(fused, images=None, coordinates_inputs=None):
    if coordinates_inputs is not None:
        # TODO(synk): decoder path (FlowDecoder) source + checkpoint not available.
        raise NotImplementedError("FlowDecoder (decoder path) source not available")
    b = images.shape[0]
    patches = _im2col_grouped_patches(
        images.astype(jnp.float32), group_pos=fused["group_pos"],
        patch_k=fused["patch_k"], group_k=fused["group_k"])
    patches = patches.astype(jnp.bfloat16)           # halve the activation DMA

    # Batch tile: 128 MXU rows once batch is large; small batches round up to 8 sublanes.
    batch_tile = min(128, _round_up(b, 8))
    b_pad = _round_up(b, batch_tile)
    if b_pad != b:
        patches = jnp.pad(patches, ((0, b_pad - b), (0, 0)))

    out = fused_image_encoder(
        patches, fused["w1_bd"], fused["m2"], fused["m3"], fused["wf"], fused["bias"],
        batch_tile=batch_tile)
    return out[:b, :fused["emb_dim"]]


# --------------------- plain-JAX f32 reference (true convs) --------------------
def _ref_image_encoder(params, images, negative_slope=NEGATIVE_SLOPE):
    x = images.astype(jnp.float32)
    for (w, b) in params["convs"]:
        x = jax.lax.conv_general_dilated(
            x, w, window_strides=(2, 2), padding=((1, 1), (1, 1)),
            dimension_numbers=("NCHW", "OIHW", "NCHW"))
        x = x + b[None, :, None, None]
        x = jnp.where(x > 0, x, negative_slope * x)
    flat = x.reshape(x.shape[0], -1)          # PyTorch NCHW flatten
    return flat @ params["fc_w"] + params["fc_b"]


if __name__ == "__main__":
    key = jax.random.PRNGKey(0)
    k_params, k_img, k_img_big = jax.random.split(key, 3)

    B, C, H, W = 2, 4, 16, 16
    images = jax.random.normal(k_img, (B, C, H, W), jnp.float32)

    params = init_image_encoder_params(k_params, in_ch=C, ef_dim=16, emb_dim=64, img_hw=H)
    fused = prepare_fused_params(params, in_ch=C, img_hw=H)   # one-time weight prep

    fwd = jax.jit(
        lambda imgs: image_auto_encoder_end_to_end_forward(fused, images=imgs)
    )
    emb = jax.block_until_ready(fwd(images))
    assert emb.shape == (B, 64), emb.shape

    # correctness check vs a plain-JAX f32 reference using real convolutions
    # (loosened tolerance because the kernel uses bf16 matmul inputs).
    emb_ref = jax.block_until_ready(_ref_image_encoder(params, images))
    max_err = float(jnp.max(jnp.abs(emb - emb_ref)))
    assert jnp.allclose(emb, emb_ref, atol=5e-2, rtol=5e-2), max_err

    # also exercise the batched multi-tile grid path (weights VMEM-resident across tiles,
    # "parallel" batch axis for v7x megacore).
    B2 = 300
    images_big = jax.random.normal(k_img_big, (B2, C, H, W), jnp.float32)
    emb_big = jax.block_until_ready(fwd(images_big))
    assert emb_big.shape == (B2, 64), emb_big.shape
    emb_big_ref = jax.block_until_ready(_ref_image_encoder(params, images_big))
    max_err_big = float(jnp.max(jnp.abs(emb_big - emb_big_ref)))
    assert jnp.allclose(emb_big, emb_big_ref, atol=5e-2, rtol=5e-2), max_err_big

    print("KERNEL_OK")
</pallas_src>

<mosaic_0001>
module attributes {stable_mosaic.version = 11 : i64} {
  func.func @_fused_encoder_kernel(%arg0: i32, %arg1: memref<8x3072xbf16, #tpu.memory_space<vmem>>, %arg2: memref<384x128xbf16, #tpu.memory_space<vmem>>, %arg3: memref<1024x512xbf16, #tpu.memory_space<vmem>>, %arg4: memref<512x256xbf16, #tpu.memory_space<vmem>>, %arg5: memref<256x128xbf16, #tpu.memory_space<vmem>>, %arg6: memref<1x1024xf32, #tpu.memory_space<vmem>>, %arg7: memref<8x128xf32, #tpu.memory_space<vmem>>, %arg8: memref<8x1024xf32, #tpu.memory_space<vmem>>) attributes {dimension_semantics = [#tpu.dimension_semantics<parallel>], iteration_bounds = array<i64: 1>, scalar_prefetch = 0 : i64, scratch_operands = 1 : i64, tpu.core_type = #tpu.core_type<tc>, window_params = [{transform_indices = @transform_0, window_bounds = array<i64: 8, 3072>}, {pipeline_mode = #tpu.pipeline_mode<synchronous>, transform_indices = @transform_1, window_bounds = array<i64: 384, 128>}, {pipeline_mode = #tpu.pipeline_mode<synchronous>, transform_indices = @transform_2, window_bounds = array<i64: 1024, 512>}, {pipeline_mode = #tpu.pipeline_mode<synchronous>, transform_indices = @transform_3, window_bounds = array<i64: 512, 256>}, {pipeline_mode = #tpu.pipeline_mode<synchronous>, transform_indices = @transform_4, window_bounds = array<i64: 256, 128>}, {pipeline_mode = #tpu.pipeline_mode<synchronous>, transform_indices = @transform_5, window_bounds = array<i64: 1, 1024>}, {transform_indices = @transform_6, window_bounds = array<i64: 8, 128>}]} {
    %c0 = arith.constant 0 : index
    %c0_0 = arith.constant 0 : index
    %0 = vector.load %arg2[%c0, %c0_0] : memref<384x128xbf16, #tpu.memory_space<vmem>>, vector<384x128xbf16>
    %c0_1 = arith.constant 0 : index
    %c0_2 = arith.constant 0 : index
    %1 = vector.load %arg6[%c0_1, %c0_2] : memref<1x1024xf32, #tpu.memory_space<vmem>>, vector<1x128xf32>
    %c0_3 = arith.constant 0 : index
    %c0_4 = arith.constant 0 : index
    %2 = vector.load %arg1[%c0_3, %c0_4] : memref<8x3072xbf16, #tpu.memory_space<vmem>>, vector<8x384xbf16>
    %cst = arith.constant dense<0.000000e+00> : vector<8x128xf32>
    %3 = tpu.matmul %2, %0, %cst {dimension_numbers = #tpu.dot_dimension_numbers<[1], [0], [0], [1], [0, 0, 1, 1], [], []>} : vector<8x384xbf16>, vector<384x128xbf16>, vector<8x128xf32> -> vector<8x128xf32>
    %4 = vector.broadcast %1 : vector<1x128xf32> to vector<8x128xf32>
    %5 = arith.addf %3, %4 : vector<8x128xf32>
    %cst_5 = arith.constant 0.000000e+00 : f32
    %6 = vector.broadcast %cst_5 : f32 to vector<8x128xf32>
    %7 = arith.cmpf ogt, %5, %6 : vector<8x128xf32>
    %cst_6 = arith.constant 2.000000e-02 : f32
    %8 = vector.broadcast %cst_6 : f32 to vector<8x128xf32>
    %9 = arith.mulf %8, %5 : vector<8x128xf32>
    %10 = arith.select %7, %5, %9 : vector<8x128xi1>, vector<8x128xf32>
    %c0_7 = arith.constant 0 : index
    %c0_8 = arith.constant 0 : index
    %11 = vector.load %arg8[%c0_7, %c0_8] : memref<8x1024xf32, #tpu.memory_space<vmem>>, vector<8x128xf32>
    tpu.vector_store %arg8[%c0_7, %c0_8], %10 {strides = array<i32>} : memref<8x1024xf32, #tpu.memory_space<vmem>>, vector<8x128xf32>,
    %c0_9 = arith.constant 0 : index
    %c384 = arith.constant 384 : index
    %12 = vector.load %arg1[%c0_9, %c384] : memref<8x3072xbf16, #tpu.memory_space<vmem>>, vector<8x384xbf16>
    %cst_10 = arith.constant dense<0.000000e+00> : vector<8x128xf32>
    %13 = tpu.matmul %12, %0, %cst_10 {dimension_numbers = #tpu.dot_dimension_numbers<[1], [0], [0], [1], [0, 0, 1, 1], [], []>} : vector<8x384xbf16>, vector<384x128xbf16>, vector<8x128xf32> -> vector<8x128xf32>
    %14 = vector.broadcast %1 : vector<1x128xf32> to vector<8x128xf32>
    %15 = arith.addf %13, %14 : vector<8x128xf32>
    %cst_11 = arith.constant 0.000000e+00 : f32
    %16 = vector.broadcast %cst_11 : f32 to vector<8x128xf32>
    %17 = arith.cmpf ogt, %15, %16 : vector<8x128xf32>
    %cst_12 = arith.constant 2.000000e-02 : f32
    %18 = vector.broadcast %cst_12 : f32 to vector<8x128xf32>
    %19 = arith.mulf %18, %15 : vector<8x128xf32>
    %20 = arith.select %17, %15, %19 : vector<8x128xi1>, vector<8x128xf32>
    %c0_13 = arith.constant 0 : index
    %c128 = arith.constant 128 : index
    %21 = vector.load %arg8[%c0_13, %c128] : memref<8x1024xf32, #tpu.memory_space<vmem>>, vector<8x128xf32>
    tpu.vector_store %arg8[%c0_13, %c128], %20 {strides = array<i32>} : memref<8x1024xf32, #tpu.memory_space<vmem>>, vector<8x128xf32>,
    %c0_14 = arith.constant 0 : index
    %c768 = arith.constant 768 : index
    %22 = vector.load %arg1[%c0_14, %c768] : memref<8x3072xbf16, #tpu.memory_space<vmem>>, vector<8x384xbf16>
    %cst_15 = arith.constant dense<0.000000e+00> : vector<8x128xf32>
    %23 = tpu.matmul %22, %0, %cst_15 {dimension_numbers = #tpu.dot_dimension_numbers<[1], [0], [0], [1], [0, 0, 1, 1], [], []>} : vector<8x384xbf16>, vector<384x128xbf16>, vector<8x128xf32> -> vector<8x128xf32>
    %24 = vector.broadcast %1 : vector<1x128xf32> to vector<8x128xf32>
    %25 = arith.addf %23, %24 : vector<8x128xf32>
    %cst_16 = arith.constant 0.000000e+00 : f32
    %26 = vector.broadcast %cst_16 : f32 to vector<8x128xf32>
    %27 = arith.cmpf ogt, %25, %26 : vector<8x128xf32>
    %cst_17 = arith.constant 2.000000e-02 : f32
    %28 = vector.broadcast %cst_17 : f32 to vector<8x128xf32>
    %29 = arith.mulf %28, %25 : vector<8x128xf32>
    %30 = arith.select %27, %25, %29 : vector<8x128xi1>, vector<8x128xf32>
    %c0_18 = arith.constant 0 : index
    %c256 = arith.constant 256 : index
    %31 = vector.load %arg8[%c0_18, %c256] : memref<8x1024xf32, #tpu.memory_space<vmem>>, vector<8x128xf32>
    tpu.vector_store %arg8[%c0_18, %c256], %30 {strides = array<i32>} : memref<8x1024xf32, #tpu.memory_space<vmem>>, vector<8x128xf32>,
    %c0_19 = arith.constant 0 : index
    %c1152 = arith.constant 1152 : index
    %32 = vector.load %arg1[%c0_19, %c1152] : memref<8x3072xbf16, #tpu.memory_space<vmem>>, vector<8x384xbf16>
    %cst_20 = arith.constant dense<0.000000e+00> : vector<8x128xf32>
    %33 = tpu.matmul %32, %0, %cst_20 {dimension_numbers = #tpu.dot_dimension_numbers<[1], [0], [0], [1], [0, 0, 1, 1], [], []>} : vector<8x384xbf16>, vector<384x128xbf16>, vector<8x128xf32> -> vector<8x128xf32>
    %34 = vector.broadcast %1 : vector<1x128xf32> to vector<8x128xf32>
    %35 = arith.addf %33, %34 : vector<8x128xf32>
    %cst_21 = arith.constant 0.000000e+00 : f32
    %36 = vector.broadcast %cst_21 : f32 to vector<8x128xf32>
    %37 = arith.cmpf ogt, %35, %36 : vector<8x128xf32>
    %cst_22 = arith.constant 2.000000e-02 : f32
    %38 = vector.broadcast %cst_22 : f32 to vector<8x128xf32>
    %39 = arith.mulf %38, %35 : vector<8x128xf32>
    %40 = arith.select %37, %35, %39 : vector<8x128xi1>, vector<8x128xf32>
    %c0_23 = arith.constant 0 : index
    %c384_24 = arith.constant 384 : index
    %41 = vector.load %arg8[%c0_23, %c384_24] : memref<8x1024xf32, #tpu.memory_space<vmem>>, vector<8x128xf32>
    tpu.vector_store %arg8[%c0_23, %c384_24], %40 {strides = array<i32>} : memref<8x1024xf32, #tpu.memory_space<vmem>>, vector<8x128xf32>,
    %c0_25 = arith.constant 0 : index
    %c1536 = arith.constant 1536 : index
    %42 = vector.load %arg1[%c0_25, %c1536] : memref<8x3072xbf16, #tpu.memory_space<vmem>>, vector<8x384xbf16>
    %cst_26 = arith.constant dense<0.000000e+00> : vector<8x128xf32>
    %43 = tpu.matmul %42, %0, %cst_26 {dimension_numbers = #tpu.dot_dimension_numbers<[1], [0], [0], [1], [0, 0, 1, 1], [], []>} : vector<8x384xbf16>, vector<384x128xbf16>, vector<8x128xf32> -> vector<8x128xf32>
    %44 = vector.broadcast %1 : vector<1x128xf32> to vector<8x128xf32>
    %45 = arith.addf %43, %44 : vector<8x128xf32>
    %cst_27 = arith.constant 0.000000e+00 : f32
    %46 = vector.broadcast %cst_27 : f32 to vector<8x128xf32>
    %47 = arith.cmpf ogt, %45, %46 : vector<8x128xf32>
    %cst_28 = arith.constant 2.000000e-02 : f32
    %48 = vector.broadcast %cst_28 : f32 to vector<8x128xf32>
    %49 = arith.mulf %48, %45 : vector<8x128xf32>
    %50 = arith.select %47, %45, %49 : vector<8x128xi1>, vector<8x128xf32>
    %c0_29 = arith.constant 0 : index
    %c512 = arith.constant 512 : index
    %51 = vector.load %arg8[%c0_29, %c512] : memref<8x1024xf32, #tpu.memory_space<vmem>>, vector<8x128xf32>
    tpu.vector_store %arg8[%c0_29, %c512], %50 {strides = array<i32>} : memref<8x1024xf32, #tpu.memory_space<vmem>>, vector<8x128xf32>,
    %c0_30 = arith.constant 0 : index
    %c1920 = arith.constant 1920 : index
    %52 = vector.load %arg1[%c0_30, %c1920] : memref<8x3072xbf16, #tpu.memory_space<vmem>>, vector<8x384xbf16>
    %cst_31 = arith.constant dense<0.000000e+00> : vector<8x128xf32>
    %53 = tpu.matmul %52, %0, %cst_31 {dimension_numbers = #tpu.dot_dimension_numbers<[1], [0], [0], [1], [0, 0, 1, 1], [], []>} : vector<8x384xbf16>, vector<384x128xbf16>, vector<8x128xf32> -> vector<8x128xf32>
    %54 = vector.broadcast %1 : vector<1x128xf32> to vector<8x128xf32>
    %55 = arith.addf %53, %54 : vector<8x128xf32>
    %cst_32 = arith.constant 0.000000e+00 : f32
    %56 = vector.broadcast %cst_32 : f32 to vector<8x128xf32>
    %57 = arith.cmpf ogt, %55, %56 : vector<8x128xf32>
    %cst_33 = arith.constant 2.000000e-02 : f32
    %58 = vector.broadcast %cst_33 : f32 to vector<8x128xf32>
    %59 = arith.mulf %58, %55 : vector<8x128xf32>
    %60 = arith.select %57, %55, %59 : vector<8x128xi1>, vector<8x128xf32>
    %c0_34 = arith.constant 0 : index
    %c640 = arith.constant 640 : index
    %61 = vector.load %arg8[%c0_34, %c640] : memref<8x1024xf32, #tpu.memory_space<vmem>>, vector<8x128xf32>
    tpu.vector_store %arg8[%c0_34, %c640], %60 {strides = array<i32>} : memref<8x1024xf32, #tpu.memory_space<vmem>>, vector<8x128xf32>,
    %c0_35 = arith.constant 0 : index
    %c2304 = arith.constant 2304 : index
    %62 = vector.load %arg1[%c0_35, %c2304] : memref<8x3072xbf16, #tpu.memory_space<vmem>>, vector<8x384xbf16>
    %cst_36 = arith.constant dense<0.000000e+00> : vector<8x128xf32>
    %63 = tpu.matmul %62, %0, %cst_36 {dimension_numbers = #tpu.dot_dimension_numbers<[1], [0], [0], [1], [0, 0, 1, 1], [], []>} : vector<8x384xbf16>, vector<384x128xbf16>, vector<8x128xf32> -> vector<8x128xf32>
    %64 = vector.broadcast %1 : vector<1x128xf32> to vector<8x128xf32>
    %65 = arith.addf %63, %64 : vector<8x128xf32>
    %cst_37 = arith.constant 0.000000e+00 : f32
    %66 = vector.broadcast %cst_37 : f32 to vector<8x128xf32>
    %67 = arith.cmpf ogt, %65, %66 : vector<8x128xf32>
    %cst_38 = arith.constant 2.000000e-02 : f32
    %68 = vector.broadcast %cst_38 : f32 to vector<8x128xf32>
    %69 = arith.mulf %68, %65 : vector<8x128xf32>
    %70 = arith.select %67, %65, %69 : vector<8x128xi1>, vector<8x128xf32>
    %c0_39 = arith.constant 0 : index
    %c768_40 = arith.constant 768 : index
    %71 = vector.load %arg8[%c0_39, %c768_40] : memref<8x1024xf32, #tpu.memory_space<vmem>>, vector<8x128xf32>
    tpu.vector_store %arg8[%c0_39, %c768_40], %70 {strides = array<i32>} : memref<8x1024xf32, #tpu.memory_space<vmem>>, vector<8x128xf32>,
    %c0_41 = arith.constant 0 : index
    %c2688 = arith.constant 2688 : index
    %72 = vector.load %arg1[%c0_41, %c2688] : memref<8x3072xbf16, #tpu.memory_space<vmem>>, vector<8x384xbf16>
    %cst_42 = arith.constant dense<0.000000e+00> : vector<8x128xf32>
    %73 = tpu.matmul %72, %0, %cst_42 {dimension_numbers = #tpu.dot_dimension_numbers<[1], [0], [0], [1], [0, 0, 1, 1], [], []>} : vector<8x384xbf16>, vector<384x128xbf16>, vector<8x128xf32> -> vector<8x128xf32>
    %74 = vector.broadcast %1 : vector<1x128xf32> to vector<8x128xf32>
    %75 = arith.addf %73, %74 : vector<8x128xf32>
    %cst_43 = arith.constant 0.000000e+00 : f32
    %76 = vector.broadcast %cst_43 : f32 to vector<8x128xf32>
    %77 = arith.cmpf ogt, %75, %76 : vector<8x128xf32>
    %cst_44 = arith.constant 2.000000e-02 : f32
    %78 = vector.broadcast %cst_44 : f32 to vector<8x128xf32>
    %79 = arith.mulf %78, %75 : vector<8x128xf32>
    %80 = arith.select %77, %75, %79 : vector<8x128xi1>, vector<8x128xf32>
    %c0_45 = arith.constant 0 : index
    %c896 = arith.constant 896 : index
    %81 = vector.load %arg8[%c0_45, %c896] : memref<8x1024xf32, #tpu.memory_space<vmem>>, vector<8x128xf32>
    tpu.vector_store %arg8[%c0_45, %c896], %80 {strides = array<i32>} : memref<8x1024xf32, #tpu.memory_space<vmem>>, vector<8x128xf32>,
    %c0_46 = arith.constant 0 : index
    %c0_47 = arith.constant 0 : index
    %82 = vector.load %arg8[%c0_46, %c0_47] : memref<8x1024xf32, #tpu.memory_space<vmem>>, vector<8x1024xf32>
    %83 = arith.truncf %82 : vector<8x1024xf32> to vector<8x1024xbf16>
    %c0_48 = arith.constant 0 : index
    %c0_49 = arith.constant 0 : index
    %84 = vector.load %arg3[%c0_48, %c0_49] : memref<1024x512xbf16, #tpu.memory_space<vmem>>, vector<1024x512xbf16>
    %cst_50 = arith.constant dense<0.000000e+00> : vector<8x512xf32>
    %85 = tpu.matmul %83, %84, %cst_50 {dimension_numbers = #tpu.dot_dimension_numbers<[1], [0], [0], [1], [0, 0, 1, 1], [], []>} : vector<8x1024xbf16>, vector<1024x512xbf16>, vector<8x512xf32> -> vector<8x512xf32>
    %c0_51 = arith.constant 0 : index
    %c128_52 = arith.constant 128 : index
    %86 = vector.load %arg6[%c0_51, %c128_52] : memref<1x1024xf32, #tpu.memory_space<vmem>>, vector<1x512xf32>
    %87 = vector.broadcast %86 : vector<1x512xf32> to vector<8x512xf32>
    %88 = arith.addf %85, %87 : vector<8x512xf32>
    %cst_53 = arith.constant 0.000000e+00 : f32
    %89 = vector.broadcast %cst_53 : f32 to vector<8x512xf32>
    %90 = arith.cmpf ogt, %88, %89 : vector<8x512xf32>
    %cst_54 = arith.constant 2.000000e-02 : f32
    %91 = vector.broadcast %cst_54 : f32 to vector<8x512xf32>
    %92 = arith.mulf %91, %88 : vector<8x512xf32>
    %93 = arith.select %90, %88, %92 : vector<8x512xi1>, vector<8x512xf32>
    %94 = arith.truncf %93 : vector<8x512xf32> to vector<8x512xbf16>
    %c0_55 = arith.constant 0 : index
    %c0_56 = arith.constant 0 : index
    %95 = vector.load %arg4[%c0_55, %c0_56] : memref<512x256xbf16, #tpu.memory_space<vmem>>, vector<512x256xbf16>
    %cst_57 = arith.constant dense<0.000000e+00> : vector<8x256xf32>
    %96 = tpu.matmul %94, %95, %cst_57 {dimension_numbers = #tpu.dot_dimension_numbers<[1], [0], [0], [1], [0, 0, 1, 1], [], []>} : vector<8x512xbf16>, vector<512x256xbf16>, vector<8x256xf32> -> vector<8x256xf32>
    %c0_58 = arith.constant 0 : index
    %c640_59 = arith.constant 640 : index
    %97 = vector.load %arg6[%c0_58, %c640_59] : memref<1x1024xf32, #tpu.memory_space<vmem>>, vector<1x256xf32>
    %98 = vector.broadcast %97 : vector<1x256xf32> to vector<8x256xf32>
    %99 = arith.addf %96, %98 : vector<8x256xf32>
    %cst_60 = arith.constant 0.000000e+00 : f32
    %100 = vector.broadcast %cst_60 : f32 to vector<8x256xf32>
    %101 = arith.cmpf ogt, %99, %100 : vector<8x256xf32>
    %cst_61 = arith.constant 2.000000e-02 : f32
    %102 = vector.broadcast %cst_61 : f32 to vector<8x256xf32>
    %103 = arith.mulf %102, %99 : vector<8x256xf32>
    %104 = arith.select %101, %99, %103 : vector<8x256xi1>, vector<8x256xf32>
    %105 = arith.truncf %104 : vector<8x256xf32> to vector<8x256xbf16>
    %c0_62 = arith.constant 0 : index
    %c0_63 = arith.constant 0 : index
    %106 = vector.load %arg5[%c0_62, %c0_63] : memref<256x128xbf16, #tpu.memory_space<vmem>>, vector<256x128xbf16>
    %cst_64 = arith.constant dense<0.000000e+00> : vector<8x128xf32>
    %107 = tpu.matmul %105, %106, %cst_64 {dimension_numbers = #tpu.dot_dimension_numbers<[1], [0], [0], [1], [0, 0, 1, 1], [], []>} : vector<8x256xbf16>, vector<256x128xbf16>, vector<8x128xf32> -> vector<8x128xf32>
    %c0_65 = arith.constant 0 : index
    %c896_66 = arith.constant 896 : index
    %108 = vector.load %arg6[%c0_65, %c896_66] : memref<1x1024xf32, #tpu.memory_space<vmem>>, vector<1x128xf32>
    %109 = vector.broadcast %108 : vector<1x128xf32> to vector<8x128xf32>
    %110 = arith.addf %107, %109 : vector<8x128xf32>
    %c0_67 = arith.constant 0 : index
    %c0_68 = arith.constant 0 : index
    %111 = vector.load %arg7[%c0_67, %c0_68] : memref<8x128xf32, #tpu.memory_space<vmem>>, vector<8x128xf32>
    tpu.vector_store %arg7[%c0_67, %c0_68], %110 {strides = array<i32>} : memref<8x128xf32, #tpu.memory_space<vmem>>, vector<8x128xf32>,
    return
  }
  func.func @transform_0(%arg0: i32) -> (i32, i32) {
    %c0_i32 = arith.constant 0 : i32
    %c0_i32_0 = arith.constant 0 : i32
    return %arg0, %c0_i32 : i32, i32
  }
  func.func @transform_1(%arg0: i32) -> (i32, i32) {
    %c0_i32 = arith.constant 0 : i32
    %c0_i32_0 = arith.constant 0 : i32
    %c0_i32_1 = arith.constant 0 : i32
    return %c0_i32, %c0_i32_0 : i32, i32
  }
  func.func @transform_2(%arg0: i32) -> (i32, i32) {
    %c0_i32 = arith.constant 0 : i32
    %c0_i32_0 = arith.constant 0 : i32
    %c0_i32_1 = arith.constant 0 : i32
    return %c0_i32, %c0_i32_0 : i32, i32
  }
  func.func @transform_3(%arg0: i32) -> (i32, i32) {
    %c0_i32 = arith.constant 0 : i32
    %c0_i32_0 = arith.constant 0 : i32
    %c0_i32_1 = arith.constant 0 : i32
    return %c0_i32, %c0_i32_0 : i32, i32
  }
  func.func @transform_4(%arg0: i32) -> (i32, i32) {
    %c0_i32 = arith.constant 0 : i32
    %c0_i32_0 = arith.constant 0 : i32
    %c0_i32_1 = arith.constant 0 : i32
    return %c0_i32, %c0_i32_0 : i32, i32
  }
  func.func @transform_5(%arg0: i32) -> (i32, i32) {
    %c0_i32 = arith.constant 0 : i32
    %c0_i32_0 = arith.constant 0 : i32
    %c0_i32_1 = arith.constant 0 : i32
    return %c0_i32, %c0_i32_0 : i32, i32
  }
  func.func @transform_6(%arg0: i32) -> (i32, i32) {
    %c0_i32 = arith.constant 0 : i32
    %c0_i32_0 = arith.constant 0 : i32
    return %arg0, %c0_i32 : i32, i32
  }
}

</mosaic_0001>

<bundles_post_ra>
// kernel: _lambda_.1
= control target key start
LH: loop header
LB: loop body
LE: loop exit
PB: predicated region body
PF: predicated region fallthrough
CT: control target
= control target key end

     0   :  { %11 = vsyncpa [#allocation4], 0  ;;  %s7627_s0 = inlined_call_operand.vmem [shape: bf16[8,3072], index: 0, kind: input, shape index: {}]   ;;  %s7628_s1 = inlined_call_operand.hbm [shape: bf16[384,128], index: 1, kind: input, shape index: {}]   ;;  %s7629_s2 = inlined_call_operand.vmem [shape: bf16[1024,512], index: 2, kind: input, shape index: {}]   ;;  %s7630_s3 = inlined_call_operand.vmem [shape: bf16[512,256], index: 3, kind: input, shape index: {}]   ;;  %s7631_s4 = inlined_call_operand.hbm [shape: bf16[256,128], index: 4, kind: input, shape index: {}]   ;;  %s7632_s5 = inlined_call_operand.vmem [shape: f32[1,1024], index: 5, kind: input, shape index: {}]   ;;  %s7633_s6 = inlined_call_operand.vmem [shape: f32[8,128], index: 6, kind: output, shape index: {}]  }
   0x1   :  { %s19_s23 = sshll.u32 %s7628_s1, 4  ;;  %s20_s23 = int_to_ptr.hbm [resolvable:$true] %s19_s23 }
   0x2   :  { %12 = vsyncpa [#allocation6], 0  ;;  %s5220_s24 = smov [#allocation3]   ;;  %s36_s28 = sshll.u32 %s7631_s4, 4  ;;  %s37_s28 = int_to_ptr.hbm [resolvable:$true] %s36_s28 }
   0x3   :  { %s21_s25 = sshll.u32 %s5220_s24, 4  ;;  %s5221_s29 = smov 64   ;;  %s22_s25 = int_to_ptr.vmem [resolvable:$true] %s21_s25 }
   0x4   :  { %s5222_s30 = smov 4   ;;  %s5223_s7 = smov [#allocation5]  }
   0x5   :  { %27 = dma.hbm_to_vmem [thread:$0]  %s20_s23, 3072, %s22_s25, [#allocation4], %s5221_s29, %s5221_s29, %s5222_s30  }
   0x6   :  { %s38_s8 = sshll.u32 %s5223_s7, 4  ;;  %s39_s8 = int_to_ptr.vmem [resolvable:$true] %s38_s8 }
   0x7   :  { %44 = dma.hbm_to_vmem [thread:$0]  %s37_s28, 2048, %s39_s8, [#allocation6], %s5221_s29, %s5221_s29, %s5222_s30  }
   0x8   :  { %5216 = dma.done.wait [#allocation4], 3072  }
   0x9   :  { %5217 = vsyncadd [#allocation4], 4294964224 }
   0xa   :  { %5218 = dma.done.wait [#allocation6], 2048  }
   0xb   :  { %5219 = vsyncadd [#allocation6], 4294965248  ;;  %v5265_v0 = vld [vmem:[#allocation3 + $0x38] sm:$0xff]  ;;  %v5273_v3 = vld [vmem:[#allocation3 + $0x30] sm:$0xff] }
   0xc   :  { %v5267_v1 = vld [vmem:[#allocation3 + $0x78] sm:$0xff]  ;;  %264 = vmatpush.bf16.msra.mxu0 %v5265_v0  ;;  %v5275_v4 = vld [vmem:[#allocation3 + $0x70] sm:$0xff]  ;;  %320 = vmatpush.bf16.msra.mxu3 %v5265_v0  ;;  %v5283_v6 = vld [vmem:[#allocation3 + $0x28] sm:$0xff] }
   0xd   :  { %v5269_v2 = vld [vmem:[#allocation3 + $0xb8] sm:$0xff]  ;;  %277 = vmatpush.bf16.msra.mxu1 %v5267_v1  ;;  %v5279_v5 = vld [vmem:[#allocation3 + $0xb0] sm:$0xff]  ;;  %v5285_v7 = vld [vmem:[#allocation3 + $0x68] sm:$0xff] }
   0xe   :  { %290 = vmatpush.bf16.msra.mxu2 %v5269_v2  ;;  %v5289_v8 = vld [vmem:[#allocation3 + $0xa8] sm:$0xff]  ;;  %v5293_v9 = vld [vmem:[#allocation3 + $0x20] sm:$0xff]  ;;  %v5303_v12 = vld [vmem:[#allocation3 + $0x18] sm:$0xff] }
   0xf   :  { %v5295_v10 = vld [vmem:[#allocation3 + $0x60] sm:$0xff]  ;;  %v5305_v13 = vld [vmem:[#allocation3 + $0x58] sm:$0xff]  ;;  %v5313_v15 = vld [vmem:[#allocation3 + $0x10] sm:$0xff] }
  0x10   :  { %265 = vmatpush.bf16.msra.mxu0 %v5273_v3  ;;  %321 = vmatpush.bf16.msra.mxu3 %v5273_v3  ;;  %v5299_v11 = vld [vmem:[#allocation3 + $0xa0] sm:$0xff]  ;;  %v5309_v14 = vld [vmem:[#allocation3 + $0x98] sm:$0xff]  ;;  %v5315_v16 = vld [vmem:[#allocation3 + $0x50] sm:$0xff] }
  0x11   :  { %278 = vmatpush.bf16.msra.mxu1 %v5275_v4  ;;  %v5319_v17 = vld [vmem:[#allocation3 + $0x90] sm:$0xff]  ;;  %v5323_v18 = vld [vmem:[#allocation3 + $0x8] sm:$0xff]  ;;  %v104_v21 = vld [vmem:[%s7627_s0] sm:$0xff] }
  0x12   :  { %291 = vmatpush.bf16.msra.mxu2 %v5279_v5  ;;  %v5325_v19 = vld [vmem:[#allocation3 + $0x48] sm:$0xff]  ;;  %v5342_v24 = vld [vmem:[#allocation3] sm:$0xff]  ;;  %v111_v26 = vunpack.c.l.b16 %v104_v21  ;;  %v112_v29 = vunpack.c.h.b16 %v104_v21  ;;  %v308_v35 = vld [vmem:[%s7627_s0 + $0x14] sm:$0xf] }
  0x13   :  { %v5329_v20 = vld [vmem:[#allocation3 + $0x88] sm:$0xff]  ;;  %v5344_v25 = vld [vmem:[#allocation3 + $0x40] sm:$0xff]  ;;  %v363_v36 = vld [vmem:[%s7627_s0 + $0x18] sm:$0xff]  ;;  %v313_v38 = vunpack.c.l.b16 %v308_v35 }
  0x14   :  { %266 = vmatpush.bf16.msra.mxu0 %v5283_v6  ;;  %322 = vmatpush.bf16.msra.mxu3 %v5283_v6  ;;  %v105_v22 = vld [vmem:[%s7627_s0 + $0x8] sm:$0xf]  ;;  %v307_v23 = vld [vmem:[%s7627_s0 + $0xc] sm:$0xff]  ;;  %v5348_v28 = vld [vmem:[#allocation3 + $0x80] sm:$0xff]  ;;  %v114_v31 = vpack.c.b16 %v111_v26, %v111_v26  ;;  %v115_v33 = vpack.c.b16 %v112_v29, %v112_v29  ;;  %v367_v39 = vunpack.c.l.b16 %v363_v36  ;;  %v368_v40 = vunpack.c.h.b16 %v363_v36 }
  0x15   :  { %279 = vmatpush.bf16.msra.mxu1 %v5285_v7  ;;  %v113_v27 = vunpack.c.l.b16 %v105_v22  ;;  %v311_v30 = vunpack.c.l.b16 %v307_v23  ;;  %v312_v37 = vunpack.c.h.b16 %v307_v23  ;;  %v316_v42 = vpack.c.b16 %v313_v38, %v313_v38  ;;  %v364_v45 = vld [vmem:[%s7627_s0 + $0x20] sm:$0xf]  ;;  %v419_v46 = vld [vmem:[%s7627_s0 + $0x24] sm:$0xff]  ;;  %v420_v47 = vld [vmem:[%s7627_s0 + $0x2c] sm:$0xf] }
  0x16   :  { %292 = vmatpush.bf16.msra.mxu2 %v5289_v8  ;;  %v370_v43 = vpack.c.b16 %v367_v39, %v367_v39  ;;  %v371_v44 = vpack.c.b16 %v368_v40, %v368_v40  ;;  %v369_v48 = vunpack.c.l.b16 %v364_v45  ;;  %v424_v49 = vunpack.c.h.b16 %v419_v46  ;;  %v476_v56 = vld [vmem:[%s7627_s0 + $0x38] sm:$0xf]  ;;  %v475_v57 = vld [vmem:[%s7627_s0 + $0x30] sm:$0xff]  ;;  %v531_v58 = vld [vmem:[%s7627_s0 + $0x3c] sm:$0xff] }
  0x17   :  { %v116_v32 = vpack.c.b16 %v113_v27, %v113_v27  ;;  %v314_v34 = vpack.c.b16 %v311_v30, %v311_v30  ;;  %v315_v41 = vpack.c.b16 %v312_v37, %v312_v37  ;;  %v425_v50 = vunpack.c.l.b16 %v420_v47  ;;  %v532_v26 = vld [vmem:[%s7627_s0 + $0x44] sm:$0xf]  ;;  %v587_v27 = vld [vmem:[%s7627_s0 + $0x48] sm:$0xff]  ;;  %v3554_v38 = vld [vmem:[%s7629_s2 + $0xc0] sm:$0xf] }
  0x18   :  { %267 = vmatpush.bf16.msra.mxu0 %v5293_v9  ;;  %323 = vmatpush.bf16.msra.mxu3 %v5293_v9  ;;  %v423_v51 = vunpack.c.l.b16 %v419_v46  ;;  %v372_v52 = vpack.c.b16 %v369_v48, %v369_v48  ;;  %v427_v53 = vpack.c.b16 %v424_v49, %v424_v49  ;;  %v481_v59 = vunpack.c.l.b16 %v476_v56  ;;  %v3826_v39 = vld [vmem:[%s7629_s2 + $0x2e0] sm:$0xf]  ;;  %v4882_v46 = vld [vmem:[%s7629_s2 + $0x1cc] sm:$0xf0] }
  0x19   :  { %280 = vmatpush.bf16.msra.mxu1 %v5295_v10  ;;  %v428_v54 = vpack.c.b16 %v425_v50, %v425_v50  ;;  %v479_v60 = vunpack.c.l.b16 %v475_v57  ;;  %v480_v61 = vunpack.c.h.b16 %v475_v57  ;;  %v535_v62 = vunpack.c.l.b16 %v531_v58  ;;  %v3682_v45 = vld [vmem:[%s7629_s2 + $0x1c0] sm:$0xf]  ;;  %v4878_v57 = vld [vmem:[%s7629_s2 + $0x1ac] sm:$0xf0] }
  0x1a   :  { %293 = vmatpush.bf16.msra.mxu2 %v5299_v11  ;;  %v426_v55 = vpack.c.b16 %v423_v51, %v423_v51  ;;  %v484_v63 = vpack.c.b16 %v481_v59, %v481_v59  ;;  %v536_v29 = vunpack.c.h.b16 %v531_v58  ;;  %v537_v30 = vunpack.c.l.b16 %v532_v26  ;;  %v3538_v49 = vld [vmem:[%s7629_s2 + $0xa0] sm:$0xf]  ;;  %v4942_v26 = vld [vmem:[%s7629_s2 + $0x3ac] sm:$0xf0] }
  0x1b   :  { %v482_v21 = vpack.c.b16 %v479_v60, %v479_v60  ;;  %v483_v22 = vpack.c.b16 %v480_v61, %v480_v61  ;;  %v538_v23 = vpack.c.b16 %v535_v62, %v535_v62  ;;  %v3810_v51 = vld [vmem:[%s7629_s2 + $0x2c0] sm:$0xf] }
  0x1c   :  { %268 = vmatpush.bf16.msra.mxu0 %v5303_v12  ;;  %324 = vmatpush.bf16.msra.mxu3 %v5303_v12  ;;  %v3666_v56 = vld [vmem:[%s7629_s2 + $0x1a0] sm:$0xf] }
  0x1d   :  { %281 = vmatpush.bf16.msra.mxu1 %v5305_v13  ;;  %v5624_v58 = vld [vmem:[%s7632_s5] ss:$0 sm:$0xff] }
  0x1e   :  { %294 = vmatpush.bf16.msra.mxu2 %v5309_v14  ;;  %v3522_v59 = vld [vmem:[%s7629_s2 + $0x80] sm:$0xf] }
  0x1f   :  { %v3794_v61 = vld [vmem:[%s7629_s2 + $0x2a0] sm:$0xf] }
  0x20   :  { %269 = vmatpush.bf16.msra.mxu0 %v5313_v15  ;;  %325 = vmatpush.bf16.msra.mxu3 %v5313_v15 }
  0x21   :  { %282 = vmatpush.bf16.msra.mxu1 %v5315_v16 }
  0x22   :  { %295 = vmatpush.bf16.msra.mxu2 %v5319_v17 }
  0x24   :  { %270 = vmatpush.bf16.msra.mxu0 %v5323_v18  ;;  %326 = vmatpush.bf16.msra.mxu3 %v5323_v18 }
  0x25   :  { %283 = vmatpush.bf16.msra.mxu1 %v5325_v19 }
  0x26   :  { %296 = vmatpush.bf16.msra.mxu2 %v5329_v20 }
  0x28   :  { %271 = vmatpush.bf16.msra.mxu0 %v5342_v24  ;;  %327 = vmatpush.bf16.msra.mxu3 %v5342_v24 }
  0x29   :  { %284 = vmatpush.bf16.msra.mxu1 %v5344_v25 }
  0x2a   :  { %297 = vmatpush.bf16.msra.mxu2 %v5348_v28 }
  0x2b   :  { %272 = vmatmul.bf16.vlgmr.msra.gmra.mxu0 %v114_v31  ;;  %328 = vmatmul.bf16.vlgmr.msra.gmra.mxu3 %v314_v34  ;;  %v591_v31 = vunpack.c.l.b16 %v587_v27  ;;  %v540_v34 = vpack.c.b16 %v537_v30, %v537_v30  ;;  %v4874_v30 = vld [vmem:[%s7629_s2 + $0x18c] sm:$0xf0] }
  0x2c   :  { %333 = vmatpush.bf16.msrb.mxu0 %v5267_v1  ;;  %389 = vmatpush.bf16.msrb.mxu3 %v5267_v1 }
  0x2d   :  { %346 = vmatpush.bf16.msrb.mxu1 %v5269_v2  ;;  %298 = vmatmul.bf16.vlgmr.msra.gmra.mxu2 %v116_v32  ;;  %v592_v32 = vunpack.c.h.b16 %v587_v27  ;;  %v594_v35 = vpack.c.b16 %v591_v31, %v591_v31  ;;  %v4842_v27 = vld [vmem:[%s7629_s2 + $0x8c] sm:$0xf0] }
  0x2e   :  { %376 = vmatpush.bf16.msrb.mxu2 %v5265_v0  ;;  %285 = vmatmul.bf16.vlgmr.msra.gmra.mxu1 %v115_v33  ;;  %v539_v33 = vpack.c.b16 %v536_v29, %v536_v29  ;;  %v3650_v29 = vld [vmem:[%s7629_s2 + $0x180] sm:$0xf] }
  0x2f   :  { %v595_v36 = vpack.c.b16 %v592_v32, %v592_v32  ;;  %v3506_v32 = vld [vmem:[%s7629_s2 + $0x60] sm:$0xf] }
  0x30   :  { %334 = vmatpush.bf16.msrb.mxu0 %v5275_v4  ;;  %390 = vmatpush.bf16.msrb.mxu3 %v5275_v4 }
  0x31   :  { %347 = vmatpush.bf16.msrb.mxu1 %v5279_v5 }
  0x32   :  { %377 = vmatpush.bf16.msrb.mxu2 %v5273_v3 }
  0x34   :  { %335 = vmatpush.bf16.msrb.mxu0 %v5285_v7  ;;  %391 = vmatpush.bf16.msrb.mxu3 %v5285_v7 }
  0x35   :  { %348 = vmatpush.bf16.msrb.mxu1 %v5289_v8 }
  0x36   :  { %378 = vmatpush.bf16.msrb.mxu2 %v5283_v6 }
  0x38   :  { %336 = vmatpush.bf16.msrb.mxu0 %v5295_v10  ;;  %392 = vmatpush.bf16.msrb.mxu3 %v5295_v10 }
  0x39   :  { %349 = vmatpush.bf16.msrb.mxu1 %v5299_v11 }
  0x3a   :  { %379 = vmatpush.bf16.msrb.mxu2 %v5293_v9 }
  0x3c   :  { %337 = vmatpush.bf16.msrb.mxu0 %v5305_v13  ;;  %393 = vmatpush.bf16.msrb.mxu3 %v5305_v13 }
  0x3d   :  { %350 = vmatpush.bf16.msrb.mxu1 %v5309_v14 }
  0x3e   :  { %380 = vmatpush.bf16.msrb.mxu2 %v5303_v12 }
  0x40   :  { %338 = vmatpush.bf16.msrb.mxu0 %v5315_v16  ;;  %394 = vmatpush.bf16.msrb.mxu3 %v5315_v16 }
  0x41   :  { %351 = vmatpush.bf16.msrb.mxu1 %v5319_v17 }
  0x42   :  { %381 = vmatpush.bf16.msrb.mxu2 %v5313_v15 }
  0x44   :  { %339 = vmatpush.bf16.msrb.mxu0 %v5325_v19  ;;  %395 = vmatpush.bf16.msrb.mxu3 %v5325_v19 }
  0x45   :  { %352 = vmatpush.bf16.msrb.mxu1 %v5329_v20 }
  0x46   :  { %382 = vmatpush.bf16.msrb.mxu2 %v5323_v18 }
  0x48   :  { %340 = vmatpush.bf16.msrb.mxu0 %v5344_v25  ;;  %396 = vmatpush.bf16.msrb.mxu3 %v5344_v25 }
  0x49   :  { %353 = vmatpush.bf16.msrb.mxu1 %v5348_v28 }
  0x4a   :  { %383 = vmatpush.bf16.msrb.mxu2 %v5342_v24 }
  0x4b   :  { %341 = vmatmul.bf16.vlgmr.msrb.gmra.mxu0 %v315_v41  ;;  %397 = vmatmul.bf16.vlgmr.msrb.gmra.mxu3 %v371_v44  ;;  %v4850_v44 = vld [vmem:[%s7629_s2 + $0xcc] sm:$0xf0] }
  0x4c   :  { %402 = vmatpush.bf16.msra.mxu0 %v5269_v2  ;;  %458 = vmatpush.bf16.msra.mxu3 %v5269_v2 }
  0x4d   :  { %432 = vmatpush.bf16.msra.mxu1 %v5265_v0  ;;  %384 = vmatmul.bf16.vlgmr.msrb.gmra.mxu2 %v370_v43 }
  0x4e   :  { %445 = vmatpush.bf16.msra.mxu2 %v5267_v1  ;;  %354 = vmatmul.bf16.vlgmr.msrb.gmra.mxu1 %v316_v42 }
  0x50   :  { %403 = vmatpush.bf16.msra.mxu0 %v5279_v5  ;;  %459 = vmatpush.bf16.msra.mxu3 %v5279_v5 }
  0x51   :  { %433 = vmatpush.bf16.msra.mxu1 %v5273_v3 }
  0x52   :  { %446 = vmatpush.bf16.msra.mxu2 %v5275_v4 }
  0x54   :  { %404 = vmatpush.bf16.msra.mxu0 %v5289_v8  ;;  %460 = vmatpush.bf16.msra.mxu3 %v5289_v8 }
  0x55   :  { %434 = vmatpush.bf16.msra.mxu1 %v5283_v6 }
  0x56   :  { %447 = vmatpush.bf16.msra.mxu2 %v5285_v7 }
  0x58   :  { %405 = vmatpush.bf16.msra.mxu0 %v5299_v11  ;;  %461 = vmatpush.bf16.msra.mxu3 %v5299_v11 }
  0x59   :  { %435 = vmatpush.bf16.msra.mxu1 %v5293_v9 }
  0x5a   :  { %448 = vmatpush.bf16.msra.mxu2 %v5295_v10 }
  0x5c   :  { %406 = vmatpush.bf16.msra.mxu0 %v5309_v14  ;;  %462 = vmatpush.bf16.msra.mxu3 %v5309_v14 }
  0x5d   :  { %436 = vmatpush.bf16.msra.mxu1 %v5303_v12 }
  0x5e   :  { %449 = vmatpush.bf16.msra.mxu2 %v5305_v13 }
  0x60   :  { %407 = vmatpush.bf16.msra.mxu0 %v5319_v17  ;;  %463 = vmatpush.bf16.msra.mxu3 %v5319_v17 }
  0x61   :  { %437 = vmatpush.bf16.msra.mxu1 %v5313_v15 }
  0x62   :  { %450 = vmatpush.bf16.msra.mxu2 %v5315_v16 }
  0x64   :  { %408 = vmatpush.bf16.msra.mxu0 %v5329_v20  ;;  %464 = vmatpush.bf16.msra.mxu3 %v5329_v20 }
  0x65   :  { %438 = vmatpush.bf16.msra.mxu1 %v5323_v18 }
  0x66   :  { %451 = vmatpush.bf16.msra.mxu2 %v5325_v19 }
  0x68   :  { %409 = vmatpush.bf16.msra.mxu0 %v5348_v28  ;;  %465 = vmatpush.bf16.msra.mxu3 %v5348_v28 }
  0x69   :  { %439 = vmatpush.bf16.msra.mxu1 %v5342_v24 }
  0x6a   :  { %452 = vmatpush.bf16.msra.mxu2 %v5344_v25 }
  0x6b   :  { %410 = vmatmul.bf16.vlgmr.msra.gmra.mxu0 %v372_v52  ;;  %466 = vmatmul.bf16.vlgmr.msra.gmra.mxu3 %v428_v54  ;;  %v4946_v54 = vld [vmem:[%s7629_s2 + $0x3cc] sm:$0xf0] }
  0x6c   :  { %488 = vmatpush.bf16.msrb.mxu0 %v5265_v0  ;;  %544 = vmatpush.bf16.msrb.mxu3 %v5265_v0 }
  0x6d   :  { %501 = vmatpush.bf16.msrb.mxu1 %v5267_v1  ;;  %453 = vmatmul.bf16.vlgmr.msra.gmra.mxu2 %v427_v53  ;;  %v3555_v53 = vor.u32 %v4850_v44, %v3554_v38  ;;  %v3474_v44 = vld [vmem:[%s7629_s2 + $0x20] sm:$0xf] }
  0x6e   :  { %514 = vmatpush.bf16.msrb.mxu2 %v5269_v2  ;;  %440 = vmatmul.bf16.vlgmr.msra.gmra.mxu1 %v426_v55  ;;  %v4846_v55 = vld [vmem:[%s7629_s2 + $0xac] sm:$0xf0] }
  0x70   :  { %489 = vmatpush.bf16.msrb.mxu0 %v5273_v3  ;;  %545 = vmatpush.bf16.msrb.mxu3 %v5273_v3 }
  0x71   :  { %502 = vmatpush.bf16.msrb.mxu1 %v5275_v4 }
  0x72   :  { %515 = vmatpush.bf16.msrb.mxu2 %v5279_v5 }
  0x74   :  { %490 = vmatpush.bf16.msrb.mxu0 %v5283_v6  ;;  %546 = vmatpush.bf16.msrb.mxu3 %v5283_v6 }
  0x75   :  { %503 = vmatpush.bf16.msrb.mxu1 %v5285_v7 }
  0x76   :  { %516 = vmatpush.bf16.msrb.mxu2 %v5289_v8 }
  0x78   :  { %491 = vmatpush.bf16.msrb.mxu0 %v5293_v9  ;;  %547 = vmatpush.bf16.msrb.mxu3 %v5293_v9 }
  0x79   :  { %504 = vmatpush.bf16.msrb.mxu1 %v5295_v10 }
  0x7a   :  { %517 = vmatpush.bf16.msrb.mxu2 %v5299_v11 }
  0x7c   :  { %492 = vmatpush.bf16.msrb.mxu0 %v5303_v12  ;;  %548 = vmatpush.bf16.msrb.mxu3 %v5303_v12 }
  0x7d   :  { %505 = vmatpush.bf16.msrb.mxu1 %v5305_v13 }
  0x7e   :  { %518 = vmatpush.bf16.msrb.mxu2 %v5309_v14 }
  0x80   :  { %493 = vmatpush.bf16.msrb.mxu0 %v5313_v15  ;;  %549 = vmatpush.bf16.msrb.mxu3 %v5313_v15 }
  0x81   :  { %506 = vmatpush.bf16.msrb.mxu1 %v5315_v16 }
  0x82   :  { %519 = vmatpush.bf16.msrb.mxu2 %v5319_v17 }
  0x84   :  { %494 = vmatpush.bf16.msrb.mxu0 %v5323_v18  ;;  %550 = vmatpush.bf16.msrb.mxu3 %v5323_v18 }
  0x85   :  { %507 = vmatpush.bf16.msrb.mxu1 %v5325_v19 }
  0x86   :  { %520 = vmatpush.bf16.msrb.mxu2 %v5329_v20 }
  0x88   :  { %495 = vmatpush.bf16.msrb.mxu0 %v5342_v24  ;;  %551 = vmatpush.bf16.msrb.mxu3 %v5342_v24 }
  0x89   :  { %508 = vmatpush.bf16.msrb.mxu1 %v5344_v25 }
  0x8a   :  { %521 = vmatpush.bf16.msrb.mxu2 %v5348_v28 }
  0x8b   :  { %496 = vmatmul.bf16.vlgmr.msrb.gmra.mxu0 %v482_v21  ;;  %552 = vmatmul.bf16.vlgmr.msrb.gmra.mxu3 %v538_v23  ;;  %v3667_v21 = vor.u32 %v4878_v57, %v3666_v56  ;;  %v3922_v23 = vld [vmem:[%s7629_s2 + $0x3a0] sm:$0xf]  ;;  %v4826_v57 = vld [vmem:[%s7629_s2 + $0xc] sm:$0xf0] }
  0x8c   :  { %557 = vmatpush.bf16.msra.mxu0 %v5267_v1  ;;  %613 = vmatpush.bf16.msra.mxu3 %v5267_v1  ;;  %v3458_v56 = vld [vmem:[%s7629_s2] sm:$0xf] }
  0x8d   :  { %570 = vmatpush.bf16.msra.mxu1 %v5269_v2  ;;  %522 = vmatmul.bf16.vlgmr.msrb.gmra.mxu2 %v484_v63  ;;  %v3539_v63 = vor.u32 %v4846_v55, %v3538_v49 }
  0x8e   :  { %600 = vmatpush.bf16.msra.mxu2 %v5265_v0  ;;  %509 = vmatmul.bf16.vlgmr.msrb.gmra.mxu1 %v483_v22  ;;  %v4910_v22 = vld [vmem:[%s7629_s2 + $0x2ac] sm:$0xf0] }
  0x90   :  { %558 = vmatpush.bf16.msra.mxu0 %v5275_v4  ;;  %614 = vmatpush.bf16.msra.mxu3 %v5275_v4 }
  0x91   :  { %571 = vmatpush.bf16.msra.mxu1 %v5279_v5 }
  0x92   :  { %601 = vmatpush.bf16.msra.mxu2 %v5273_v3 }
  0x94   :  { %559 = vmatpush.bf16.msra.mxu0 %v5285_v7  ;;  %615 = vmatpush.bf16.msra.mxu3 %v5285_v7 }
  0x95   :  { %572 = vmatpush.bf16.msra.mxu1 %v5289_v8 }
  0x96   :  { %602 = vmatpush.bf16.msra.mxu2 %v5283_v6 }
  0x98   :  { %560 = vmatpush.bf16.msra.mxu0 %v5295_v10  ;;  %616 = vmatpush.bf16.msra.mxu3 %v5295_v10 }
  0x99   :  { %573 = vmatpush.bf16.msra.mxu1 %v5299_v11 }
  0x9a   :  { %603 = vmatpush.bf16.msra.mxu2 %v5293_v9 }
  0x9c   :  { %561 = vmatpush.bf16.msra.mxu0 %v5305_v13  ;;  %617 = vmatpush.bf16.msra.mxu3 %v5305_v13 }
  0x9d   :  { %574 = vmatpush.bf16.msra.mxu1 %v5309_v14 }
  0x9e   :  { %604 = vmatpush.bf16.msra.mxu2 %v5303_v12 }
  0xa0   :  { %562 = vmatpush.bf16.msra.mxu0 %v5315_v16  ;;  %618 = vmatpush.bf16.msra.mxu3 %v5315_v16 }
  0xa1   :  { %575 = vmatpush.bf16.msra.mxu1 %v5319_v17 }
  0xa2   :  { %605 = vmatpush.bf16.msra.mxu2 %v5313_v15 }
  0xa4   :  { %563 = vmatpush.bf16.msra.mxu0 %v5325_v19  ;;  %619 = vmatpush.bf16.msra.mxu3 %v5325_v19 }
  0xa5   :  { %576 = vmatpush.bf16.msra.mxu1 %v5329_v20 }
  0xa6   :  { %606 = vmatpush.bf16.msra.mxu2 %v5323_v18 }
  0xa8   :  { %564 = vmatpush.bf16.msra.mxu0 %v5344_v25  ;;  %620 = vmatpush.bf16.msra.mxu3 %v5344_v25  ;;  %v5520_v37 = vpop.f32.mrf.mxu0 }
  0xa9   :  { %577 = vmatpush.bf16.msra.mxu1 %v5348_v28  ;;  %v274_v31 = vadd.f32 %v5624_v58, %v5520_v37  ;;  %v4906_v37 = vld [vmem:[%s7629_s2 + $0x28c] sm:$0xf0] }
  0xaa   :  { %607 = vmatpush.bf16.msra.mxu2 %v5342_v24 }
  0xab   :  { %565 = vmatmul.bf16.vlgmr.msra.gmra.mxu0 %v539_v33  ;;  %621 = vmatmul.bf16.vlgmr.msra.gmra.mxu3 %v595_v36  ;;  %v3778_v36 = vld [vmem:[%s7629_s2 + $0x280] sm:$0xf] }
  0xac   :  { %626 = vmatpush.bf16.msrb.mxu0 %v5269_v2  ;;  %682 = vmatpush.bf16.msrb.mxu3 %v5269_v2 }
  0xad   :  { %656 = vmatpush.bf16.msrb.mxu1 %v5265_v0  ;;  %608 = vmatmul.bf16.vlgmr.msra.gmra.mxu2 %v594_v35  ;;  %v5524_v0 = vpop.f32.mrf.mxu1  ;;  %v3795_v35 = vor.u32 %v4910_v22, %v3794_v61  ;;  %v3730_v61 = vld [vmem:[%s7629_s2 + $0x220] sm:$0xf]  ;;  %v4894_v22 = vld [vmem:[%s7629_s2 + $0x22c] sm:$0xf0] }
  0xae   :  { %669 = vmatpush.bf16.msrb.mxu2 %v5267_v1  ;;  %578 = vmatmul.bf16.vlgmr.msra.gmra.mxu1 %v540_v34  ;;  %v5534_v2 = vpop.f32.mrf.mxu3 }
  0xb0   :  { %627 = vmatpush.bf16.msrb.mxu0 %v5279_v5  ;;  %683 = vmatpush.bf16.msrb.mxu3 %v5279_v5  ;;  %v5532_v1 = vpop.f32.mrf.mxu2  ;;  %v588_v5 = vld [vmem:[%s7627_s0 + $0x50] sm:$0xf] }
  0xb1   :  { %657 = vmatpush.bf16.msrb.mxu1 %v5273_v3  ;;  %v275_v3 = vpop.f32.mrf.mxu0 }
  0xb2   :  { %670 = vmatpush.bf16.msrb.mxu2 %v5275_v4  ;;  %v3923_v3 = vor.u32 %v4942_v26, %v3922_v23  ;;  %v3858_v23 = vld [vmem:[%s7629_s2 + $0x320] sm:$0xf]  ;;  %v4926_v26 = vld [vmem:[%s7629_s2 + $0x32c] sm:$0xf0] }
  0xb4   :  { %628 = vmatpush.bf16.msrb.mxu0 %v5289_v8  ;;  %684 = vmatpush.bf16.msrb.mxu3 %v5289_v8 }
  0xb5   :  { %658 = vmatpush.bf16.msrb.mxu1 %v5283_v6  ;;  %v288_v4 = vpop.f32.mrf.mxu1  ;;  %v643_v6 = vld [vmem:[%s7627_s0 + $0x54] sm:$0xff] }
  0xb6   :  { %671 = vmatpush.bf16.msrb.mxu2 %v5285_v7  ;;  %v644_v7 = vld [vmem:[%s7627_s0 + $0x5c] sm:$0xf]  ;;  %v3523_v4 = vor.u32 %v4842_v27, %v3522_v59  ;;  %v3586_v59 = vld [vmem:[%s7629_s2 + $0x100] sm:$0xf]  ;;  %v4858_v27 = vld [vmem:[%s7629_s2 + $0x10c] sm:$0xf0] }
  0xb8   :  { %629 = vmatpush.bf16.msrb.mxu0 %v5299_v11  ;;  %685 = vmatpush.bf16.msrb.mxu3 %v5299_v11  ;;  %v301_v8 = vpop.f32.mrf.mxu2  ;;  %v4854_v11 = vld [vmem:[%s7629_s2 + $0xec] sm:$0xf0] }
  0xb9   :  { %659 = vmatpush.bf16.msrb.mxu1 %v5293_v9  ;;  %v3570_v9 = vld [vmem:[%s7629_s2 + $0xe0] sm:$0xf]  ;;  %v4838_v8 = vld [vmem:[%s7629_s2 + $0x6c] sm:$0xf0] }
  0xba   :  { %672 = vmatpush.bf16.msrb.mxu2 %v5295_v10  ;;  %v331_v10 = vpop.f32.mrf.mxu3  ;;  %v3571_v40 = vor.u32 %v4854_v11, %v3570_v9  ;;  %v3634_v9 = vld [vmem:[%s7629_s2 + $0x160] sm:$0xf]  ;;  %v287_v11 = vadd.f32 %v5524_v0, %v274_v31  ;;  %v4902_v0 = vld [vmem:[%s7629_s2 + $0x26c] sm:$0xf0] }
  0xbb   :  { %v4870_v10 = vld [vmem:[%s7629_s2 + $0x16c] sm:$0xf0] }
  0xbc   :  { %630 = vmatpush.bf16.msrb.mxu0 %v5309_v14  ;;  %686 = vmatpush.bf16.msrb.mxu3 %v5309_v14  ;;  %v593_v14 = vunpack.c.l.b16 %v588_v5  ;;  %v3651_v5 = vor.u32 %v4874_v30, %v3650_v29  ;;  %v3635_v38 = vor.u32 %v4870_v10, %v3634_v9  ;;  %v4082_v29 = vld [vmem:[%s7629_s2 + $0x4e0] sm:$0xf]  ;;  %v4982_v30 = vld [vmem:[%s7629_s2 + $0x4ec] sm:$0xf0] }
  0xbd   :  { %660 = vmatpush.bf16.msrb.mxu1 %v5303_v12  ;;  %v3698_v12 = vld [vmem:[%s7629_s2 + $0x1e0] sm:$0xf]  ;;  %v4890_v9 = vld [vmem:[%s7629_s2 + $0x20c] sm:$0xf0] }
  0xbe   :  { %673 = vmatpush.bf16.msrb.mxu2 %v5305_v13  ;;  %v4886_v13 = vld [vmem:[%s7629_s2 + $0x1ec] sm:$0xf0]  ;;  %v596_v42 = vpack.c.b16 %v593_v14, %v593_v14  ;;  %v3779_v14 = vor.u32 %v4906_v37, %v3778_v36  ;;  %v3731_v36 = vor.u32 %v4894_v22, %v3730_v61  ;;  %v4066_v37 = vld [vmem:[%s7629_s2 + $0x4c0] sm:$0xf] }
  0xbf   :  { %v3699_v41 = vor.u32 %v4886_v13, %v3698_v12  ;;  %v330_v12 = vadd.f32 %v5624_v58, %v5534_v2  ;;  %v3490_v13 = vld [vmem:[%s7629_s2 + $0x40] sm:$0xf]  ;;  %v4962_v61 = vld [vmem:[%s7629_s2 + $0x44c] sm:$0xf0] }
  0xc0   :  { %631 = vmatpush.bf16.msrb.mxu0 %v5319_v17  ;;  %687 = vmatpush.bf16.msrb.mxu3 %v5319_v17  ;;  %v649_v17 = vunpack.c.l.b16 %v644_v7  ;;  %v4938_v7 = vld [vmem:[%s7629_s2 + $0x38c] sm:$0xf0]  ;;  %v3890_v2 = vld [vmem:[%s7629_s2 + $0x360] sm:$0xf] }
  0xc1   :  { %661 = vmatpush.bf16.msrb.mxu1 %v5313_v15  ;;  %v647_v15 = vunpack.c.l.b16 %v643_v6 }
  0xc2   :  { %674 = vmatpush.bf16.msrb.mxu2 %v5315_v16  ;;  %v648_v16 = vunpack.c.h.b16 %v643_v6  ;;  %v652_v48 = vpack.c.b16 %v649_v17, %v649_v17  ;;  %v3906_v6 = vld [vmem:[%s7629_s2 + $0x380] sm:$0xf]  ;;  %v3507_v17 = vor.u32 %v4838_v8, %v3506_v32  ;;  %v4083_v8 = vor.u32 %v4982_v30, %v4082_v29 }
  0xc3   :  { %v650_v43 = vpack.c.b16 %v647_v15, %v647_v15  ;;  %v3762_v15 = vld [vmem:[%s7629_s2 + $0x260] sm:$0xf] }
  0xc4   :  { %632 = vmatpush.bf16.msrb.mxu0 %v5329_v20  ;;  %688 = vmatpush.bf16.msrb.mxu3 %v5329_v20  ;;  %v4950_v20 = vld [vmem:[%s7629_s2 + $0x3ec] sm:$0xf0]  ;;  %v651_v47 = vpack.c.b16 %v648_v16, %v648_v16  ;;  %v3907_v16 = vor.u32 %v4938_v7, %v3906_v6  ;;  %v3714_v6 = vld [vmem:[%s7629_s2 + $0x200] sm:$0xf] }
  0xc5   :  { %662 = vmatpush.bf16.msrb.mxu1 %v5323_v18  ;;  %v4918_v18 = vld [vmem:[%s7629_s2 + $0x2ec] sm:$0xf0] }
  0xc6   :  { %675 = vmatpush.bf16.msrb.mxu2 %v5325_v19  ;;  %v3954_v19 = vld [vmem:[%s7629_s2 + $0x3e0] sm:$0xf]  ;;  %v3827_v50 = vor.u32 %v4918_v18, %v3826_v39  ;;  %v4934_v39 = vld [vmem:[%s7629_s2 + $0x36c] sm:$0xf0] }
  0xc7   :  { %v3955_v52 = vor.u32 %v4950_v20, %v3954_v19  ;;  %v4866_v18 = vld [vmem:[%s7629_s2 + $0x14c] sm:$0xf0]  ;;  %v300_v19 = vadd.f32 %v5532_v1, %v287_v11  ;;  %v3891_v49 = vor.u32 %v4934_v39, %v3890_v2  ;;  %v3842_v11 = vld [vmem:[%s7629_s2 + $0x300] sm:$0xf] }
  0xc8   :  { %633 = vmatpush.bf16.msrb.mxu0 %v5348_v28  ;;  %689 = vmatpush.bf16.msrb.mxu3 %v5348_v28  ;;  %v3938_v28 = vld [vmem:[%s7629_s2 + $0x3c0] sm:$0xf]  ;;  %v342_v33 = vpop.f32.mrf.mxu0 }
  0xc9   :  { %663 = vmatpush.bf16.msrb.mxu1 %v5342_v24  ;;  %v3683_v24 = vor.u32 %v4882_v46, %v3682_v45  ;;  %v3939_v62 = vor.u32 %v4946_v54, %v3938_v28  ;;  %v343_v20 = vadd.f32 %v342_v33, %v330_v12  ;;  %v3763_v46 = vor.u32 %v4902_v0, %v3762_v15  ;;  %v4862_v28 = vld [vmem:[%s7629_s2 + $0x12c] sm:$0xf0]  ;;  %v4194_v15 = vld [vmem:[%s7629_s2 + $0x5c0] sm:$0xf] }
  0xca   :  { %676 = vmatpush.bf16.msrb.mxu2 %v5344_v25  ;;  %v4914_v25 = vld [vmem:[%s7629_s2 + $0x2cc] sm:$0xf0]  ;;  %vm303_vm0 = vcmp.gt.f32.partialorder %v300_v19, 0.0  ;;  %v304_v54 = vmul.f32 0.02, %v300_v19 }
  0xcb   :  { %634 = vmatmul.bf16.vlgmr.msrb.gmra.mxu0 %v596_v42  ;;  %690 = vmatmul.bf16.vlgmr.msrb.gmra.mxu3 %v652_v48  ;;  %v3811_v60 = vor.u32 %v4914_v25, %v3810_v51  ;;  %v355_v34 = vpop.f32.mrf.mxu1  ;;  %v3746_v48 = vld [vmem:[%s7629_s2 + $0x240] sm:$0xf]  ;;  %v4898_v51 = vld [vmem:[%s7629_s2 + $0x24c] sm:$0xf0] }
  0xcc   :  { %2261 = vmatpush.bf16.msra.mxu0 %v3571_v40  ;;  %664 = vmatmul.bf16.vlgmr.msrb.gmra.mxu1 %v650_v43  ;;  %v4834_v40 = vld [vmem:[%s7629_s2 + $0x4c] sm:$0xf0]  ;;  %v3602_v25 = vld [vmem:[%s7629_s2 + $0x120] sm:$0xf]  ;;  %v356_v55 = vadd.f32 %v355_v34, %v343_v20  ;;  %v305_v7 = vsel %vm303_vm0, %v300_v19, %v304_v54 }
  0xcd   :  { %2274 = vmatpush.bf16.msra.mxu1 %v3699_v41  ;;  %677 = vmatmul.bf16.vlgmr.msrb.gmra.mxu2 %v651_v47  ;;  %v3618_v41 = vld [vmem:[%s7629_s2 + $0x140] sm:$0xf]  ;;  %v3491_v1 = vor.u32 %v4834_v40, %v3490_v13  ;;  %v4922_v12 = vld [vmem:[%s7629_s2 + $0x30c] sm:$0xf0] }
  0xce   :  { %2287 = vmatpush.bf16.msra.mxu2 %v3827_v50  ;;  %2300 = vmatpush.bf16.msra.mxu3 %v3955_v52  ;;  %v5706_v43 = vpop.f32.mrf.mxu3  ;;  %v3619_v50 = vor.u32 %v4866_v18, %v3618_v41  ;;  %v3874_v52 = vld [vmem:[%s7629_s2 + $0x340] sm:$0xf]  ;;  %v360_v31 = vmul.f32 0.02, %v356_v55  ;;  %vm359_vm1 = vcmp.gt.f32.partialorder %v356_v55, 0.0  ;;  %v3843_v0 = vor.u32 %v4922_v12, %v3842_v11 }
  0xcf   :  { %v4210_v34 = vld [vmem:[%s7629_s2 + $0x5e0] sm:$0xf]  ;;  %v4974_v19 = vld [vmem:[%s7629_s2 + $0x4ac] sm:$0xf0] }
  0xd0   :  { %2262 = vmatpush.bf16.msra.mxu0 %v3555_v53  ;;  %v5704_v42 = vpop.f32.mrf.mxu2  ;;  %v344_v45 = vpop.f32.mrf.mxu0  ;;  %v4930_v53 = vld [vmem:[%s7629_s2 + $0x34c] sm:$0xf0]  ;;  %v361_v13 = vsel %vm359_vm1, %v356_v55, %v360_v31  ;;  %v4050_v40 = vld [vmem:[%s7629_s2 + $0x4a0] sm:$0xf] }
  0xd1   :  { %2275 = vmatpush.bf16.msra.mxu1 %v3683_v24  ;;  %v4830_v24 = vld [vmem:[%s7629_s2 + $0x2c] sm:$0xf0]  ;;  %v5796_v2 = vpack.c.bf16 %v361_v13, %v361_v13  ;;  %v386_v18 = vadd.f32 %v5624_v58, %v5704_v42  ;;  %v4178_v20 = vld [vmem:[%s7629_s2 + $0x5a0] sm:$0xf]  ;;  %v4051_v42 = vor.u32 %v4974_v19, %v4050_v40  ;;  %v4852_v13 = vld [vmem:[%s7629_s2 + $0xe4] sm:$0xf] }
  0xd2   :  { %2288 = vmatpush.bf16.msra.mxu2 %v3811_v60  ;;  %2301 = vmatpush.bf16.msra.mxu3 %v3939_v62  ;;  %v3747_v60 = vor.u32 %v4898_v51, %v3746_v48  ;;  %v3875_v62 = vor.u32 %v4930_v53, %v3874_v52  ;;  %v4034_v45 = vld [vmem:[%s7629_s2 + $0x480] sm:$0xf]  ;;  %v4970_v48 = vld [vmem:[%s7629_s2 + $0x48c] sm:$0xf0] }
  0xd3   :  { %v357_v47 = vpop.f32.mrf.mxu1  ;;  %v4035_v51 = vor.u32 %v4970_v48, %v4034_v45  ;;  %v4998_v54 = vld [vmem:[%s7629_s2 + $0x56c] sm:$0xf0]  ;;  %v4884_v45 = vld [vmem:[%s7629_s2 + $0x1e4] sm:$0xf] }
  0xd4   :  { %2263 = vmatpush.bf16.msra.mxu0 %v3539_v63  ;;  %v3475_v63 = vor.u32 %v4830_v24, %v3474_v44  ;;  %v5006_v44 = vld [vmem:[%s7629_s2 + $0x5ac] sm:$0xf0]  ;;  %v399_v47 = vadd.f32 %v5706_v43, %v386_v18  ;;  %v4018_v43 = vld [vmem:[%s7629_s2 + $0x460] sm:$0xf] }
  0xd5   :  { %2276 = vmatpush.bf16.msra.mxu1 %v3667_v21  ;;  %v3603_v21 = vor.u32 %v4862_v28, %v3602_v25  ;;  %v4966_v25 = vld [vmem:[%s7629_s2 + $0x46c] sm:$0xf0]  ;;  %v4146_v28 = vld [vmem:[%s7629_s2 + $0x560] sm:$0xf] }
  0xd6   :  { %2289 = vmatpush.bf16.msra.mxu2 %v3795_v35  ;;  %2302 = vmatpush.bf16.msra.mxu3 %v3923_v3  ;;  %v400_v33 = vpop.f32.mrf.mxu3  ;;  %v5014_v35 = vld [vmem:[%s7629_s2 + $0x5ec] sm:$0xf0]  ;;  %v3859_v3 = vor.u32 %v4926_v26, %v3858_v23  ;;  %v4130_v26 = vld [vmem:[%s7629_s2 + $0x540] sm:$0xf] }
  0xd7   :  { %v4211_v10 = vor.u32 %v5014_v35, %v4210_v34  ;;  %v3986_v33 = vld [vmem:[%s7629_s2 + $0x420] sm:$0xf]  ;;  %v4954_v12 = vld [vmem:[%s7629_s2 + $0x40c] sm:$0xf0] }
  0xd8   :  { %2264 = vmatpush.bf16.msra.mxu0 %v3523_v4  ;;  %v387_v32 = vpop.f32.mrf.mxu2  ;;  %v3459_v4 = vor.u32 %v4826_v57, %v3458_v56  ;;  %v4019_v57 = vor.u32 %v4966_v25, %v4018_v43  ;;  %v4098_v18 = vld [vmem:[%s7629_s2 + $0x500] sm:$0xf]  ;;  %v4986_v19 = vld [vmem:[%s7629_s2 + $0x50c] sm:$0xf0] }
  0xd9   :  { %2277 = vmatpush.bf16.msra.mxu1 %v3651_v5  ;;  %v3587_v5 = vor.u32 %v4858_v27, %v3586_v59  ;;  %v4002_v59 = vld [vmem:[%s7629_s2 + $0x440] sm:$0xf]  ;;  %v4994_v27 = vld [vmem:[%s7629_s2 + $0x54c] sm:$0xf0] }
  0xda   :  { %2290 = vmatpush.bf16.msra.mxu2 %v3779_v14  ;;  %2303 = vmatpush.bf16.msra.mxu3 %v3907_v16  ;;  %v4978_v14 = vld [vmem:[%s7629_s2 + $0x4cc] sm:$0xf0]  ;;  %v4003_v32 = vor.u32 %v4962_v61, %v4002_v59  ;;  %v4274_v59 = vld [vmem:[%s7629_s2 + $0x660] sm:$0xf] }
  0xdb   :  { %v5010_v16 = vld [vmem:[%s7629_s2 + $0x5cc] sm:$0xf0]  ;;  %v4067_v39 = vor.u32 %v4978_v14, %v4066_v37  ;;  %v3572_v14 = vld [vmem:[%s7629_s2 + $0xf0] sm:$0xf0]  ;;  %v4434_v61 = vld [vmem:[%s7629_s2 + $0x7a0] sm:$0xf] }
  0xdc   :  { %2265 = vmatpush.bf16.msra.mxu0 %v3507_v17  ;;  %v5794_v17 = vpack.c.bf16 %v305_v7, %v305_v7  ;;  %v4195_v41 = vor.u32 %v5010_v16, %v4194_v15  ;;  %v5042_v37 = vld [vmem:[%s7629_s2 + $0x6cc] sm:$0xf0] }
  0xdd   :  { %2278 = vmatpush.bf16.msra.mxu1 %v3635_v38  ;;  %v3715_v38 = vor.u32 %v4890_v9, %v3714_v6  ;;  %v4114_v6 = vld [vmem:[%s7629_s2 + $0x520] sm:$0xf]  ;;  %v4990_v7 = vld [vmem:[%s7629_s2 + $0x52c] sm:$0xf0] }
  0xde   :  { %2291 = vmatpush.bf16.msra.mxu2 %v3763_v46  ;;  %2304 = vmatpush.bf16.msra.mxu3 %v3891_v49  ;;  %v4179_v46 = vor.u32 %v5006_v44, %v4178_v20  ;;  %v4162_v49 = vld [vmem:[%s7629_s2 + $0x580] sm:$0xf]  ;;  %v4115_v16 = vor.u32 %v4990_v7, %v4114_v6  ;;  %v5078_v44 = vld [vmem:[%s7629_s2 + $0x7ec] sm:$0xf0]  ;;  %v3652_v6 = vld [vmem:[%s7629_s2 + $0x190] sm:$0xf0] }
  0xe0   :  { %2266 = vmatpush.bf16.msra.mxu0 %v3491_v1  ;;  %v5002_v1 = vld [vmem:[%s7629_s2 + $0x58c] sm:$0xf0] }
  0xe1   :  { %2279 = vmatpush.bf16.msra.mxu1 %v3619_v50  ;;  %v4163_v52 = vor.u32 %v5002_v1, %v4162_v49  ;;  %v3575_v49 = vor.u32 %v4852_v13, %v3572_v14  ;;  %v4099_v1 = vor.u32 %v4986_v19, %v4098_v18  ;;  %v4836_v13 = vld [vmem:[%s7629_s2 + $0x64] sm:$0xf]  ;;  %v3508_v14 = vld [vmem:[%s7629_s2 + $0x70] sm:$0xf0] }
  0xe2   :  { %2292 = vmatpush.bf16.msra.mxu2 %v3747_v60  ;;  %2305 = vmatpush.bf16.msra.mxu3 %v3875_v62  ;;  %v4147_v62 = vor.u32 %v4998_v54, %v4146_v28  ;;  %v5074_v28 = vld [vmem:[%s7629_s2 + $0x7cc] sm:$0xf0]  ;;  %v4880_v54 = vld [vmem:[%s7629_s2 + $0x1c4] sm:$0xf]  ;;  %v3636_v18 = vld [vmem:[%s7629_s2 + $0x170] sm:$0xf0] }
  0xe4   :  { %2267 = vmatpush.bf16.msra.mxu0 %v3475_v63  ;;  %v4338_v63 = vld [vmem:[%s7629_s2 + $0x6e0] sm:$0xf] }
  0xe5   :  { %2280 = vmatpush.bf16.msra.mxu1 %v3603_v21  ;;  %v5046_v21 = vld [vmem:[%s7629_s2 + $0x6ec] sm:$0xf0] }
  0xe6   :  { %2293 = vmatpush.bf16.msra.mxu2 %v3731_v36  ;;  %2306 = vmatpush.bf16.msra.mxu3 %v3859_v3  ;;  %v4339_v29 = vor.u32 %v5046_v21, %v4338_v63  ;;  %v4958_v36 = vld [vmem:[%s7629_s2 + $0x42c] sm:$0xf0]  ;;  %v3540_v63 = vld [vmem:[%s7629_s2 + $0xb0] sm:$0xf0] }
  0xe7   :  { %v3987_v11 = vor.u32 %v4958_v36, %v3986_v33  ;;  %v5026_v33 = vld [vmem:[%s7629_s2 + $0x64c] sm:$0xf0]  ;;  %v3524_v36 = vld [vmem:[%s7629_s2 + $0x90] sm:$0xf0] }
  0xe8   :  { %2268 = vmatpush.bf16.msra.mxu0 %v3459_v4  ;;  %v411_v50 = vpop.f32.mrf.mxu0  ;;  %v4131_v4 = vor.u32 %v4994_v27, %v4130_v26  ;;  %v5070_v26 = vld [vmem:[%s7629_s2 + $0x7ac] sm:$0xf0]  ;;  %v4876_v27 = vld [vmem:[%s7629_s2 + $0x1a4] sm:$0xf] }
  0xe9   :  { %2281 = vmatpush.bf16.msra.mxu1 %v3587_v5  ;;  %v412_v53 = vadd.f32 %v411_v50, %v399_v47  ;;  %v4322_v5 = vld [vmem:[%s7629_s2 + $0x6c0] sm:$0xf] }
  0xea   :  { %2294 = vmatpush.bf16.msra.mxu2 %v3715_v38  ;;  %2307 = vmatpush.bf16.msra.mxu3 %v3843_v0  ;;  %v4306_v38 = vld [vmem:[%s7629_s2 + $0x6a0] sm:$0xf]  ;;  %v5038_v0 = vld [vmem:[%s7629_s2 + $0x6ac] sm:$0xf0] }
  0xeb   :  { %2269 = vmatmul.bf16.vlgmr.msra.gmra.mxu0 %v5794_v17  ;;  %v441_v24 = vpop.f32.mrf.mxu1  ;;  %vm415_vm2 = vcmp.gt.f32.partialorder %v412_v53, 0.0  ;;  %v416_v55 = vmul.f32 0.02, %v412_v53  ;;  %v4307_v20 = vor.u32 %v5038_v0, %v4306_v38  ;;  %v4290_v50 = vld [vmem:[%s7629_s2 + $0x680] sm:$0xf] }
  0xec   :  { %2313 = vmatpush.bf16.msrb.mxu0 %v4083_v8  ;;  %2282 = vmatmul.bf16.vlgmr.msra.gmra.mxu1 %v5796_v2  ;;  %v442_v56 = vadd.f32 %v5624_v58, %v441_v24  ;;  %v4323_v8 = vor.u32 %v5042_v37, %v4322_v5  ;;  %v3556_v24 = vld [vmem:[%s7629_s2 + $0xd0] sm:$0xf0]  ;;  %v5066_v5 = vld [vmem:[%s7629_s2 + $0x78c] sm:$0xf0]  ;;  %v4872_v37 = vld [vmem:[%s7629_s2 + $0x184] sm:$0xf] }
  0xed   :  { %2326 = vmatpush.bf16.msrb.mxu1 %v4211_v10  ;;  %v417_v60 = vsel %vm415_vm2, %v412_v53, %v416_v55  ;;  %v3970_v10 = vld [vmem:[%s7629_s2 + $0x400] sm:$0xf]  ;;  %v4848_v53 = vld [vmem:[%s7629_s2 + $0xc4] sm:$0xf]  ;;  %v3684_v55 = vld [vmem:[%s7629_s2 + $0x1d0] sm:$0xf0] }
  0xee   :  { %v5852_v22 = vpack.c.bf16 %v417_v60, %v417_v60  ;;  %v467_v31 = vpop.f32.mrf.mxu3  ;;  %2339 = vmatpush.bf16.msrb.mxu2 %v4339_v29  ;;  %v3971_v48 = vor.u32 %v4954_v12, %v3970_v10  ;;  %v5030_v60 = vld [vmem:[%s7629_s2 + $0x66c] sm:$0xf0]  ;;  %v3687_v21 = vor.u32 %v4880_v54, %v3684_v55  ;;  %v3668_v29 = vld [vmem:[%s7629_s2 + $0x1b0] sm:$0xf0]  ;;  %v4828_v54 = vld [vmem:[%s7629_s2 + $0x24] sm:$0xf] }
  0xef   :  { %v5022_v10 = vld [vmem:[%s7629_s2 + $0x62c] sm:$0xf0] }
  0xf0   :  { %2314 = vmatpush.bf16.msrb.mxu0 %v4067_v39  ;;  %v454_v23 = vpop.f32.mrf.mxu2  ;;  %2295 = vmatmul.bf16.vlgmr.msra.gmra.mxu2 %v5852_v22  ;;  %v413_v34 = vpop.f32.mrf.mxu0  ;;  %v4466_v39 = vld [vmem:[%s7629_s2 + $0x7e0] sm:$0xf]  ;;  %v5062_v38 = vld [vmem:[%s7629_s2 + $0x76c] sm:$0xf0] }
  0xf1   :  { %2327 = vmatpush.bf16.msrb.mxu1 %v4195_v41  ;;  %v455_v30 = vadd.f32 %v454_v23, %v442_v56  ;;  %v4467_v47 = vor.u32 %v5078_v44, %v4466_v39  ;;  %v4275_v23 = vor.u32 %v5030_v60, %v4274_v59  ;;  %v4418_v34 = vld [vmem:[%s7629_s2 + $0x780] sm:$0xf]  ;;  %v3492_v44 = vld [vmem:[%s7629_s2 + $0x50] sm:$0xf0] }
  0xf2   :  { %2340 = vmatpush.bf16.msrb.mxu2 %v4323_v8  ;;  %v4419_v7 = vor.u32 %v5066_v5, %v4418_v34  ;;  %v4370_v60 = vld [vmem:[%s7629_s2 + $0x720] sm:$0xf]  ;;  %v3460_v34 = vld [vmem:[%s7629_s2 + $0x10] sm:$0xf0] }
  0xf3   :  { %v468_v35 = vadd.f32 %v467_v31, %v455_v30  ;;  %v443_v3 = vpop.f32.mrf.mxu1  ;;  %2352 = vmatpush.bf16.msrb.mxu3 %v4467_v47  ;;  %v4435_v30 = vor.u32 %v5070_v26, %v4434_v61  ;;  %v5018_v47 = vld [vmem:[%s7629_s2 + $0x60c] sm:$0xf0]  ;;  %v3812_v26 = vld [vmem:[%s7629_s2 + $0x2d0] sm:$0xf0]  ;;  %v4354_v5 = vld [vmem:[%s7629_s2 + $0x700] sm:$0xf] }
  0xf4   :  { %2315 = vmatpush.bf16.msrb.mxu0 %v4051_v42  ;;  %v3671_v3 = vor.u32 %v4876_v27, %v3668_v29  ;;  %v5054_v61 = vld [vmem:[%s7629_s2 + $0x72c] sm:$0xf0] }
  0xf5   :  { %2328 = vmatpush.bf16.msrb.mxu1 %v4179_v46  ;;  %vm471_vm3 = vcmp.gt.f32.partialorder %v468_v35, 0.0  ;;  %v472_v9 = vmul.f32 0.02, %v468_v35  ;;  %v3700_v46 = vld [vmem:[%s7629_s2 + $0x1f0] sm:$0xf0] }
  0xf6   :  { %v469_v42 = vpop.f32.mrf.mxu3  ;;  %2341 = vmatpush.bf16.msrb.mxu2 %v4307_v20  ;;  %v3703_v43 = vor.u32 %v4884_v45, %v3700_v46  ;;  %v4832_v20 = vld [vmem:[%s7629_s2 + $0x44] sm:$0xf]  ;;  %v3511_v45 = vor.u32 %v4836_v13, %v3508_v14  ;;  %v4226_v46 = vld [vmem:[%s7629_s2 + $0x600] sm:$0xf] }
  0xf7   :  { %v473_v15 = vsel %vm471_vm3, %v468_v35, %v472_v9  ;;  %v4840_v35 = vld [vmem:[%s7629_s2 + $0x84] sm:$0xf]  ;;  %v4242_v9 = vld [vmem:[%s7629_s2 + $0x620] sm:$0xf] }
  0xf8   :  { %2316 = vmatpush.bf16.msrb.mxu0 %v4035_v51  ;;  %v5900_v40 = vpack.c.bf16 %v473_v15, %v473_v15  ;;  %v456_v41 = vpop.f32.mrf.mxu2  ;;  %v5034_v51 = vld [vmem:[%s7629_s2 + $0x68c] sm:$0xf0]  ;;  %v3527_v8 = vor.u32 %v4840_v35, %v3524_v36  ;;  %v3655_v15 = vor.u32 %v4872_v37, %v3652_v6 }
  0xf9   :  { %2329 = vmatpush.bf16.msrb.mxu1 %v4163_v52  ;;  %v4450_v52 = vld [vmem:[%s7629_s2 + $0x7c0] sm:$0xf]  ;;  %v4291_v25 = vor.u32 %v5034_v51, %v4290_v50  ;;  %v4868_v41 = vld [vmem:[%s7629_s2 + $0x164] sm:$0xf]  ;;  %v5058_v50 = vld [vmem:[%s7629_s2 + $0x74c] sm:$0xf0] }
  0xfa   :  { %2308 = vmatmul.bf16.vlgmr.msra.gmra.mxu3 %v5900_v40  ;;  %v4451_v56 = vor.u32 %v5074_v28, %v4450_v52  ;;  %v4916_v51 = vld [vmem:[%s7629_s2 + $0x2e4] sm:$0xf]  ;;  %v3828_v52 = vld [vmem:[%s7629_s2 + $0x2f0] sm:$0xf0]  ;;  %v5050_v37 = vld [vmem:[%s7629_s2 + $0x70c] sm:$0xf0] }
  0xfb   :  { %2342 = vmatpush.bf16.msrb.mxu2 %v4291_v25  ;;  %v3831_v25 = vor.u32 %v4916_v51, %v3828_v52  ;;  %v4355_v13 = vor.u32 %v5050_v37, %v4354_v5  ;;  %v4940_v51 = vld [vmem:[%s7629_s2 + $0x3a4] sm:$0xf]  ;;  %v3716_v5 = vld [vmem:[%s7629_s2 + $0x210] sm:$0xf0] }
  0xfc   :  { %2317 = vmatpush.bf16.msrb.mxu0 %v4019_v57  ;;  %v3559_v57 = vor.u32 %v4848_v53, %v3556_v24  ;;  %2353 = vmatpush.bf16.msrb.mxu3 %v4451_v56  ;;  %v4864_v53 = vld [vmem:[%s7629_s2 + $0x144] sm:$0xf]  ;;  %v3620_v24 = vld [vmem:[%s7629_s2 + $0x150] sm:$0xf0]  ;;  %v3495_v56 = vor.u32 %v4832_v20, %v3492_v44 }
  0xfd   :  { %2330 = vmatpush.bf16.msrb.mxu1 %v4147_v62  ;;  %v4844_v62 = vld [vmem:[%s7629_s2 + $0xa4] sm:$0xf]  ;;  %v3780_v20 = vld [vmem:[%s7629_s2 + $0x290] sm:$0xf0] }
  0xfe   :  { %v3543_v31 = vor.u32 %v4844_v62, %v3540_v63  ;;  %v3623_v63 = vor.u32 %v4864_v53, %v3620_v24  ;;  %v4944_v44 = vld [vmem:[%s7629_s2 + $0x3c4] sm:$0xf]  ;;  %v4052_v53 = vld [vmem:[%s7629_s2 + $0x4b0] sm:$0xf0] }
  0xff   :  { %2343 = vmatpush.bf16.msrb.mxu2 %v4275_v23  ;;  %v4912_v23 = vld [vmem:[%s7629_s2 + $0x2c4] sm:$0xf] }
 0x100   :  { %2318 = vmatpush.bf16.msrb.mxu0 %v4003_v32  ;;  %v4258_v32 = vld [vmem:[%s7629_s2 + $0x640] sm:$0xf]  ;;  %2354 = vmatpush.bf16.msrb.mxu3 %v4435_v30  ;;  %v3604_v30 = vld [vmem:[%s7629_s2 + $0x130] sm:$0xf0]  ;;  %v4972_v52 = vld [vmem:[%s7629_s2 + $0x4a4] sm:$0xf] }
 0x101   :  { %2331 = vmatpush.bf16.msrb.mxu1 %v4131_v4  ;;  %v4259_v4 = vor.u32 %v5026_v33, %v4258_v32  ;;  %v3815_v32 = vor.u32 %v4912_v23, %v3812_v26  ;;  %v4824_v33 = vld [vmem:[%s7629_s2 + $0x4] sm:$0xf] }
 0x102   :  { %v4892_v26 = vld [vmem:[%s7629_s2 + $0x224] sm:$0xf] }
 0x103   :  { %2344 = vmatpush.bf16.msrb.mxu2 %v4259_v4  ;;  %v4084_v4 = vld [vmem:[%s7629_s2 + $0x4f0] sm:$0xf0]  ;;  %v4928_v37 = vld [vmem:[%s7629_s2 + $0x344] sm:$0xf] }
 0x104   :  { %2319 = vmatpush.bf16.msrb.mxu0 %v3987_v11  ;;  %v4402_v11 = vld [vmem:[%s7629_s2 + $0x760] sm:$0xf]  ;;  %2355 = vmatpush.bf16.msrb.mxu3 %v4419_v7 }
 0x105   :  { %2332 = vmatpush.bf16.msrb.mxu1 %v4115_v16  ;;  %v4243_v16 = vor.u32 %v5022_v10, %v4242_v9  ;;  %v4403_v19 = vor.u32 %v5062_v38, %v4402_v11  ;;  %v3796_v9 = vld [vmem:[%s7629_s2 + $0x2b0] sm:$0xf0]  ;;  %v4948_v10 = vld [vmem:[%s7629_s2 + $0x3e4] sm:$0xf] }
 0x106   :  { %v4856_v11 = vld [vmem:[%s7629_s2 + $0x104] sm:$0xf] }
 0x107   :  { %2345 = vmatpush.bf16.msrb.mxu2 %v4243_v16 }
 0x108   :  { %2320 = vmatpush.bf16.msrb.mxu0 %v3971_v48  ;;  %v497_v12 = vpop.f32.mrf.mxu0  ;;  %v4386_v48 = vld [vmem:[%s7629_s2 + $0x740] sm:$0xf]  ;;  %2356 = vmatpush.bf16.msrb.mxu3 %v4403_v19  ;;  %v4904_v19 = vld [vmem:[%s7629_s2 + $0x284] sm:$0xf] }
 0x109   :  { %2333 = vmatpush.bf16.msrb.mxu1 %v4099_v1  ;;  %v498_v0 = vadd.f32 %v5624_v58, %v497_v12  ;;  %v4227_v1 = vor.u32 %v5018_v47, %v4226_v46  ;;  %v3588_v12 = vld [vmem:[%s7629_s2 + $0x110] sm:$0xf0]  ;;  %v3783_v46 = vor.u32 %v4904_v19, %v3780_v20  ;;  %v4956_v19 = vld [vmem:[%s7629_s2 + $0x424] sm:$0xf] }
 0x10a   :  { %v3940_v47 = vld [vmem:[%s7629_s2 + $0x3d0] sm:$0xf0] }
 0x10b   :  { %v510_v39 = vpop.f32.mrf.mxu1  ;;  %2346 = vmatpush.bf16.msrb.mxu2 %v4227_v1  ;;  %v4900_v1 = vld [vmem:[%s7629_s2 + $0x264] sm:$0xf]  ;;  %v3988_v20 = vld [vmem:[%s7629_s2 + $0x430] sm:$0xf0] }
 0x10c   :  { %2365 = vmatpush.bf16.msra.mxu0 %v3575_v49  ;;  %v511_v42 = vadd.f32 %v510_v39, %v498_v0  ;;  %v3639_v49 = vor.u32 %v4868_v41, %v3636_v18  ;;  %v3463_v0 = vor.u32 %v4824_v33, %v3460_v34  ;;  %v3591_v18 = vor.u32 %v4856_v11, %v3588_v12  ;;  %v3876_v11 = vld [vmem:[%s7629_s2 + $0x350] sm:$0xf0]  ;;  %v5012_v12 = vld [vmem:[%s7629_s2 + $0x5e4] sm:$0xf] }
 0x10d   :  { %2378 = vmatpush.bf16.msra.mxu1 %v3703_v43  ;;  %v4387_v43 = vor.u32 %v5058_v50, %v4386_v48  ;;  %v3943_v48 = vor.u32 %v4944_v44, %v3940_v47  ;;  %v3764_v50 = vld [vmem:[%s7629_s2 + $0x270] sm:$0xf0] }
 0x10e   :  { %v6051_v59 = vpop.f32.mrf.mxu3  ;;  %v3767_v24 = vor.u32 %v4900_v1, %v3764_v50  ;;  %v3860_v44 = vld [vmem:[%s7629_s2 + $0x330] sm:$0xf0]  ;;  %v3991_v1 = vor.u32 %v4956_v19, %v3988_v20  ;;  %v4920_v50 = vld [vmem:[%s7629_s2 + $0x304] sm:$0xf]  ;;  %v4835_v20 = vld [vmem:[%s7629_s2 + $0x54] sm:$0xf0] }
 0x10f   :  { %2357 = vmatpush.bf16.msrb.mxu3 %v4387_v43  ;;  %2391 = vmatpush.bf16.msra.mxu2 %v3831_v25  ;;  %v3924_v43 = vld [vmem:[%s7629_s2 + $0x3b0] sm:$0xf0] }
 0x110   :  { %2366 = vmatpush.bf16.msra.mxu0 %v3559_v57  ;;  %v523_v28 = vpop.f32.mrf.mxu2  ;;  %v3476_v57 = vld [vmem:[%s7629_s2 + $0x30] sm:$0xf0]  ;;  %v499_v62 = vpop.f32.mrf.mxu0  ;;  %v3927_v25 = vor.u32 %v4940_v51, %v3924_v43  ;;  %v5004_v43 = vld [vmem:[%s7629_s2 + $0x5a4] sm:$0xf] }
 0x111   :  { %2379 = vmatpush.bf16.msra.mxu1 %v3687_v21  ;;  %v524_v55 = vadd.f32 %v523_v28, %v511_v42  ;;  %v4860_v21 = vld [vmem:[%s7629_s2 + $0x124] sm:$0xf]  ;;  %v3479_v36 = vor.u32 %v4828_v54, %v3476_v57  ;;  %v4055_v28 = vor.u32 %v4972_v52, %v4052_v53  ;;  %v3908_v62 = vld [vmem:[%s7629_s2 + $0x390] sm:$0xf0] }
 0x112   :  { %v3607_v7 = vor.u32 %v4860_v21, %v3604_v30  ;;  %v4976_v42 = vld [vmem:[%s7629_s2 + $0x4c4] sm:$0xf]  ;;  %v554_v21 = vadd.f32 %v5624_v58, %v6051_v59  ;;  %v4020_v59 = vld [vmem:[%s7629_s2 + $0x470] sm:$0xf0] }
 0x113   :  { %vm527_vm4 = vcmp.gt.f32.partialorder %v524_v55, 0.0  ;;  %v528_v27 = vmul.f32 0.02, %v524_v55  ;;  %v512_v29 = vpop.f32.mrf.mxu1  ;;  %2392 = vmatpush.bf16.msra.mxu2 %v3815_v32  ;;  %v4896_v54 = vld [vmem:[%s7629_s2 + $0x244] sm:$0xf] }
 0x114   :  { %2367 = vmatpush.bf16.msra.mxu0 %v3543_v31  ;;  %v4371_v31 = vor.u32 %v5054_v61, %v4370_v60  ;;  %v4968_v57 = vld [vmem:[%s7629_s2 + $0x484] sm:$0xf]  ;;  %v4036_v60 = vld [vmem:[%s7629_s2 + $0x490] sm:$0xf0] }
 0x115   :  { %2380 = vmatpush.bf16.msra.mxu1 %v3671_v3  ;;  %v529_v35 = vsel %vm527_vm4, %v524_v55, %v528_v27  ;;  %v4980_v3 = vld [vmem:[%s7629_s2 + $0x4e4] sm:$0xf]  ;;  %v3748_v55 = vld [vmem:[%s7629_s2 + $0x250] sm:$0xf0]  ;;  %v4039_v23 = vor.u32 %v4968_v57, %v4036_v60 }
 0x116   :  { %v6089_v6 = vpack.c.bf16 %v529_v35, %v529_v35  ;;  %2358 = vmatpush.bf16.msrb.mxu3 %v4371_v31  ;;  %v555_v39 = vpop.f32.mrf.mxu3  ;;  %v4087_v41 = vor.u32 %v4980_v3, %v4084_v4  ;;  %v3751_v61 = vor.u32 %v4896_v54, %v3748_v55  ;;  %v3732_v27 = vld [vmem:[%s7629_s2 + $0x230] sm:$0xf0]  ;;  %v4932_v29 = vld [vmem:[%s7629_s2 + $0x364] sm:$0xf]  ;;  %v4855_v54 = vld [vmem:[%s7629_s2 + $0xf4] sm:$0xf0] }
 0x117   :  { %v4964_v30 = vld [vmem:[%s7629_s2 + $0x464] sm:$0xf]  ;;  %v3735_v31 = vor.u32 %v4892_v26, %v3732_v27  ;;  %v3892_v32 = vld [vmem:[%s7629_s2 + $0x370] sm:$0xf0]  ;;  %v4851_v26 = vld [vmem:[%s7629_s2 + $0xd4] sm:$0xf0] }
 0x118   :  { %2368 = vmatpush.bf16.msra.mxu0 %v3527_v8  ;;  %v4908_v8 = vld [vmem:[%s7629_s2 + $0x2a4] sm:$0xf]  ;;  %v525_v16 = vpop.f32.mrf.mxu2  ;;  %v3895_v35 = vor.u32 %v4932_v29, %v3892_v32  ;;  %v4023_v3 = vor.u32 %v4964_v30, %v4020_v59  ;;  %v3844_v51 = vld [vmem:[%s7629_s2 + $0x310] sm:$0xf0]  ;;  %v4847_v32 = vld [vmem:[%s7629_s2 + $0xb4] sm:$0xf0] }
 0x119   :  { %2381 = vmatpush.bf16.msra.mxu1 %v3655_v15  ;;  %v3799_v14 = vor.u32 %v4908_v8, %v3796_v9  ;;  %v3956_v15 = vld [vmem:[%s7629_s2 + $0x3f0] sm:$0xf0]  ;;  %2321 = vmatmul.bf16.vlgmr.msrb.gmra.mxu0 %v6089_v6  ;;  %v4888_v4 = vld [vmem:[%s7629_s2 + $0x204] sm:$0xf]  ;;  %v3847_v55 = vor.u32 %v4920_v50, %v3844_v51 }
 0x11a   :  { %v3959_v38 = vor.u32 %v4948_v10, %v3956_v15  ;;  %2359 = vmatpush.bf16.msrb.mxu3 %v4355_v13  ;;  %v4960_v8 = vld [vmem:[%s7629_s2 + $0x444] sm:$0xf]  ;;  %v4004_v9 = vld [vmem:[%s7629_s2 + $0x450] sm:$0xf0]  ;;  %v3719_v10 = vor.u32 %v4888_v4, %v3716_v5  ;;  %v3530_v4 = vld [vmem:[%s7629_s2 + $0x88] sm:$0xf] }
 0x11b   :  { %2393 = vmatpush.bf16.msra.mxu2 %v3799_v14  ;;  %v4212_v13 = vld [vmem:[%s7629_s2 + $0x5f0] sm:$0xf0]  ;;  %v3879_v14 = vor.u32 %v4928_v37, %v3876_v11  ;;  %v4007_v16 = vor.u32 %v4960_v8, %v4004_v9  ;;  %v4952_v53 = vld [vmem:[%s7629_s2 + $0x404] sm:$0xf]  ;;  %v4843_v5 = vld [vmem:[%s7629_s2 + $0x94] sm:$0xf0] }
 0x11c   :  { %2369 = vmatpush.bf16.msra.mxu0 %v3511_v45  ;;  %v4068_v45 = vld [vmem:[%s7629_s2 + $0x4d0] sm:$0xf0]  ;;  %v4215_v39 = vor.u32 %v5012_v12, %v4212_v13  ;;  %v4996_v30 = vld [vmem:[%s7629_s2 + $0x564] sm:$0xf]  ;;  %v4839_v11 = vld [vmem:[%s7629_s2 + $0x74] sm:$0xf0] }
 0x11d   :  { %2382 = vmatpush.bf16.msra.mxu1 %v3639_v49  ;;  %v4071_v49 = vor.u32 %v4976_v42, %v4068_v45  ;;  %v5008_v45 = vld [vmem:[%s7629_s2 + $0x5c4] sm:$0xf]  ;;  %v4148_v59 = vld [vmem:[%s7629_s2 + $0x570] sm:$0xf0] }
 0x11e   :  { %2404 = vmatpush.bf16.msra.mxu3 %v3959_v38  ;;  %v4924_v38 = vld [vmem:[%s7629_s2 + $0x324] sm:$0xf]  ;;  %v4116_v9 = vld [vmem:[%s7629_s2 + $0x530] sm:$0xf0] }
 0x11f   :  { %2394 = vmatpush.bf16.msra.mxu2 %v3783_v46  ;;  %v4196_v46 = vld [vmem:[%s7629_s2 + $0x5d0] sm:$0xf0] }
 0x120   :  { %2370 = vmatpush.bf16.msra.mxu0 %v3495_v56  ;;  %v4936_v56 = vld [vmem:[%s7629_s2 + $0x384] sm:$0xf]  ;;  %v4199_v52 = vor.u32 %v5008_v45, %v4196_v46  ;;  %v3706_v46 = vld [vmem:[%s7629_s2 + $0x1e8] sm:$0xf] }
 0x121   :  { %2383 = vmatpush.bf16.msra.mxu1 %v3623_v63  ;;  %v3911_v63 = vor.u32 %v4936_v56, %v3908_v62 }
 0x122   :  { %2405 = vmatpush.bf16.msra.mxu3 %v3943_v48 }
 0x123   :  { %2395 = vmatpush.bf16.msra.mxu2 %v3767_v24  ;;  %v3972_v24 = vld [vmem:[%s7629_s2 + $0x410] sm:$0xf0] }
 0x124   :  { %2371 = vmatpush.bf16.msra.mxu0 %v3479_v36  ;;  %v3975_v56 = vor.u32 %v4952_v53, %v3972_v24  ;;  %v4324_v53 = vld [vmem:[%s7629_s2 + $0x6d0] sm:$0xf0] }
 0x125   :  { %2384 = vmatpush.bf16.msra.mxu1 %v3607_v7 }
 0x126   :  { %2406 = vmatpush.bf16.msra.mxu3 %v3927_v25  ;;  %v4180_v25 = vld [vmem:[%s7629_s2 + $0x5b0] sm:$0xf0] }
 0x127   :  { %2396 = vmatpush.bf16.msra.mxu2 %v3751_v61  ;;  %v4183_v57 = vor.u32 %v5004_v43, %v4180_v25 }
 0x128   :  { %2372 = vmatpush.bf16.msra.mxu0 %v3463_v0  ;;  %v566_v33 = vpop.f32.mrf.mxu0 }
 0x129   :  { %2385 = vmatpush.bf16.msra.mxu1 %v3591_v18  ;;  %v567_v36 = vadd.f32 %v566_v33, %v554_v21  ;;  %v4164_v21 = vld [vmem:[%s7629_s2 + $0x590] sm:$0xf0]  ;;  %v4151_v33 = vor.u32 %v4996_v30, %v4148_v59  ;;  %v3466_v30 = vld [vmem:[%s7629_s2 + $0x8] sm:$0xf]  ;;  %v4827_v59 = vld [vmem:[%s7629_s2 + $0x14] sm:$0xf0] }
 0x12a   :  { %2407 = vmatpush.bf16.msra.mxu3 %v3911_v63  ;;  %v5000_v63 = vld [vmem:[%s7629_s2 + $0x584] sm:$0xf] }
 0x12b   :  { %2373 = vmatmul.bf16.vlgmr.msra.gmra.mxu0 %v5794_v17  ;;  %v579_v34 = vpop.f32.mrf.mxu1  ;;  %2397 = vmatpush.bf16.msra.mxu2 %v3735_v31  ;;  %v4167_v27 = vor.u32 %v5000_v63, %v4164_v21  ;;  %v3546_v31 = vld [vmem:[%s7629_s2 + $0xa8] sm:$0xf]  ;;  %v5036_v63 = vld [vmem:[%s7629_s2 + $0x6a4] sm:$0xf]  ;;  %v4308_v21 = vld [vmem:[%s7629_s2 + $0x6b0] sm:$0xf0] }
 0x12c   :  { %2417 = vmatpush.bf16.msrb.mxu0 %v4087_v41  ;;  %v580_v7 = vadd.f32 %v579_v34, %v567_v36  ;;  %v3547_v34 = vor.u32 %v4847_v32, %v3546_v31  ;;  %v3674_v32 = vld [vmem:[%s7629_s2 + $0x1a8] sm:$0xf] }
 0x12e   :  { %2408 = vmatpush.bf16.msra.mxu3 %v3895_v35  ;;  %vm583_vm5 = vcmp.gt.f32.partialorder %v580_v7, 0.0  ;;  %v584_v15 = vmul.f32 0.02, %v580_v7  ;;  %v6212_v18 = vpop.f32.mrf.mxu3  ;;  %v4992_v35 = vld [vmem:[%s7629_s2 + $0x544] sm:$0xf] }
 0x12f   :  { %2398 = vmatpush.bf16.msra.mxu2 %v3719_v10  ;;  %v3514_v10 = vld [vmem:[%s7629_s2 + $0x68] sm:$0xf] }
 0x130   :  { %2418 = vmatpush.bf16.msrb.mxu0 %v4071_v49  ;;  %v585_v0 = vsel %vm583_vm5, %v580_v7, %v584_v15  ;;  %v609_v41 = vpop.f32.mrf.mxu2  ;;  %v568_v48 = vpop.f32.mrf.mxu0  ;;  %v3863_v49 = vor.u32 %v4924_v38, %v3860_v44  ;;  %v3531_v7 = vor.u32 %v4843_v5, %v3530_v4  ;;  %v5044_v15 = vld [vmem:[%s7629_s2 + $0x6e4] sm:$0xf]  ;;  %v5166_v44 = vld [vmem:[%s7632_s5] ss:$0 sm:$0xff] }
 0x131   :  { %v6223_v42 = vpack.c.bf16 %v585_v0, %v585_v0  ;;  %v610_v36 = vadd.f32 %v5624_v58, %v609_v41  ;;  %v4988_v58 = vld [vmem:[%s7629_s2 + $0x524] sm:$0xf]  ;;  %v3515_v0 = vor.u32 %v4839_v11, %v3514_v10  ;;  %v4100_v41 = vld [vmem:[%s7629_s2 + $0x510] sm:$0xf0] }
 0x132   :  { %2409 = vmatpush.bf16.msra.mxu3 %v3879_v14  ;;  %v4119_v38 = vor.u32 %v4988_v58, %v4116_v9  ;;  %v4292_v58 = vld [vmem:[%s7629_s2 + $0x690] sm:$0xf0] }
 0x133   :  { %v581_v47 = vpop.f32.mrf.mxu1  ;;  %2334 = vmatmul.bf16.vlgmr.msrb.gmra.mxu1 %v6223_v42  ;;  %v623_v8 = vadd.f32 %v6212_v18, %v610_v36  ;;  %v3498_v18 = vld [vmem:[%s7629_s2 + $0x48] sm:$0xf]  ;;  %v4983_v36 = vld [vmem:[%s7629_s2 + $0x4f4] sm:$0xf0] }
 0x134   :  { %2419 = vmatpush.bf16.msrb.mxu0 %v4055_v28  ;;  %2430 = vmatpush.bf16.msrb.mxu1 %v4215_v39  ;;  %v3578_v28 = vld [vmem:[%s7629_s2 + $0xe8] sm:$0xf]  ;;  %v4984_v39 = vld [vmem:[%s7629_s2 + $0x504] sm:$0xf]  ;;  %v4887_v47 = vld [vmem:[%s7629_s2 + $0x1f4] sm:$0xf0]  ;;  %v3499_v51 = vor.u32 %v4835_v20, %v3498_v18 }
 0x135   :  { %v3579_v60 = vor.u32 %v4855_v54, %v3578_v28  ;;  %v4103_v50 = vor.u32 %v4984_v39, %v4100_v41  ;;  %v3707_v25 = vor.u32 %v4887_v47, %v3706_v46  ;;  %v3482_v28 = vld [vmem:[%s7629_s2 + $0x28] sm:$0xf]  ;;  %v4831_v54 = vld [vmem:[%s7629_s2 + $0x34] sm:$0xf0]  ;;  %v5028_v18 = vld [vmem:[%s7629_s2 + $0x664] sm:$0xf] }
 0x136   :  { %2410 = vmatpush.bf16.msra.mxu3 %v3863_v49  ;;  %v624_v62 = vpop.f32.mrf.mxu3  ;;  %v4436_v46 = vld [vmem:[%s7629_s2 + $0x7b0] sm:$0xf0]  ;;  %v3642_v47 = vld [vmem:[%s7629_s2 + $0x168] sm:$0xf] }
 0x138   :  { %2420 = vmatpush.bf16.msrb.mxu0 %v4039_v23  ;;  %2431 = vmatpush.bf16.msrb.mxu1 %v4199_v52  ;;  %v611_v61 = vpop.f32.mrf.mxu2  ;;  %v3562_v23 = vld [vmem:[%s7629_s2 + $0xc8] sm:$0xf]  ;;  %v5040_v52 = vld [vmem:[%s7629_s2 + $0x6c4] sm:$0xf] }
 0x139   :  { %v3563_v29 = vor.u32 %v4851_v26, %v3562_v23  ;;  %v4883_v61 = vld [vmem:[%s7629_s2 + $0x1d4] sm:$0xf0]  ;;  %v4327_v62 = vor.u32 %v5040_v52, %v4324_v53  ;;  %v5076_v23 = vld [vmem:[%s7629_s2 + $0x7e4] sm:$0xf] }
 0x13a   :  { %2411 = vmatpush.bf16.msra.mxu3 %v3847_v55  ;;  %v5024_v53 = vld [vmem:[%s7629_s2 + $0x644] sm:$0xf] }
 0x13c   :  { %2421 = vmatpush.bf16.msrb.mxu0 %v4023_v3  ;;  %2432 = vmatpush.bf16.msrb.mxu1 %v4183_v57  ;;  %v4132_v3 = vld [vmem:[%s7629_s2 + $0x550] sm:$0xf0] }
 0x13d   :  { %v4135_v37 = vor.u32 %v4992_v35, %v4132_v3  ;;  %v4311_v3 = vor.u32 %v5036_v63, %v4308_v21 }
 0x140   :  { %2422 = vmatpush.bf16.msrb.mxu0 %v4007_v16  ;;  %2433 = vmatpush.bf16.msrb.mxu1 %v4167_v27  ;;  %v4340_v16 = vld [vmem:[%s7629_s2 + $0x6f0] sm:$0xf0]  ;;  %v3483_v27 = vor.u32 %v4831_v54, %v3482_v28 }
 0x141   :  { %v4343_v49 = vor.u32 %v5044_v15, %v4340_v16  ;;  %v3658_v15 = vld [vmem:[%s7629_s2 + $0x188] sm:$0xf]  ;;  %v4875_v16 = vld [vmem:[%s7629_s2 + $0x194] sm:$0xf0]  ;;  %v4420_v54 = vld [vmem:[%s7629_s2 + $0x790] sm:$0xf0] }
 0x142   :  { %v3659_v20 = vor.u32 %v4875_v16, %v3658_v15  ;;  %v4859_v15 = vld [vmem:[%s7629_s2 + $0x114] sm:$0xf0]  ;;  %v4010_v16 = vld [vmem:[%s7629_s2 + $0x448] sm:$0xf] }
 0x143   :  { %2386 = vmatmul.bf16.vlgmr.msra.gmra.mxu1 %v5796_v2 }
 0x144   :  { %2423 = vmatpush.bf16.msrb.mxu0 %v3991_v1  ;;  %2434 = vmatpush.bf16.msrb.mxu1 %v4151_v33  ;;  %v4879_v33 = vld [vmem:[%s7629_s2 + $0x1b4] sm:$0xf0] }
 0x145   :  { %v3675_v11 = vor.u32 %v4879_v33, %v3674_v32  ;;  %v4863_v32 = vld [vmem:[%s7629_s2 + $0x134] sm:$0xf0]  ;;  %v4026_v33 = vld [vmem:[%s7629_s2 + $0x468] sm:$0xf] }
 0x148   :  { %2424 = vmatpush.bf16.msrb.mxu0 %v3975_v56  ;;  %v635_v12 = vpop.f32.mrf.mxu0  ;;  %2435 = vmatpush.bf16.msrb.mxu1 %v4135_v37  ;;  %v3467_v37 = vor.u32 %v4827_v59, %v3466_v30  ;;  %v5060_v30 = vld [vmem:[%s7629_s2 + $0x764] sm:$0xf]  ;;  %v4404_v59 = vld [vmem:[%s7629_s2 + $0x770] sm:$0xf0] }
 0x149   :  { %v665_v13 = vpop.f32.mrf.mxu1  ;;  %v636_v14 = vadd.f32 %v635_v12, %v623_v8 }
 0x14a   :  { %v666_v45 = vadd.f32 %v5166_v44, %v665_v13  ;;  %v5072_v13 = vld [vmem:[%s7629_s2 + $0x7c4] sm:$0xf] }
 0x14b   :  { %2425 = vmatmul.bf16.vlgmr.msrb.gmra.mxu0 %v6089_v6  ;;  %vm639_vm6 = vcmp.gt.f32.partialorder %v636_v14, 0.0  ;;  %v640_v19 = vmul.f32 0.02, %v636_v14 }
 0x14c   :  { %2469 = vmatpush.bf16.msra.mxu0 %v3579_v60  ;;  %2436 = vmatpush.bf16.msrb.mxu1 %v4119_v38  ;;  %v3690_v60 = vld [vmem:[%s7629_s2 + $0x1c8] sm:$0xf] }
 0x14d   :  { %v641_v48 = vsel %vm639_vm6, %v636_v14, %v640_v19  ;;  %v3691_v31 = vor.u32 %v4883_v61, %v3690_v60  ;;  %v4452_v14 = vld [vmem:[%s7629_s2 + $0x7d0] sm:$0xf0]  ;;  %v4074_v38 = vld [vmem:[%s7629_s2 + $0x4c8] sm:$0xf]  ;;  %v4971_v61 = vld [vmem:[%s7629_s2 + $0x494] sm:$0xf0] }
 0x14e   :  { %v6335_v1 = vpack.c.bf16 %v641_v48, %v641_v48  ;;  %v691_v43 = vpop.f32.mrf.mxu3  ;;  %v4455_v41 = vor.u32 %v5072_v13, %v4452_v14  ;;  %v4276_v19 = vld [vmem:[%s7629_s2 + $0x670] sm:$0xf0]  ;;  %v4871_v48 = vld [vmem:[%s7629_s2 + $0x174] sm:$0xf0]  ;;  %v4042_v60 = vld [vmem:[%s7629_s2 + $0x488] sm:$0xf] }
 0x14f   :  { %v4919_v13 = vld [vmem:[%s7629_s2 + $0x2f4] sm:$0xf0]  ;;  %v3594_v14 = vld [vmem:[%s7629_s2 + $0x108] sm:$0xf] }
 0x150   :  { %2470 = vmatpush.bf16.msra.mxu0 %v3563_v29  ;;  %v678_v24 = vpop.f32.mrf.mxu2  ;;  %v637_v56 = vpop.f32.mrf.mxu0  ;;  %2347 = vmatmul.bf16.vlgmr.msrb.gmra.mxu2 %v6335_v1  ;;  %v4468_v29 = vld [vmem:[%s7629_s2 + $0x7f0] sm:$0xf0] }
 0x151   :  { %v679_v55 = vadd.f32 %v678_v24, %v666_v45  ;;  %v667_v57 = vpop.f32.mrf.mxu1  ;;  %2443 = vmatpush.bf16.msrb.mxu2 %v4343_v49  ;;  %2437 = vmatpush.bf16.msrb.mxu1 %v4103_v50  ;;  %v4471_v5 = vor.u32 %v5076_v23, %v4468_v29  ;;  %v5068_v45 = vld [vmem:[%s7629_s2 + $0x7a4] sm:$0xf]  ;;  %v4058_v49 = vld [vmem:[%s7629_s2 + $0x4a8] sm:$0xf]  ;;  %v4975_v50 = vld [vmem:[%s7629_s2 + $0x4b4] sm:$0xf0]  ;;  %v4043_v29 = vor.u32 %v4971_v61, %v4042_v60 }
 0x152   :  { %v4439_v52 = vor.u32 %v5068_v45, %v4436_v46  ;;  %v4260_v24 = vld [vmem:[%s7629_s2 + $0x650] sm:$0xf0]  ;;  %v4059_v28 = vor.u32 %v4975_v50, %v4058_v49  ;;  %v3626_v56 = vld [vmem:[%s7629_s2 + $0x148] sm:$0xf]  ;;  %v4867_v57 = vld [vmem:[%s7629_s2 + $0x154] sm:$0xf0] }
 0x153   :  { %v692_v26 = vadd.f32 %v691_v43, %v679_v55  ;;  %v5064_v43 = vld [vmem:[%s7629_s2 + $0x784] sm:$0xf]  ;;  %v4915_v50 = vld [vmem:[%s7629_s2 + $0x2d4] sm:$0xf0]  ;;  %v3802_v60 = vld [vmem:[%s7629_s2 + $0x2a8] sm:$0xf] }
 0x154   :  { %2471 = vmatpush.bf16.msra.mxu0 %v3547_v34  ;;  %v4090_v34 = vld [vmem:[%s7629_s2 + $0x4e8] sm:$0xf]  ;;  %2438 = vmatmul.bf16.vlgmr.msrb.gmra.mxu1 %v6223_v42  ;;  %v971_v55 = vld [vmem:[%s7632_s5 + $0x1] sm:$0xf]  ;;  %v4423_v63 = vor.u32 %v5064_v43, %v4420_v54  ;;  %v4911_v61 = vld [vmem:[%s7629_s2 + $0x2b4] sm:$0xf0] }
 0x155   :  { %2482 = vmatpush.bf16.msra.mxu1 %v3707_v25  ;;  %vm695_vm7 = vcmp.gt.f32.partialorder %v692_v26, 0.0  ;;  %v696_v35 = vmul.f32 0.02, %v692_v26  ;;  %2444 = vmatpush.bf16.msrb.mxu2 %v4327_v62  ;;  %v4091_v12 = vor.u32 %v4983_v36, %v4090_v34  ;;  %v3643_v25 = vor.u32 %v4871_v48, %v3642_v47  ;;  %v5020_v23 = vld [vmem:[%s7629_s2 + $0x624] sm:$0xf] }
 0x156   :  { %v693_v10 = vpop.f32.mrf.mxu3  ;;  %v4263_v62 = vor.u32 %v5024_v53, %v4260_v24  ;;  %v973_v21 = vperm.slane %v971_v55, 0  ;;  %v4967_v34 = vld [vmem:[%s7629_s2 + $0x474] sm:$0xf0]  ;;  %v5016_v36 = vld [vmem:[%s7629_s2 + $0x604] sm:$0xf] }
 0x157   :  { %v697_v4 = vsel %vm695_vm7, %v692_v26, %v696_v35  ;;  %v4244_v26 = vld [vmem:[%s7629_s2 + $0x630] sm:$0xf0]  ;;  %v5052_v46 = vld [vmem:[%s7629_s2 + $0x724] sm:$0xf]  ;;  %v3818_v48 = vld [vmem:[%s7629_s2 + $0x2c8] sm:$0xf] }
 0x158   :  { %2472 = vmatpush.bf16.msra.mxu0 %v3531_v7  ;;  %v5032_v7 = vld [vmem:[%s7629_s2 + $0x684] sm:$0xf]  ;;  %v6393_v8 = vpack.c.bf16 %v697_v4, %v697_v4  ;;  %v680_v9 = vpop.f32.mrf.mxu2  ;;  %v4247_v35 = vor.u32 %v5020_v23, %v4244_v26  ;;  %v4372_v47 = vld [vmem:[%s7629_s2 + $0x730] sm:$0xf0]  ;;  %v4202_v53 = vld [vmem:[%s7629_s2 + $0x5c8] sm:$0xf]  ;;  %v3819_v55 = vor.u32 %v4915_v50, %v3818_v48 }
 0x159   :  { %2483 = vmatpush.bf16.msra.mxu1 %v3691_v31  ;;  %2445 = vmatpush.bf16.msrb.mxu2 %v4311_v3  ;;  %v4295_v39 = vor.u32 %v5032_v7, %v4292_v58  ;;  %v3610_v31 = vld [vmem:[%s7629_s2 + $0x128] sm:$0xf]  ;;  %v5056_v7 = vld [vmem:[%s7629_s2 + $0x744] sm:$0xf]  ;;  %v4388_v58 = vld [vmem:[%s7629_s2 + $0x750] sm:$0xf0] }
 0x15a   :  { %2360 = vmatmul.bf16.vlgmr.msrb.gmra.mxu3 %v6393_v8  ;;  %v3611_v10 = vor.u32 %v4863_v32, %v3610_v31  ;;  %v5011_v24 = vld [vmem:[%s7629_s2 + $0x5d4] sm:$0xf0]  ;;  %v5048_v54 = vld [vmem:[%s7629_s2 + $0x704] sm:$0xf]  ;;  %v3978_v23 = vld [vmem:[%s7629_s2 + $0x408] sm:$0xf]  ;;  %v3803_v32 = vor.u32 %v4911_v61, %v3802_v60 }
 0x15b   :  { %2456 = vmatpush.bf16.msrb.mxu3 %v4471_v5  ;;  %v4407_v5 = vor.u32 %v5060_v30, %v4404_v59  ;;  %v4955_v26 = vld [vmem:[%s7629_s2 + $0x414] sm:$0xf0]  ;;  %v4853_v59 = vld [vmem:[%s7629_s2 + $0xec] sm:$0xf]  ;;  %v3580_v31 = vld [vmem:[%s7629_s2 + $0xf8] sm:$0xf0] }
 0x15c   :  { %2473 = vmatpush.bf16.msra.mxu0 %v3515_v0  ;;  %v4979_v0 = vld [vmem:[%s7629_s2 + $0x4d4] sm:$0xf0]  ;;  %v3754_v48 = vld [vmem:[%s7629_s2 + $0x248] sm:$0xf] }
 0x15d   :  { %2484 = vmatpush.bf16.msra.mxu1 %v3675_v11  ;;  %v4075_v44 = vor.u32 %v4979_v0, %v4074_v38  ;;  %2446 = vmatpush.bf16.msrb.mxu2 %v4295_v39  ;;  %v4027_v11 = vor.u32 %v4967_v34, %v4026_v33  ;;  %v4963_v38 = vld [vmem:[%s7629_s2 + $0x454] sm:$0xf0]  ;;  %v3786_v34 = vld [vmem:[%s7629_s2 + $0x288] sm:$0xf] }
 0x15e   :  { %v4011_v45 = vor.u32 %v4963_v38, %v4010_v16  ;;  %v3930_v16 = vld [vmem:[%s7629_s2 + $0x3a8] sm:$0xf]  ;;  %v4943_v38 = vld [vmem:[%s7629_s2 + $0x3b4] sm:$0xf0] }
 0x15f   :  { %2457 = vmatpush.bf16.msrb.mxu3 %v4455_v41  ;;  %v4218_v41 = vld [vmem:[%s7629_s2 + $0x5e8] sm:$0xf]  ;;  %v4899_v50 = vld [vmem:[%s7629_s2 + $0x254] sm:$0xf0] }
 0x160   :  { %2474 = vmatpush.bf16.msra.mxu0 %v3499_v51  ;;  %v4279_v51 = vor.u32 %v5028_v18, %v4276_v19  ;;  %2399 = vmatmul.bf16.vlgmr.msra.gmra.mxu2 %v5852_v22  ;;  %v5015_v18 = vld [vmem:[%s7629_s2 + $0x5f4] sm:$0xf0]  ;;  %v4391_v19 = vor.u32 %v5056_v7, %v4388_v58  ;;  %v4170_v7 = vld [vmem:[%s7629_s2 + $0x588] sm:$0xf] }
 0x161   :  { %2485 = vmatpush.bf16.msra.mxu1 %v3659_v20  ;;  %v4219_v49 = vor.u32 %v5015_v18, %v4218_v41  ;;  %v5003_v58 = vld [vmem:[%s7629_s2 + $0x594] sm:$0xf0]  ;;  %v4154_v41 = vld [vmem:[%s7629_s2 + $0x568] sm:$0xf] }
 0x162   :  { %2447 = vmatpush.bf16.msrb.mxu2 %v4279_v51  ;;  %v3994_v51 = vld [vmem:[%s7629_s2 + $0x428] sm:$0xf]  ;;  %v4999_v18 = vld [vmem:[%s7629_s2 + $0x574] sm:$0xf0] }
 0x163   :  { %2458 = vmatpush.bf16.msrb.mxu3 %v4439_v52  ;;  %v4959_v52 = vld [vmem:[%s7629_s2 + $0x434] sm:$0xf0]  ;;  %v3898_v60 = vld [vmem:[%s7629_s2 + $0x368] sm:$0xf] }
 0x164   :  { %2475 = vmatpush.bf16.msra.mxu0 %v3483_v27  ;;  %v3627_v27 = vor.u32 %v4867_v57, %v3626_v56  ;;  %v3995_v56 = vor.u32 %v4959_v52, %v3994_v51  ;;  %v4356_v57 = vld [vmem:[%s7629_s2 + $0x710] sm:$0xf0]  ;;  %v3914_v51 = vld [vmem:[%s7629_s2 + $0x388] sm:$0xf]  ;;  %v4935_v61 = vld [vmem:[%s7629_s2 + $0x374] sm:$0xf0] }
 0x165   :  { %2486 = vmatpush.bf16.msra.mxu1 %v3643_v25  ;;  %v4359_v30 = vor.u32 %v5048_v54, %v4356_v57  ;;  %v4895_v57 = vld [vmem:[%s7629_s2 + $0x234] sm:$0xf0] }
 0x166   :  { %2448 = vmatpush.bf16.msrb.mxu2 %v4263_v62  ;;  %v4203_v62 = vor.u32 %v5011_v24, %v4202_v53  ;;  %v4138_v53 = vld [vmem:[%s7629_s2 + $0x548] sm:$0xf]  ;;  %v4995_v24 = vld [vmem:[%s7629_s2 + $0x554] sm:$0xf0] }
 0x167   :  { %2459 = vmatpush.bf16.msrb.mxu3 %v4423_v63  ;;  %v3962_v63 = vld [vmem:[%s7629_s2 + $0x3e8] sm:$0xf] }
 0x168   :  { %2476 = vmatpush.bf16.msra.mxu0 %v3467_v37  ;;  %v2270_v3 = vpop.f32.mrf.mxu0  ;;  %v4228_v37 = vld [vmem:[%s7629_s2 + $0x610] sm:$0xf0] }
 0x169   :  { %v2283_v4 = vpop.f32.mrf.mxu1  ;;  %v2271_v9 = vadd.f32 %v2270_v3, %v973_v21  ;;  %2487 = vmatpush.bf16.msra.mxu1 %v3627_v27  ;;  %v4231_v39 = vor.u32 %v5016_v36, %v4228_v37  ;;  %v4951_v21 = vld [vmem:[%s7629_s2 + $0x3f4] sm:$0xf0]  ;;  %v4186_v27 = vld [vmem:[%s7629_s2 + $0x5a8] sm:$0xf]  ;;  %v3583_v37 = vor.u32 %v4853_v59, %v3580_v31  ;;  %v3899_v31 = vor.u32 %v4935_v61, %v3898_v60  ;;  %v4981_v60 = vld [vmem:[%s7629_s2 + $0x4ec] sm:$0xf] }
 0x16a   :  { %2412 = vmatmul.bf16.vlgmr.msra.gmra.mxu3 %v5900_v40  ;;  %2449 = vmatpush.bf16.msrb.mxu2 %v4247_v35  ;;  %v3963_v33 = vor.u32 %v4951_v21, %v3962_v63  ;;  %v3979_v35 = vor.u32 %v4955_v26, %v3978_v23  ;;  %v4907_v3 = vld [vmem:[%s7629_s2 + $0x294] sm:$0xf0]  ;;  %v4122_v63 = vld [vmem:[%s7629_s2 + $0x528] sm:$0xf]  ;;  %v4092_v61 = vld [vmem:[%s7629_s2 + $0x4f8] sm:$0xf0] }
 0x16b   :  { %2477 = vmatmul.bf16.vlgmr.msra.gmra.mxu0 %v5794_v17  ;;  %v6521_v0 = vadd.f32 %v2283_v4, %v2271_v9  ;;  %2460 = vmatpush.bf16.msrb.mxu3 %v4407_v5  ;;  %v3946_v4 = vld [vmem:[%s7629_s2 + $0x3c8] sm:$0xf]  ;;  %v4947_v5 = vld [vmem:[%s7629_s2 + $0x3d4] sm:$0xf0]  ;;  %v4849_v9 = vld [vmem:[%s7629_s2 + $0xcc] sm:$0xf] }
 0x16c   :  { %2521 = vmatpush.bf16.msrb.mxu0 %v4091_v12  ;;  %v3834_v12 = vld [vmem:[%s7629_s2 + $0x2e8] sm:$0xf]  ;;  %v4991_v21 = vld [vmem:[%s7629_s2 + $0x534] sm:$0xf0] }
 0x16d   :  { %v3835_v20 = vor.u32 %v4919_v13, %v3834_v12  ;;  %2488 = vmatpush.bf16.msra.mxu1 %v3611_v10  ;;  %v3564_v10 = vld [vmem:[%s7629_s2 + $0xd8] sm:$0xf0]  ;;  %v3947_v12 = vor.u32 %v4947_v5, %v3946_v4  ;;  %v3770_v13 = vld [vmem:[%s7629_s2 + $0x268] sm:$0xf]  ;;  %v5047_v4 = vld [vmem:[%s7629_s2 + $0x6f4] sm:$0xf0] }
 0x16e   :  { %2450 = vmatpush.bf16.msrb.mxu2 %v4231_v39  ;;  %v3567_v39 = vor.u32 %v4849_v9, %v3564_v10  ;;  %v3500_v9 = vld [vmem:[%s7629_s2 + $0x58] sm:$0xf0]  ;;  %v4885_v10 = vld [vmem:[%s7629_s2 + $0x1ec] sm:$0xf] }
 0x16f   :  { %2461 = vmatpush.bf16.msrb.mxu3 %v4391_v19 }
 0x170   :  { %2522 = vmatpush.bf16.msrb.mxu0 %v4075_v44  ;;  %v3595_v44 = vor.u32 %v4859_v15, %v3594_v14  ;;  %v2272_v43 = vpop.f32.mrf.mxu0  ;;  %v4171_v14 = vor.u32 %v5003_v58, %v4170_v7  ;;  %v4903_v15 = vld [vmem:[%s7629_s2 + $0x274] sm:$0xf0]  ;;  %v4833_v58 = vld [vmem:[%s7629_s2 + $0x4c] sm:$0xf] }
 0x171   :  { %v2285_v25 = vpop.f32.mrf.mxu1  ;;  %2451 = vmatmul.bf16.vlgmr.msrb.gmra.mxu2 %v6335_v1  ;;  %v4841_v43 = vld [vmem:[%s7629_s2 + $0x8c] sm:$0xf]  ;;  %v4987_v7 = vld [vmem:[%s7629_s2 + $0x514] sm:$0xf0] }
 0x172   :  { %2495 = vmatpush.bf16.msra.mxu2 %v3835_v20  ;;  %2489 = vmatpush.bf16.msra.mxu1 %v3595_v44  ;;  %v4845_v20 = vld [vmem:[%s7629_s2 + $0xac] sm:$0xf]  ;;  %v3548_v44 = vld [vmem:[%s7629_s2 + $0xb8] sm:$0xf0] }
 0x173   :  { %v2296_v19 = vpop.f32.mrf.mxu2  ;;  %v3551_v52 = vor.u32 %v4845_v20, %v3548_v44  ;;  %v3532_v25 = vld [vmem:[%s7629_s2 + $0x98] sm:$0xf0]  ;;  %v4829_v20 = vld [vmem:[%s7629_s2 + $0x2c] sm:$0xf] }
 0x174   :  { %2523 = vmatpush.bf16.msrb.mxu0 %v4059_v28  ;;  %v4375_v28 = vor.u32 %v5052_v46, %v4372_v47  ;;  %v3771_v46 = vor.u32 %v4903_v15, %v3770_v13  ;;  %v3931_v47 = vor.u32 %v4943_v38, %v3930_v16  ;;  %v3866_v16 = vld [vmem:[%s7629_s2 + $0x328] sm:$0xf]  ;;  %v4927_v38 = vld [vmem:[%s7629_s2 + $0x334] sm:$0xf0]  ;;  %v3484_v44 = vld [vmem:[%s7629_s2 + $0x38] sm:$0xf0] }
 0x175   :  { %2490 = vmatmul.bf16.vlgmr.msra.gmra.mxu1 %v5796_v2 }
 0x176   :  { %2534 = vmatpush.bf16.msrb.mxu1 %v4219_v49  ;;  %2462 = vmatpush.bf16.msrb.mxu3 %v4375_v28  ;;  %v4155_v49 = vor.u32 %v4999_v18, %v4154_v41  ;;  %v3755_v28 = vor.u32 %v4899_v50, %v3754_v48  ;;  %v4330_v18 = vld [vmem:[%s7629_s2 + $0x6c8] sm:$0xf]  ;;  %v3867_v48 = vor.u32 %v4927_v38, %v3866_v16 }
 0x177   :  { %2496 = vmatpush.bf16.msra.mxu2 %v3819_v55  ;;  %v3738_v55 = vld [vmem:[%s7629_s2 + $0x228] sm:$0xf] }
 0x178   :  { %2524 = vmatpush.bf16.msrb.mxu0 %v4043_v29  ;;  %v5007_v29 = vld [vmem:[%s7629_s2 + $0x5b4] sm:$0xf0]  ;;  %v3739_v59 = vor.u32 %v4895_v57, %v3738_v55  ;;  %v4877_v55 = vld [vmem:[%s7629_s2 + $0x1ac] sm:$0xf]  ;;  %v4266_v38 = vld [vmem:[%s7629_s2 + $0x648] sm:$0xf] }
 0x179   :  { %v4187_v36 = vor.u32 %v5007_v29, %v4186_v27  ;;  %v4837_v27 = vld [vmem:[%s7629_s2 + $0x6c] sm:$0xf]  ;;  %v3516_v29 = vld [vmem:[%s7629_s2 + $0x78] sm:$0xf0] }
 0x17a   :  { %2535 = vmatpush.bf16.msrb.mxu1 %v4203_v62  ;;  %2463 = vmatpush.bf16.msrb.mxu3 %v4359_v30  ;;  %v3535_v62 = vor.u32 %v4841_v43, %v3532_v25  ;;  %v3519_v5 = vor.u32 %v4837_v27, %v3516_v29  ;;  %v4474_v43 = vld [vmem:[%s7629_s2 + $0x7e8] sm:$0xf]  ;;  %v5079_v25 = vld [vmem:[%s7629_s2 + $0x7f4] sm:$0xf0] }
 0x17b   :  { %2497 = vmatpush.bf16.msra.mxu2 %v3803_v32  ;;  %v2298_v23 = vpop.f32.mrf.mxu2  ;;  %v3722_v32 = vld [vmem:[%s7629_s2 + $0x208] sm:$0xf]  ;;  %v5035_v27 = vld [vmem:[%s7629_s2 + $0x694] sm:$0xf0] }
 0x17c   :  { %2525 = vmatpush.bf16.msrb.mxu0 %v4027_v11  ;;  %v3787_v11 = vor.u32 %v4907_v3, %v3786_v34  ;;  %v3882_v34 = vld [vmem:[%s7629_s2 + $0x348] sm:$0xf] }
 0x17d   :  { %2464 = vmatmul.bf16.vlgmr.msrb.gmra.mxu3 %v6393_v8  ;;  %v2309_v26 = vpop.f32.mrf.mxu3  ;;  %v4346_v3 = vld [vmem:[%s7629_s2 + $0x6e8] sm:$0xf] }
 0x17e   :  { %2508 = vmatpush.bf16.msra.mxu3 %v3963_v33  ;;  %2536 = vmatpush.bf16.msrb.mxu1 %v4187_v36  ;;  %v4891_v33 = vld [vmem:[%s7629_s2 + $0x214] sm:$0xf0]  ;;  %v4458_v29 = vld [vmem:[%s7629_s2 + $0x7c8] sm:$0xf] }
 0x17f   :  { %2498 = vmatpush.bf16.msra.mxu2 %v3787_v11  ;;  %v4931_v36 = vld [vmem:[%s7629_s2 + $0x354] sm:$0xf0]  ;;  %v3708_v11 = vld [vmem:[%s7629_s2 + $0x1f8] sm:$0xf0] }
 0x180   :  { %2526 = vmatpush.bf16.msrb.mxu0 %v4011_v45  ;;  %v2297_v45 = vadd.f32 %v2296_v19, %v6521_v0  ;;  %v4939_v0 = vld [vmem:[%s7629_s2 + $0x394] sm:$0xf0]  ;;  %v3883_v13 = vor.u32 %v4931_v36, %v3882_v34  ;;  %v3711_v41 = vor.u32 %v4885_v10, %v3708_v11  ;;  %v4977_v34 = vld [vmem:[%s7629_s2 + $0x4cc] sm:$0xf]  ;;  %v3644_v11 = vld [vmem:[%s7629_s2 + $0x178] sm:$0xf0] }
 0x181   :  { %v3915_v54 = vor.u32 %v4939_v0, %v3914_v51  ;;  %v5043_v19 = vld [vmem:[%s7629_s2 + $0x6d4] sm:$0xf0]  ;;  %v4314_v0 = vld [vmem:[%s7629_s2 + $0x6a8] sm:$0xf]  ;;  %v4869_v10 = vld [vmem:[%s7629_s2 + $0x16c] sm:$0xf] }
 0x182   :  { %2509 = vmatpush.bf16.msra.mxu3 %v3947_v12  ;;  %2537 = vmatpush.bf16.msrb.mxu1 %v4171_v14  ;;  %v6691_v30 = vadd.f32 %v2309_v26, %v2297_v45  ;;  %v3723_v12 = vor.u32 %v4891_v33, %v3722_v32  ;;  %v4347_v14 = vor.u32 %v5047_v4, %v4346_v3  ;;  %v4881_v45 = vld [vmem:[%s7629_s2 + $0x1cc] sm:$0xf]  ;;  %v4923_v51 = vld [vmem:[%s7629_s2 + $0x314] sm:$0xf0]  ;;  %v3660_v33 = vld [vmem:[%s7629_s2 + $0x198] sm:$0xf0] }
 0x183   :  { %2499 = vmatpush.bf16.msra.mxu2 %v3771_v46  ;;  %v3692_v46 = vld [vmem:[%s7629_s2 + $0x1d8] sm:$0xf0]  ;;  %v4331_v50 = vor.u32 %v5043_v19, %v4330_v18  ;;  %v4873_v32 = vld [vmem:[%s7629_s2 + $0x18c] sm:$0xf]  ;;  %v4282_v4 = vld [vmem:[%s7629_s2 + $0x668] sm:$0xf] }
 0x184   :  { %2527 = vmatpush.bf16.msrb.mxu0 %v3995_v56  ;;  %v4139_v56 = vor.u32 %v4995_v24, %v4138_v53  ;;  %v3487_v53 = vor.u32 %v4829_v20, %v3484_v44  ;;  %v3695_v24 = vor.u32 %v4881_v45, %v3692_v46  ;;  %v4426_v18 = vld [vmem:[%s7629_s2 + $0x788] sm:$0xf]  ;;  %v5067_v19 = vld [vmem:[%s7629_s2 + $0x794] sm:$0xf0]  ;;  %v3628_v44 = vld [vmem:[%s7629_s2 + $0x158] sm:$0xf0] }
 0x185   :  { %v4969_v45 = vld [vmem:[%s7629_s2 + $0x48c] sm:$0xf]  ;;  %v4044_v46 = vld [vmem:[%s7629_s2 + $0x498] sm:$0xf0] }
 0x186   :  { %2510 = vmatpush.bf16.msra.mxu3 %v3931_v47  ;;  %2538 = vmatpush.bf16.msrb.mxu1 %v4155_v49  ;;  %v2311_v47 = vpop.f32.mrf.mxu3  ;;  %v3850_v49 = vld [vmem:[%s7629_s2 + $0x308] sm:$0xf] }
 0x187   :  { %2500 = vmatpush.bf16.msra.mxu2 %v3755_v28  ;;  %v4825_v28 = vld [vmem:[%s7629_s2 + $0xc] sm:$0xf]  ;;  %v3851_v57 = vor.u32 %v4923_v51, %v3850_v49  ;;  %v4250_v49 = vld [vmem:[%s7629_s2 + $0x628] sm:$0xf]  ;;  %v5023_v51 = vld [vmem:[%s7629_s2 + $0x634] sm:$0xf0] }
 0x188   :  { %2528 = vmatpush.bf16.msrb.mxu0 %v3979_v35  ;;  %v4123_v35 = vor.u32 %v4991_v21, %v4122_v63  ;;  %v4475_v63 = vor.u32 %v5079_v25, %v4474_v43  ;;  %v4298_v21 = vld [vmem:[%s7629_s2 + $0x688] sm:$0xf]  ;;  %v3612_v43 = vld [vmem:[%s7629_s2 + $0x138] sm:$0xf0]  ;;  %v4965_v25 = vld [vmem:[%s7629_s2 + $0x46c] sm:$0xf] }
 0x189   :  { %v4299_v36 = vor.u32 %v5035_v27, %v4298_v21  ;;  %v4917_v21 = vld [vmem:[%s7629_s2 + $0x2ec] sm:$0xf] }
 0x18a   :  { %2511 = vmatpush.bf16.msra.mxu3 %v3915_v54  ;;  %2539 = vmatpush.bf16.msrb.mxu1 %v4139_v56  ;;  %v3468_v54 = vld [vmem:[%s7629_s2 + $0x18] sm:$0xf0]  ;;  %v4857_v27 = vld [vmem:[%s7629_s2 + $0x10c] sm:$0xf] }
 0x18b   :  { %2529 = vmatmul.bf16.vlgmr.msrb.gmra.mxu0 %v6089_v6  ;;  %2501 = vmatpush.bf16.msra.mxu2 %v3739_v59  ;;  %v3676_v56 = vld [vmem:[%s7629_s2 + $0x1b8] sm:$0xf0]  ;;  %v3471_v23 = vor.u32 %v4825_v28, %v3468_v54  ;;  %v5075_v59 = vld [vmem:[%s7629_s2 + $0x7d4] sm:$0xf0] }
 0x18c   :  { %2573 = vmatpush.bf16.msra.mxu0 %v3583_v37  ;;  %v4106_v37 = vld [vmem:[%s7629_s2 + $0x508] sm:$0xf]  ;;  %v3679_v26 = vor.u32 %v4877_v55, %v3676_v56  ;;  %v4459_v3 = vor.u32 %v5075_v59, %v4458_v29  ;;  %v4028_v28 = vld [vmem:[%s7629_s2 + $0x478] sm:$0xf0]  ;;  %v4251_v55 = vor.u32 %v5023_v51, %v4250_v49  ;;  %v4961_v59 = vld [vmem:[%s7629_s2 + $0x44c] sm:$0xf] }
 0x18d   :  { %v4107_v15 = vor.u32 %v4987_v7, %v4106_v37  ;;  %v5031_v37 = vld [vmem:[%s7629_s2 + $0x674] sm:$0xf0]  ;;  %v4442_v7 = vld [vmem:[%s7629_s2 + $0x7a8] sm:$0xf]  ;;  %v3596_v29 = vld [vmem:[%s7629_s2 + $0x118] sm:$0xf0] }
 0x18e   :  { %2512 = vmatpush.bf16.msra.mxu3 %v3899_v31  ;;  %2540 = vmatpush.bf16.msrb.mxu1 %v4123_v35  ;;  %v4095_v31 = vor.u32 %v4981_v60, %v4092_v61  ;;  %v4076_v35 = vld [vmem:[%s7629_s2 + $0x4d8] sm:$0xf0]  ;;  %v5019_v60 = vld [vmem:[%s7629_s2 + $0x614] sm:$0xf0]  ;;  %v4394_v61 = vld [vmem:[%s7629_s2 + $0x748] sm:$0xf] }
 0x18f   :  { %2502 = vmatpush.bf16.msra.mxu2 %v3723_v12  ;;  %v4973_v12 = vld [vmem:[%s7629_s2 + $0x4ac] sm:$0xf]  ;;  %v4188_v49 = vld [vmem:[%s7629_s2 + $0x5b8] sm:$0xf0]  ;;  %v4538_v51 = vld [vmem:[%s7630_s3 + $0x70] sm:$0xf] }
 0x190   :  { %2574 = vmatpush.bf16.msra.mxu0 %v3567_v39  ;;  %v3503_v39 = vor.u32 %v4833_v58, %v3500_v9  ;;  %v5071_v58 = vld [vmem:[%s7629_s2 + $0x7b4] sm:$0xf0]  ;;  %v4079_v9 = vor.u32 %v4977_v34, %v4076_v35 }
 0x191   :  { %v4443_v16 = vor.u32 %v5071_v58, %v4442_v7  ;;  %v4913_v58 = vld [vmem:[%s7629_s2 + $0x2cc] sm:$0xf] }
 0x192   :  { %2513 = vmatpush.bf16.msra.mxu3 %v3883_v13  ;;  %2541 = vmatpush.bf16.msrb.mxu1 %v4107_v15  ;;  %v4060_v13 = vld [vmem:[%s7629_s2 + $0x4b8] sm:$0xf0]  ;;  %v4283_v15 = vor.u32 %v5031_v37, %v4282_v4  ;;  %v4378_v4 = vld [vmem:[%s7629_s2 + $0x728] sm:$0xf] }
 0x193   :  { %2547 = vmatpush.bf16.msrb.mxu2 %v4347_v14  ;;  %v4063_v20 = vor.u32 %v4973_v12, %v4060_v13  ;;  %v5009_v12 = vld [vmem:[%s7629_s2 + $0x5cc] sm:$0xf]  ;;  %v4204_v13 = vld [vmem:[%s7629_s2 + $0x5d8] sm:$0xf0] }
 0x194   :  { %2575 = vmatpush.bf16.msra.mxu0 %v3551_v52  ;;  %v5039_v52 = vld [vmem:[%s7629_s2 + $0x6b4] sm:$0xf0]  ;;  %2503 = vmatmul.bf16.vlgmr.msra.gmra.mxu2 %v5852_v22 }
 0x195   :  { %2542 = vmatmul.bf16.vlgmr.msrb.gmra.mxu1 %v6223_v42 }
 0x196   :  { %2586 = vmatpush.bf16.msra.mxu1 %v3711_v41  ;;  %2514 = vmatpush.bf16.msra.mxu3 %v3867_v48  ;;  %v6840_v14 = vpop.f32.mrf.mxu0  ;;  %v5027_v41 = vld [vmem:[%s7629_s2 + $0x654] sm:$0xf0]  ;;  %v4427_v48 = vor.u32 %v5067_v19, %v4426_v18  ;;  %v4909_v18 = vld [vmem:[%s7629_s2 + $0x2ac] sm:$0xf]  ;;  %v3804_v19 = vld [vmem:[%s7629_s2 + $0x2b8] sm:$0xf0] }
 0x197   :  { %2548 = vmatpush.bf16.msrb.mxu2 %v4331_v50  ;;  %v4267_v47 = vor.u32 %v5027_v41, %v4266_v38  ;;  %v4362_v38 = vld [vmem:[%s7629_s2 + $0x708] sm:$0xf]  ;;  %v5051_v41 = vld [vmem:[%s7629_s2 + $0x714] sm:$0xf0] }
 0x198   :  { %2576 = vmatpush.bf16.msra.mxu0 %v3535_v62  ;;  %v4315_v62 = vor.u32 %v5039_v52, %v4314_v0  ;;  %v4410_v0 = vld [vmem:[%s7629_s2 + $0x768] sm:$0xf]  ;;  %v5063_v52 = vld [vmem:[%s7629_s2 + $0x774] sm:$0xf0] }
 0x199   :  { %v4411_v56 = vor.u32 %v5063_v52, %v4410_v0  ;;  %v5095_v0 = vld [vmem:[%s7630_s3 + $0x74] sm:$0xf0]  ;;  %v3807_v52 = vor.u32 %v4909_v18, %v3804_v19  ;;  %v3740_v19 = vld [vmem:[%s7629_s2 + $0x238] sm:$0xf0] }
 0x19a   :  { %2587 = vmatpush.bf16.msra.mxu1 %v3695_v24  ;;  %2515 = vmatpush.bf16.msra.mxu3 %v3851_v57  ;;  %v4861_v24 = vld [vmem:[%s7629_s2 + $0x12c] sm:$0xf]  ;;  %v4234_v57 = vld [vmem:[%s7629_s2 + $0x608] sm:$0xf] }
 0x19b   :  { %2549 = vmatpush.bf16.msrb.mxu2 %v4315_v62  ;;  %v3615_v62 = vor.u32 %v4861_v24, %v3612_v43  ;;  %v4235_v34 = vor.u32 %v5019_v60, %v4234_v57  ;;  %v4905_v24 = vld [vmem:[%s7629_s2 + $0x28c] sm:$0xf]  ;;  %v4539_v57 = vor.u32 %v5095_v0, %v4538_v51 }
 0x19c   :  { %2577 = vmatpush.bf16.msra.mxu0 %v3519_v5  ;;  %v3663_v5 = vor.u32 %v4873_v32, %v3660_v33  ;;  %v5013_v32 = vld [vmem:[%s7629_s2 + $0x5ec] sm:$0xf]  ;;  %v4220_v33 = vld [vmem:[%s7629_s2 + $0x5f8] sm:$0xf0] }
 0x19d   :  { %2516 = vmatmul.bf16.vlgmr.msra.gmra.mxu3 %v5900_v40  ;;  %v4223_v7 = vor.u32 %v5013_v32, %v4220_v33  ;;  %v4997_v32 = vld [vmem:[%s7629_s2 + $0x56c] sm:$0xf]  ;;  %v4156_v33 = vld [vmem:[%s7629_s2 + $0x578] sm:$0xf0] }
 0x19e   :  { %2560 = vmatpush.bf16.msrb.mxu3 %v4475_v63  ;;  %2588 = vmatpush.bf16.msra.mxu1 %v3679_v26  ;;  %v2324_v54 = vpop.f32.mrf.mxu0  ;;  %v5059_v63 = vld [vmem:[%s7629_s2 + $0x754] sm:$0xf0]  ;;  %v4031_v26 = vor.u32 %v4965_v25, %v4028_v28  ;;  %v3788_v25 = vld [vmem:[%s7629_s2 + $0x298] sm:$0xf0]  ;;  %v4945_v28 = vld [vmem:[%s7629_s2 + $0x3cc] sm:$0xf] }
 0x19f   :  { %2550 = vmatpush.bf16.msrb.mxu2 %v4299_v36  ;;  %v4395_v35 = vor.u32 %v5059_v63, %v4394_v61  ;;  %v3948_v54 = vld [vmem:[%s7629_s2 + $0x3d8] sm:$0xf0]  ;;  %v4530_v61 = vld [vmem:[%s7630_s3 + $0x60] sm:$0xf]  ;;  %v3791_v63 = vor.u32 %v4905_v24, %v3788_v25  ;;  %v4889_v0 = vld [vmem:[%s7629_s2 + $0x20c] sm:$0xf] }
 0x1a0   :  { %2578 = vmatpush.bf16.msra.mxu0 %v3503_v39  ;;  %v3647_v39 = vor.u32 %v4869_v10, %v3644_v11  ;;  %v4957_v10 = vld [vmem:[%s7629_s2 + $0x42c] sm:$0xf]  ;;  %v3996_v11 = vld [vmem:[%s7629_s2 + $0x438] sm:$0xf0] }
 0x1a1   :  { %v4348_v25 = vld [vmem:[%s7629_s2 + $0x6f8] sm:$0xf0] }
 0x1a2   :  { %2561 = vmatpush.bf16.msrb.mxu3 %v4459_v3  ;;  %2589 = vmatpush.bf16.msra.mxu1 %v3663_v5  ;;  %v3599_v3 = vor.u32 %v4857_v27, %v3596_v29  ;;  %v5055_v5 = vld [vmem:[%s7629_s2 + $0x734] sm:$0xf0]  ;;  %v3772_v29 = vld [vmem:[%s7629_s2 + $0x278] sm:$0xf0] }
 0x1a3   :  { %2551 = vmatpush.bf16.msrb.mxu2 %v4283_v15 }
 0x1a4   :  { %2579 = vmatpush.bf16.msra.mxu0 %v3487_v53  ;;  %v4047_v53 = vor.u32 %v4969_v45, %v4044_v46  ;;  %v3964_v45 = vld [vmem:[%s7629_s2 + $0x3f8] sm:$0xf0]  ;;  %v4953_v46 = vld [vmem:[%s7629_s2 + $0x40c] sm:$0xf] }
 0x1a6   :  { %2562 = vmatpush.bf16.msrb.mxu3 %v4443_v16  ;;  %2590 = vmatpush.bf16.msra.mxu1 %v3647_v39  ;;  %v4379_v16 = vor.u32 %v5055_v5, %v4378_v4  ;;  %v4897_v5 = vld [vmem:[%s7629_s2 + $0x24c] sm:$0xf] }
 0x1a7   :  { %2552 = vmatpush.bf16.msrb.mxu2 %v4267_v47  ;;  %v3980_v47 = vld [vmem:[%s7629_s2 + $0x418] sm:$0xf0] }
 0x1a8   :  { %2580 = vmatpush.bf16.msra.mxu0 %v3471_v23  ;;  %v3836_v23 = vld [vmem:[%s7629_s2 + $0x2f8] sm:$0xf0]  ;;  %v6951_v15 = vpop.f32.mrf.mxu0  ;;  %v3983_v43 = vor.u32 %v4953_v46, %v3980_v47  ;;  %v4506_v47 = vld [vmem:[%s7630_s3 + $0x30] sm:$0xf] }
 0x1a9   :  { %v3839_v36 = vor.u32 %v4917_v21, %v3836_v23  ;;  %v3951_v21 = vor.u32 %v4945_v28, %v3948_v54  ;;  %v4901_v23 = vld [vmem:[%s7629_s2 + $0x26c] sm:$0xf]  ;;  %v4108_v54 = vld [vmem:[%s7629_s2 + $0x518] sm:$0xf0] }
 0x1aa   :  { %2563 = vmatpush.bf16.msrb.mxu3 %v4427_v48  ;;  %v5005_v48 = vld [vmem:[%s7629_s2 + $0x5ac] sm:$0xf] }
 0x1ab   :  { %2581 = vmatmul.bf16.vlgmr.msra.gmra.mxu0 %v5794_v17  ;;  %v4865_v17 = vld [vmem:[%s7629_s2 + $0x14c] sm:$0xf]  ;;  %2553 = vmatpush.bf16.msrb.mxu2 %v4251_v55 }
 0x1ac   :  { %2625 = vmatpush.bf16.msrb.mxu0 %v4095_v31  ;;  %v3631_v50 = vor.u32 %v4865_v17, %v3628_v44  ;;  %v4012_v31 = vld [vmem:[%s7629_s2 + $0x458] sm:$0xf0]  ;;  %v4207_v17 = vor.u32 %v5009_v12, %v4204_v13  ;;  %v4949_v44 = vld [vmem:[%s7629_s2 + $0x3ec] sm:$0xf]  ;;  %v4514_v12 = vld [vmem:[%s7630_s3 + $0x40] sm:$0xf] }
 0x1ad   :  { %v4015_v37 = vor.u32 %v4961_v59, %v4012_v31  ;;  %v5001_v55 = vld [vmem:[%s7629_s2 + $0x58c] sm:$0xf]  ;;  %v3932_v31 = vld [vmem:[%s7629_s2 + $0x3b8] sm:$0xf0]  ;;  %v5089_v13 = vld [vmem:[%s7630_s3 + $0x44] sm:$0xf0] }
 0x1ae   :  { %2591 = vmatpush.bf16.msra.mxu1 %v3631_v50  ;;  %2564 = vmatpush.bf16.msrb.mxu3 %v4411_v56  ;;  %v4363_v50 = vor.u32 %v5051_v41, %v4362_v38  ;;  %v4172_v56 = vld [vmem:[%s7629_s2 + $0x598] sm:$0xf0]  ;;  %v4941_v59 = vld [vmem:[%s7629_s2 + $0x3ac] sm:$0xf]  ;;  %v4515_v46 = vor.u32 %v5089_v13, %v4514_v12 }
 0x1af   :  { %2554 = vmatpush.bf16.msrb.mxu2 %v4235_v34  ;;  %v4175_v27 = vor.u32 %v5001_v55, %v4172_v56  ;;  %v3935_v4 = vor.u32 %v4941_v59, %v3932_v31  ;;  %v4985_v28 = vld [vmem:[%s7629_s2 + $0x50c] sm:$0xf]  ;;  %v4498_v56 = vld [vmem:[%s7630_s3 + $0x20] sm:$0xf]  ;;  %v3868_v59 = vld [vmem:[%s7629_s2 + $0x338] sm:$0xf0] }
 0x1b0   :  { %2626 = vmatpush.bf16.msrb.mxu0 %v4079_v9  ;;  %v3820_v9 = vld [vmem:[%s7629_s2 + $0x2d8] sm:$0xf0]  ;;  %v2376_v60 = vpop.f32.mrf.mxu0  ;;  %v5041_v31 = vld [vmem:[%s7629_s2 + $0x6cc] sm:$0xf] }
 0x1b1   :  { %v3823_v39 = vor.u32 %v4913_v58, %v3820_v9  ;;  %v4937_v58 = vld [vmem:[%s7629_s2 + $0x38c] sm:$0xf]  ;;  %v3916_v9 = vld [vmem:[%s7629_s2 + $0x398] sm:$0xf0]  ;;  %v4602_v60 = vld [vmem:[%s7630_s3 + $0xf0] sm:$0xf] }
 0x1b2   :  { %2592 = vmatpush.bf16.msra.mxu1 %v3615_v62  ;;  %2565 = vmatpush.bf16.msrb.mxu3 %v4395_v35  ;;  %v5093_v62 = vld [vmem:[%s7630_s3 + $0x64] sm:$0xf0]  ;;  %v4522_v35 = vld [vmem:[%s7630_s3 + $0x50] sm:$0xf]  ;;  %v3919_v38 = vor.u32 %v4937_v58, %v3916_v9  ;;  %v3852_v9 = vld [vmem:[%s7629_s2 + $0x318] sm:$0xf0] }
 0x1b3   :  { %2599 = vmatpush.bf16.msra.mxu2 %v3839_v36  ;;  %v4531_v34 = vor.u32 %v5093_v62, %v4530_v61  ;;  %v5091_v36 = vld [vmem:[%s7630_s3 + $0x54] sm:$0xf0]  ;;  %v4476_v12 = vld [vmem:[%s7629_s2 + $0x7f8] sm:$0xf0] }
 0x1b4   :  { %2627 = vmatpush.bf16.msrb.mxu0 %v4063_v20  ;;  %v3999_v20 = vor.u32 %v4957_v10, %v3996_v11  ;;  %2555 = vmatmul.bf16.vlgmr.msrb.gmra.mxu2 %v6335_v1  ;;  %v4993_v10 = vld [vmem:[%s7629_s2 + $0x54c] sm:$0xf]  ;;  %v4523_v11 = vor.u32 %v5091_v36, %v4522_v35  ;;  %v5111_v61 = vld [vmem:[%s7630_s3 + $0xf4] sm:$0xf0] }
 0x1b5   :  { %v4603_v35 = vor.u32 %v5111_v61, %v4602_v60  ;;  %v5083_v36 = vld [vmem:[%s7630_s3 + $0x14] sm:$0xf0]  ;;  %v4570_v61 = vld [vmem:[%s7630_s3 + $0xb0] sm:$0xf] }
 0x1b6   :  { %2593 = vmatpush.bf16.msra.mxu1 %v3599_v3  ;;  %2566 = vmatpush.bf16.msrb.mxu3 %v4379_v16  ;;  %v3775_v3 = vor.u32 %v4901_v23, %v3772_v29  ;;  %v4925_v29 = vld [vmem:[%s7629_s2 + $0x32c] sm:$0xf] }
 0x1b7   :  { %2600 = vmatpush.bf16.msra.mxu2 %v3823_v39  ;;  %v4893_v39 = vld [vmem:[%s7629_s2 + $0x22c] sm:$0xf] }
 0x1b8   :  { %2628 = vmatpush.bf16.msrb.mxu0 %v4047_v53  ;;  %v3967_v53 = vor.u32 %v4949_v44, %v3964_v45  ;;  %v4989_v44 = vld [vmem:[%s7629_s2 + $0x52c] sm:$0xf]  ;;  %v4124_v45 = vld [vmem:[%s7629_s2 + $0x538] sm:$0xf0] }
 0x1b9   :  { %2594 = vmatmul.bf16.vlgmr.msra.gmra.mxu1 %v5796_v2  ;;  %v4191_v2 = vor.u32 %v5005_v48, %v4188_v49  ;;  %v5087_v48 = vld [vmem:[%s7630_s3 + $0x34] sm:$0xf0]  ;;  %v4127_v24 = vor.u32 %v4989_v44, %v4124_v45 }
 0x1ba   :  { %2638 = vmatpush.bf16.msrb.mxu1 %v4223_v7  ;;  %2567 = vmatpush.bf16.msrb.mxu3 %v4363_v50  ;;  %v3756_v7 = vld [vmem:[%s7629_s2 + $0x258] sm:$0xf0]  ;;  %v3743_v50 = vor.u32 %v4893_v39, %v3740_v19  ;;  %v4507_v55 = vor.u32 %v5087_v48, %v4506_v47  ;;  %v5081_v39 = vld [vmem:[%s7630_s3 + $0x4] sm:$0xf0]  ;;  %v5073_v47 = vld [vmem:[%s7629_s2 + $0x7cc] sm:$0xf] }
 0x1bb   :  { %2601 = vmatpush.bf16.msra.mxu2 %v3807_v52  ;;  %v3759_v16 = vor.u32 %v4897_v5, %v3756_v7  ;;  %v3724_v52 = vld [vmem:[%s7629_s2 + $0x218] sm:$0xf0]  ;;  %v4921_v7 = vld [vmem:[%s7629_s2 + $0x30c] sm:$0xf] }
 0x1bc   :  { %2629 = vmatpush.bf16.msrb.mxu0 %v4031_v26  ;;  %v7018_v26 = vpop.f32.mrf.mxu1  ;;  %v3727_v62 = vor.u32 %v4889_v0, %v3724_v52  ;;  %v3855_v19 = vor.u32 %v4921_v7, %v3852_v9  ;;  %v4460_v48 = vld [vmem:[%s7629_s2 + $0x7d8] sm:$0xf0]  ;;  %v4578_v52 = vld [vmem:[%s7630_s3 + $0xc0] sm:$0xf]  ;;  %v5021_v9 = vld [vmem:[%s7629_s2 + $0x62c] sm:$0xf] }
 0x1bd   :  { %2568 = vmatmul.bf16.vlgmr.msrb.gmra.mxu3 %v6393_v8 }
 0x1be   :  { %2639 = vmatpush.bf16.msrb.mxu1 %v4207_v17  ;;  %2612 = vmatpush.bf16.msra.mxu3 %v3967_v53  ;;  %v3900_v17 = vld [vmem:[%s7629_s2 + $0x378] sm:$0xf0]  ;;  %v4929_v53 = vld [vmem:[%s7629_s2 + $0x34c] sm:$0xf] }
 0x1bf   :  { %2602 = vmatpush.bf16.msra.mxu2 %v3791_v63 }
 0x1c0   :  { %2630 = vmatpush.bf16.msrb.mxu0 %v4015_v37  ;;  %v4159_v37 = vor.u32 %v4997_v32, %v4156_v33  ;;  %v4332_v32 = vld [vmem:[%s7629_s2 + $0x6d8] sm:$0xf0] }
 0x1c1   :  { %v4335_v58 = vor.u32 %v5041_v31, %v4332_v32  ;;  %v4268_v32 = vld [vmem:[%s7629_s2 + $0x658] sm:$0xf0] }
 0x1c2   :  { %2640 = vmatpush.bf16.msrb.mxu1 %v4191_v2  ;;  %2613 = vmatpush.bf16.msra.mxu3 %v3951_v21  ;;  %v5045_v2 = vld [vmem:[%s7629_s2 + $0x6ec] sm:$0xf] }
 0x1c3   :  { %2603 = vmatpush.bf16.msra.mxu2 %v3775_v3  ;;  %v4351_v23 = vor.u32 %v5045_v2, %v4348_v25  ;;  %v4594_v3 = vld [vmem:[%s7630_s3 + $0xe0] sm:$0xf]  ;;  %v4463_v25 = vor.u32 %v5073_v47, %v4460_v48 }
 0x1c4   :  { %2631 = vmatpush.bf16.msrb.mxu0 %v3999_v20  ;;  %v2337_v41 = vpop.f32.mrf.mxu1  ;;  %v4933_v20 = vld [vmem:[%s7629_s2 + $0x36c] sm:$0xf] }
 0x1c5   :  { %v3903_v51 = vor.u32 %v4933_v20, %v3900_v17  ;;  %v4586_v41 = vld [vmem:[%s7630_s3 + $0xd0] sm:$0xf]  ;;  %v4540_v20 = vld [vmem:[%s7630_s3 + $0x78] sm:$0xf0] }
 0x1c6   :  { %2641 = vmatpush.bf16.msrb.mxu1 %v4175_v27  ;;  %2614 = vmatpush.bf16.msra.mxu3 %v3935_v4  ;;  %v4111_v27 = vor.u32 %v4985_v28, %v4108_v54  ;;  %v5109_v4 = vld [vmem:[%s7630_s3 + $0xe4] sm:$0xf0]  ;;  %v5029_v28 = vld [vmem:[%s7629_s2 + $0x66c] sm:$0xf]  ;;  %v4284_v54 = vld [vmem:[%s7629_s2 + $0x678] sm:$0xf0] }
 0x1c7   :  { %2604 = vmatpush.bf16.msra.mxu2 %v3759_v16  ;;  %v4482_v16 = vld [vmem:[%s7630_s3] sm:$0xf] }
 0x1c8   :  { %2632 = vmatpush.bf16.msrb.mxu0 %v3983_v43  ;;  %v7091_v49 = vpop.f32.mrf.mxu0  ;;  %v3884_v43 = vld [vmem:[%s7629_s2 + $0x358] sm:$0xf0] }
 0x1c9   :  { %v3887_v63 = vor.u32 %v4929_v53, %v3884_v43  ;;  %v5105_v53 = vld [vmem:[%s7630_s3 + $0xc4] sm:$0xf0]  ;;  %v4532_v43 = vld [vmem:[%s7630_s3 + $0x68] sm:$0xf0] }
 0x1ca   :  { %2642 = vmatpush.bf16.msrb.mxu1 %v4159_v37  ;;  %2615 = vmatpush.bf16.msra.mxu3 %v3919_v38  ;;  %v3871_v37 = vor.u32 %v4925_v29, %v3868_v59  ;;  %v4595_v38 = vor.u32 %v5109_v4, %v4594_v3  ;;  %v5025_v59 = vld [vmem:[%s7629_s2 + $0x64c] sm:$0xf]  ;;  %v4562_v3 = vld [vmem:[%s7630_s3 + $0xa0] sm:$0xf]  ;;  %v5101_v4 = vld [vmem:[%s7630_s3 + $0xa4] sm:$0xf0] }
 0x1cb   :  { %2633 = vmatmul.bf16.vlgmr.msrb.gmra.mxu0 %v6089_v6  ;;  %v4140_v6 = vld [vmem:[%s7629_s2 + $0x558] sm:$0xf0]  ;;  %2605 = vmatpush.bf16.msra.mxu2 %v3743_v50  ;;  %v4483_v50 = vor.u32 %v5081_v39, %v4482_v16  ;;  %v4271_v7 = vor.u32 %v5025_v59, %v4268_v32  ;;  %v5086_v39 = vld [vmem:[%s7630_s3 + $0x34] sm:$0xf] }
 0x1cc   :  { %3083 = vmatpush.bf16.msra.mxu0 %v4539_v57  ;;  %v4143_v18 = vor.u32 %v4993_v10, %v4140_v6  ;;  %v5085_v57 = vld [vmem:[%s7630_s3 + $0x24] sm:$0xf0]  ;;  %v7129_v21 = vpop.f32.mrf.mxu1  ;;  %v5037_v10 = vld [vmem:[%s7629_s2 + $0x6ac] sm:$0xf]  ;;  %v4316_v6 = vld [vmem:[%s7629_s2 + $0x6b8] sm:$0xf0] }
 0x1cd   :  { %v4499_v33 = vor.u32 %v5085_v57, %v4498_v56  ;;  %v4319_v44 = vor.u32 %v5037_v10, %v4316_v6  ;;  %v4444_v56 = vld [vmem:[%s7629_s2 + $0x7b8] sm:$0xf0]  ;;  %v4579_v57 = vor.u32 %v5105_v53, %v4578_v52  ;;  %v2323_v10 = vadd.f32 %v6840_v14, %v6691_v30  ;;  %v4554_v30 = vld [vmem:[%s7630_s3 + $0x90] sm:$0xf]  ;;  %v5099_v14 = vld [vmem:[%s7630_s3 + $0x94] sm:$0xf0] }
 0x1ce   :  { %2643 = vmatpush.bf16.msrb.mxu1 %v4143_v18  ;;  %2616 = vmatpush.bf16.msra.mxu3 %v3903_v51  ;;  %v5107_v18 = vld [vmem:[%s7630_s3 + $0xd4] sm:$0xf0]  ;;  %v4252_v6 = vld [vmem:[%s7629_s2 + $0x638] sm:$0xf0]  ;;  %v4555_v47 = vor.u32 %v5099_v14, %v4554_v30  ;;  %v5110_v53 = vld [vmem:[%s7630_s3 + $0xf4] sm:$0xf] }
 0x1cf   :  { %2606 = vmatpush.bf16.msra.mxu2 %v3727_v62  ;;  %v4587_v51 = vor.u32 %v5107_v18, %v4586_v41  ;;  %v5103_v62 = vld [vmem:[%s7630_s3 + $0xb4] sm:$0xf0]  ;;  %v4508_v41 = vld [vmem:[%s7630_s3 + $0x38] sm:$0xf0] }
 0x1d0   :  { %3084 = vmatpush.bf16.msra.mxu0 %v4531_v34  ;;  %v4490_v34 = vld [vmem:[%s7630_s3 + $0x10] sm:$0xf]  ;;  %v2428_v5 = vpop.f32.mrf.mxu0  ;;  %v4492_v32 = vld [vmem:[%s7630_s3 + $0x18] sm:$0xf0] }
 0x1d1   :  { %v4491_v13 = vor.u32 %v5083_v36, %v4490_v34  ;;  %v4428_v34 = vld [vmem:[%s7629_s2 + $0x798] sm:$0xf0]  ;;  %v5088_v5 = vld [vmem:[%s7630_s3 + $0x44] sm:$0xf] }
 0x1d2   :  { %2644 = vmatpush.bf16.msrb.mxu1 %v4127_v24  ;;  %2617 = vmatpush.bf16.msra.mxu3 %v3887_v63  ;;  %v5092_v24 = vld [vmem:[%s7630_s3 + $0x64] sm:$0xf]  ;;  %v5090_v63 = vld [vmem:[%s7630_s3 + $0x54] sm:$0xf] }
 0x1d3   :  { %2651 = vmatpush.bf16.msrb.mxu2 %v4351_v23  ;;  %v4535_v60 = vor.u32 %v5092_v24, %v4532_v43  ;;  %v4524_v23 = vld [vmem:[%s7630_s3 + $0x58] sm:$0xf0]  ;;  %v2348_v31 = vpop.f32.mrf.mxu2 }
 0x1d4   :  { %3085 = vmatpush.bf16.msra.mxu0 %v4523_v11  ;;  %v5077_v11 = vld [vmem:[%s7629_s2 + $0x7ec] sm:$0xf]  ;;  %2607 = vmatmul.bf16.vlgmr.msra.gmra.mxu2 %v5852_v22  ;;  %v5094_v22 = vld [vmem:[%s7630_s3 + $0x74] sm:$0xf]  ;;  %v2389_v17 = vpop.f32.mrf.mxu1  ;;  %v4527_v36 = vor.u32 %v5090_v63, %v4524_v23  ;;  %v4604_v24 = vld [vmem:[%s7630_s3 + $0xf8] sm:$0xf0] }
 0x1d5   :  { %v4479_v45 = vor.u32 %v5077_v11, %v4476_v12  ;;  %v4543_v0 = vor.u32 %v5094_v22, %v4540_v20  ;;  %v5061_v11 = vld [vmem:[%s7629_s2 + $0x76c] sm:$0xf]  ;;  %v4412_v12 = vld [vmem:[%s7629_s2 + $0x778] sm:$0xf0]  ;;  %v4255_v22 = vor.u32 %v5021_v9, %v4252_v6  ;;  %v5108_v63 = vld [vmem:[%s7630_s3 + $0xe4] sm:$0xf] }
 0x1d6   :  { %2645 = vmatpush.bf16.msrb.mxu1 %v4111_v27  ;;  %2618 = vmatpush.bf16.msra.mxu3 %v3871_v37  ;;  %v4287_v27 = vor.u32 %v5029_v28, %v4284_v54  ;;  %v4516_v37 = vld [vmem:[%s7630_s3 + $0x48] sm:$0xf0]  ;;  %v4415_v20 = vor.u32 %v5061_v11, %v4412_v12  ;;  %v5084_v28 = vld [vmem:[%s7630_s3 + $0x24] sm:$0xf] }
 0x1d7   :  { %2652 = vmatpush.bf16.msrb.mxu2 %v4335_v58  ;;  %v4519_v16 = vor.u32 %v5088_v5, %v4516_v37  ;;  %v5017_v17 = vld [vmem:[%s7629_s2 + $0x60c] sm:$0xf]  ;;  %v5106_v5 = vld [vmem:[%s7630_s3 + $0xd4] sm:$0xf]  ;;  %v4588_v37 = vld [vmem:[%s7630_s3 + $0xd8] sm:$0xf0] }
 0x1d8   :  { %3086 = vmatpush.bf16.msra.mxu0 %v4515_v46  ;;  %v5033_v46 = vld [vmem:[%s7629_s2 + $0x68c] sm:$0xf]  ;;  %v7367_v9 = vld [vmem:[%s7632_s5 + $0x1] sm:$0xf]  ;;  %v4591_v6 = vor.u32 %v5106_v5, %v4588_v37  ;;  %v4618_v37 = vld [vmem:[%s7630_s3 + $0x110] sm:$0xf] }
 0x1d9   :  { %2646 = vmatmul.bf16.vlgmr.msrb.gmra.mxu1 %v6223_v42  ;;  %v4300_v42 = vld [vmem:[%s7629_s2 + $0x698] sm:$0xf0]  ;;  %v4500_v54 = vld [vmem:[%s7630_s3 + $0x28] sm:$0xf0]  ;;  %v5104_v12 = vld [vmem:[%s7630_s3 + $0xc4] sm:$0xf] }
 0x1da   :  { %3096 = vmatpush.bf16.msra.mxu1 %v4603_v35  ;;  %2619 = vmatpush.bf16.msra.mxu3 %v3855_v19  ;;  %v4303_v2 = vor.u32 %v5033_v46, %v4300_v42  ;;  %v4571_v35 = vor.u32 %v5103_v62, %v4570_v61  ;;  %v5057_v46 = vld [vmem:[%s7629_s2 + $0x74c] sm:$0xf]  ;;  %v4396_v42 = vld [vmem:[%s7629_s2 + $0x758] sm:$0xf0]  ;;  %v4503_v62 = vor.u32 %v5084_v28, %v4500_v54  ;;  %v5096_v54 = vld [vmem:[%s7630_s3 + $0x84] sm:$0xf] }
 0x1db   :  { %2653 = vmatpush.bf16.msrb.mxu2 %v4319_v44  ;;  %v2350_v44 = vpop.f32.mrf.mxu2  ;;  %v4596_v23 = vld [vmem:[%s7630_s3 + $0xe8] sm:$0xf0] }
 0x1dc   :  { %3087 = vmatpush.bf16.msra.mxu0 %v4507_v55  ;;  %v5069_v55 = vld [vmem:[%s7629_s2 + $0x7ac] sm:$0xf] }
 0x1dd   :  { %2620 = vmatmul.bf16.vlgmr.msra.gmra.mxu3 %v5900_v40  ;;  %v7242_v40 = vpop.f32.mrf.mxu1  ;;  %v4447_v29 = vor.u32 %v5069_v55, %v4444_v56  ;;  %v2361_v48 = vpop.f32.mrf.mxu3  ;;  %v4380_v56 = vld [vmem:[%s7629_s2 + $0x738] sm:$0xf0]  ;;  %v4564_v44 = vld [vmem:[%s7630_s3 + $0xa8] sm:$0xf0] }
 0x1de   :  { %3097 = vmatpush.bf16.msra.mxu1 %v4595_v38  ;;  %2664 = vmatpush.bf16.msrb.mxu3 %v4479_v45  ;;  %v2336_v38 = vadd.f32 %v7018_v26, %v2323_v10  ;;  %v4236_v45 = vld [vmem:[%s7629_s2 + $0x618] sm:$0xf0]  ;;  %v974_v10 = vperm.slane %v7367_v9, 1 }
 0x1df   :  { %2654 = vmatpush.bf16.msrb.mxu2 %v4303_v2  ;;  %v4239_v43 = vor.u32 %v5017_v17, %v4236_v45  ;;  %v4399_v2 = vor.u32 %v5057_v46, %v4396_v42 }
 0x1e0   :  { %3088 = vmatpush.bf16.msra.mxu0 %v4499_v33  ;;  %v5065_v33 = vld [vmem:[%s7629_s2 + $0x78c] sm:$0xf]  ;;  %v2349_v26 = vadd.f32 %v2348_v31, %v2336_v38  ;;  %v5082_v31 = vld [vmem:[%s7630_s3 + $0x14] sm:$0xf] }
 0x1e1   :  { %v4431_v58 = vor.u32 %v5065_v33, %v4428_v34  ;;  %v5049_v34 = vld [vmem:[%s7629_s2 + $0x70c] sm:$0xf] }
 0x1e2   :  { %3098 = vmatpush.bf16.msra.mxu1 %v4587_v51  ;;  %2665 = vmatpush.bf16.msrb.mxu3 %v4463_v25  ;;  %v4546_v51 = vld [vmem:[%s7630_s3 + $0x80] sm:$0xf]  ;;  %v2362_v52 = vadd.f32 %v2361_v48, %v2349_v26  ;;  %v5053_v25 = vld [vmem:[%s7629_s2 + $0x72c] sm:$0xf]  ;;  %v5100_v26 = vld [vmem:[%s7630_s3 + $0xa4] sm:$0xf] }
 0x1e3   :  { %2655 = vmatpush.bf16.msrb.mxu2 %v4287_v27  ;;  %v4383_v59 = vor.u32 %v5053_v25, %v4380_v56  ;;  %v2400_v33 = vpop.f32.mrf.mxu2  ;;  %v4658_v48 = vld [vmem:[%s7630_s3 + $0x160] sm:$0xf] }
 0x1e4   :  { %3089 = vmatpush.bf16.msra.mxu0 %v4491_v13  ;;  %v4563_v13 = vor.u32 %v5101_v4, %v4562_v3  ;;  %vm2677_vm8 = vcmp.gt.f32.partialorder %v2362_v52, 0.0  ;;  %v2681_v55 = vmul.f32 0.02, %v2362_v52  ;;  %v4599_v3 = vor.u32 %v5108_v63, %v4596_v23  ;;  %v5121_v63 = vld [vmem:[%s7630_s3 + $0x144] sm:$0xf0] }
 0x1e5   :  { %v2441_v19 = vpop.f32.mrf.mxu1  ;;  %v4495_v4 = vor.u32 %v5082_v31, %v4492_v32  ;;  %v5119_v31 = vld [vmem:[%s7630_s3 + $0x134] sm:$0xf0] }
 0x1e6   :  { %3099 = vmatpush.bf16.msra.mxu1 %v4579_v57  ;;  %2666 = vmatpush.bf16.msrb.mxu3 %v4447_v29  ;;  %v2685_v61 = vsel %vm2677_vm8, %v2362_v52, %v2681_v55  ;;  %v4572_v19 = vld [vmem:[%s7630_s3 + $0xb8] sm:$0xf0]  ;;  %v4548_v55 = vld [vmem:[%s7630_s3 + $0x88] sm:$0xf0] }
 0x1e7   :  { %2656 = vmatpush.bf16.msrb.mxu2 %v4271_v7  ;;  %v2689_v27 = vpack.c.bf16 %v2685_v61, %v2685_v61  ;;  %v4556_v52 = vld [vmem:[%s7630_s3 + $0x98] sm:$0xf0] }
 0x1e8   :  { %3090 = vmatpush.bf16.msra.mxu0 %v4483_v50  ;;  %v7295_v18 = vpop.f32.mrf.mxu0  ;;  %v4511_v50 = vor.u32 %v5086_v39, %v4508_v41  ;;  %v5102_v41 = vld [vmem:[%s7630_s3 + $0xb4] sm:$0xf] }
 0x1ea   :  { %3100 = vmatpush.bf16.msra.mxu1 %v4571_v35  ;;  %2667 = vmatpush.bf16.msrb.mxu3 %v4431_v58  ;;  %v4364_v35 = vld [vmem:[%s7629_s2 + $0x718] sm:$0xf0]  ;;  %v5080_v58 = vld [vmem:[%s7630_s3 + $0x4] sm:$0xf] }
 0x1eb   :  { %2657 = vmatpush.bf16.msrb.mxu2 %v4255_v22  ;;  %3091 = vmatmul.bf16.vlgmr.msra.gmra.mxu0 %v2689_v27  ;;  %v4367_v7 = vor.u32 %v5049_v34, %v4364_v35  ;;  %v2402_v30 = vpop.f32.mrf.mxu2  ;;  %v4626_v35 = vld [vmem:[%s7630_s3 + $0x120] sm:$0xf] }
 0x1ec   :  { %3135 = vmatpush.bf16.msrb.mxu0 %v4543_v0  ;;  %v5097_v0 = vld [vmem:[%s7630_s3 + $0x84] sm:$0xf0] }
 0x1ed   :  { %v4547_v57 = vor.u32 %v5097_v0, %v4546_v51  ;;  %v5098_v0 = vld [vmem:[%s7630_s3 + $0x94] sm:$0xf] }
 0x1ee   :  { %3101 = vmatpush.bf16.msra.mxu1 %v4563_v13  ;;  %2668 = vmatpush.bf16.msrb.mxu3 %v4415_v20  ;;  %v4580_v13 = vld [vmem:[%s7630_s3 + $0xc8] sm:$0xf0] }
 0x1ef   :  { %2658 = vmatpush.bf16.msrb.mxu2 %v4239_v43  ;;  %v4583_v38 = vor.u32 %v5104_v12, %v4580_v13  ;;  %v4559_v43 = vor.u32 %v5098_v0, %v4556_v52  ;;  %v5126_v12 = vld [vmem:[%s7630_s3 + $0x174] sm:$0xf]  ;;  %v4668_v13 = vld [vmem:[%s7630_s3 + $0x178] sm:$0xf0]  ;;  %v975_v52 = vperm.slane %v7367_v9, 2 }
 0x1f0   :  { %3136 = vmatpush.bf16.msrb.mxu0 %v4535_v60  ;;  %v4607_v60 = vor.u32 %v5110_v53, %v4604_v24  ;;  %v2480_v29 = vpop.f32.mrf.mxu0 }
 0x1f2   :  { %3102 = vmatpush.bf16.msra.mxu1 %v4555_v47  ;;  %2669 = vmatpush.bf16.msrb.mxu3 %v4399_v2  ;;  %v7385_v20 = vpop.f32.mrf.mxu1  ;;  %v4567_v47 = vor.u32 %v5100_v26, %v4564_v44  ;;  %v4650_v2 = vld [vmem:[%s7630_s3 + $0x150] sm:$0xf]  ;;  %v5120_v26 = vld [vmem:[%s7630_s3 + $0x144] sm:$0xf]  ;;  %v4644_v44 = vld [vmem:[%s7630_s3 + $0x148] sm:$0xf0] }
 0x1f3   :  { %2659 = vmatmul.bf16.vlgmr.msrb.gmra.mxu2 %v6335_v1  ;;  %v4484_v1 = vld [vmem:[%s7630_s3 + $0x8] sm:$0xf0] }
 0x1f4   :  { %3137 = vmatpush.bf16.msrb.mxu0 %v4527_v36  ;;  %v2363_v36 = vpop.f32.mrf.mxu3  ;;  %v4487_v11 = vor.u32 %v5080_v58, %v4484_v1  ;;  %v2452_v46 = vpop.f32.mrf.mxu2 }
 0x1f5   :  { %v5117_v36 = vld [vmem:[%s7630_s3 + $0x124] sm:$0xf0] }
 0x1f6   :  { %3103 = vmatpush.bf16.msra.mxu1 %v4547_v57  ;;  %2670 = vmatpush.bf16.msrb.mxu3 %v4383_v59  ;;  %v4634_v59 = vld [vmem:[%s7630_s3 + $0x130] sm:$0xf] }
 0x1f7   :  { %v4635_v34 = vor.u32 %v5119_v31, %v4634_v59  ;;  %v4714_v31 = vld [vmem:[%s7630_s3 + $0x1d0] sm:$0xf] }
 0x1f8   :  { %3138 = vmatpush.bf16.msrb.mxu0 %v4519_v16  ;;  %v2375_v16 = vadd.f32 %v6951_v15, %v974_v10  ;;  %v4575_v15 = vor.u32 %v5102_v41, %v4572_v19  ;;  %v4610_v10 = vld [vmem:[%s7630_s3 + $0x100] sm:$0xf]  ;;  %v5122_v19 = vld [vmem:[%s7630_s3 + $0x154] sm:$0xf] }
 0x1fa   :  { %3148 = vmatpush.bf16.msrb.mxu1 %v4607_v60  ;;  %2671 = vmatpush.bf16.msrb.mxu3 %v4367_v7  ;;  %v2388_v39 = vadd.f32 %v7129_v21, %v2375_v16  ;;  %v4666_v21 = vld [vmem:[%s7630_s3 + $0x170] sm:$0xf]  ;;  %v2493_v24 = vpop.f32.mrf.mxu1  ;;  %v5115_v7 = vld [vmem:[%s7630_s3 + $0x114] sm:$0xf0]  ;;  %v4671_v16 = vor.u32 %v5126_v12, %v4668_v13  ;;  %v4690_v13 = vld [vmem:[%s7630_s3 + $0x1a0] sm:$0xf] }
 0x1fb   :  { %v4619_v58 = vor.u32 %v5115_v7, %v4618_v37  ;;  %v2479_v24 = vadd.f32 %v7295_v18, %v975_v52  ;;  %v4612_v18 = vld [vmem:[%s7630_s3 + $0x108] sm:$0xf0] }
 0x1fc   :  { %3139 = vmatpush.bf16.msrb.mxu0 %v4511_v50  ;;  %v2413_v14 = vpop.f32.mrf.mxu3  ;;  %v2401_v22 = vadd.f32 %v2400_v33, %v2388_v39  ;;  %v5125_v50 = vld [vmem:[%s7630_s3 + $0x164] sm:$0xf0]  ;;  %v2454_v60 = vpop.f32.mrf.mxu2 }
 0x1fd   :  { %2672 = vmatmul.bf16.vlgmr.msrb.gmra.mxu3 %v6393_v8  ;;  %v5127_v8 = vld [vmem:[%s7630_s3 + $0x174] sm:$0xf0]  ;;  %v4659_v53 = vor.u32 %v5125_v50, %v4658_v48  ;;  %v5116_v50 = vld [vmem:[%s7630_s3 + $0x124] sm:$0xf]  ;;  %v4730_v60 = vld [vmem:[%s7630_s3 + $0x1f0] sm:$0xf] }
 0x1fe   :  { %3149 = vmatpush.bf16.msrb.mxu1 %v4599_v3  ;;  %v2414_v17 = vadd.f32 %v2413_v14, %v2401_v22  ;;  %v4667_v45 = vor.u32 %v5127_v8, %v4666_v21  ;;  %v5124_v14 = vld [vmem:[%s7630_s3 + $0x164] sm:$0xf]  ;;  %v4652_v22 = vld [vmem:[%s7630_s3 + $0x158] sm:$0xf0] }
 0x1ff   :  { %v4655_v21 = vor.u32 %v5122_v19, %v4652_v22 }
 0x200   :  { %3140 = vmatpush.bf16.msrb.mxu0 %v4503_v62  ;;  %3109 = vmatpush.bf16.msra.mxu2 %v4667_v45  ;;  %v2427_v51 = vadd.f32 %v7091_v49, %v2414_v17  ;;  %v5123_v49 = vld [vmem:[%s7630_s3 + $0x154] sm:$0xf0]  ;;  %v4551_v62 = vor.u32 %v5096_v54, %v4548_v55  ;;  %v4647_v45 = vor.u32 %v5120_v26, %v4644_v44  ;;  %v5142_v26 = vld [vmem:[%s7630_s3 + $0x1f4] sm:$0xf]  ;;  %v4732_v44 = vld [vmem:[%s7630_s3 + $0x1f8] sm:$0xf0] }
 0x201   :  { %v4651_v56 = vor.u32 %v5123_v49, %v4650_v2  ;;  %v4620_v2 = vld [vmem:[%s7630_s3 + $0x118] sm:$0xf0] }
 0x202   :  { %3150 = vmatpush.bf16.msrb.mxu1 %v4591_v6  ;;  %v2440_v25 = vadd.f32 %v7242_v40, %v2427_v51  ;;  %v4642_v40 = vld [vmem:[%s7630_s3 + $0x140] sm:$0xf]  ;;  %v5113_v6 = vld [vmem:[%s7630_s3 + $0x104] sm:$0xf0]  ;;  %v4628_v51 = vld [vmem:[%s7630_s3 + $0x128] sm:$0xf0] }
 0x203   :  { %v4631_v0 = vor.u32 %v5116_v50, %v4628_v51  ;;  %v5138_v51 = vld [vmem:[%s7630_s3 + $0x1d4] sm:$0xf] }
 0x204   :  { %3141 = vmatpush.bf16.msrb.mxu0 %v4495_v4  ;;  %v2415_v42 = vpop.f32.mrf.mxu3  ;;  %3110 = vmatpush.bf16.msra.mxu2 %v4659_v53  ;;  %v2453_v57 = vadd.f32 %v2452_v46, %v2440_v25  ;;  %v4627_v4 = vor.u32 %v5117_v36, %v4626_v35  ;;  %v5118_v46 = vld [vmem:[%s7630_s3 + $0x134] sm:$0xf]  ;;  %v2492_v25 = vadd.f32 %v7385_v20, %v2479_v24  ;;  %v5143_v20 = vld [vmem:[%s7630_s3 + $0x1f4] sm:$0xf0] }
 0x205   :  { %v4636_v42 = vld [vmem:[%s7630_s3 + $0x138] sm:$0xf0] }
 0x206   :  { %3151 = vmatpush.bf16.msrb.mxu1 %v4583_v38  ;;  %v4660_v38 = vld [vmem:[%s7630_s3 + $0x168] sm:$0xf0]  ;;  %v4639_v48 = vor.u32 %v5118_v46, %v4636_v42  ;;  %v5140_v46 = vld [vmem:[%s7630_s3 + $0x1e4] sm:$0xf] }
 0x207   :  { %v4663_v39 = vor.u32 %v5124_v14, %v4660_v38  ;;  %v4724_v42 = vld [vmem:[%s7630_s3 + $0x1e8] sm:$0xf0] }
 0x208   :  { %3142 = vmatpush.bf16.msrb.mxu0 %v4487_v11  ;;  %v7419_v28 = vpop.f32.mrf.mxu0  ;;  %3111 = vmatpush.bf16.msra.mxu2 %v4651_v56  ;;  %v4611_v11 = vor.u32 %v5113_v6, %v4610_v10  ;;  %v5112_v56 = vld [vmem:[%s7630_s3 + $0x104] sm:$0xf]  ;;  %v5135_v10 = vld [vmem:[%s7630_s3 + $0x1b4] sm:$0xf0] }
 0x20a   :  { %3152 = vmatpush.bf16.msrb.mxu1 %v4575_v15 }
 0x20b   :  { %3143 = vmatmul.bf16.vlgmr.msrb.gmra.mxu0 %v2689_v27  ;;  %v4643_v27 = vor.u32 %v5121_v63, %v4642_v40  ;;  %v4722_v63 = vld [vmem:[%s7630_s3 + $0x1e0] sm:$0xf] }
 0x20c   :  { %v2465_v61 = vpop.f32.mrf.mxu3 }
 0x20d   :  { %v2466_v23 = vadd.f32 %v2465_v61, %v2453_v57  ;;  %3112 = vmatpush.bf16.msra.mxu2 %v4643_v27  ;;  %v4615_v57 = vor.u32 %v5112_v56, %v4612_v18  ;;  %v5132_v18 = vld [vmem:[%s7630_s3 + $0x1a4] sm:$0xf] }
 0x20e   :  { %3153 = vmatpush.bf16.msrb.mxu1 %v4567_v47 }
 0x20f   :  { %vm2678_vm9 = vcmp.gt.f32.partialorder %v2466_v23, 0.0  ;;  %v2682_v29 = vmul.f32 0.02, %v2466_v23 }
 0x210   :  { %v2532_v33 = vpop.f32.mrf.mxu0 }
 0x211   :  { %v2686_v32 = vsel %vm2678_vm9, %v2466_v23, %v2682_v29  ;;  %3113 = vmatpush.bf16.msra.mxu2 %v4635_v34  ;;  %v5141_v23 = vld [vmem:[%s7630_s3 + $0x1e4] sm:$0xf0] }
 0x212   :  { %3154 = vmatpush.bf16.msrb.mxu1 %v4559_v43  ;;  %v2690_v3 = vpack.c.bf16 %v2686_v32, %v2686_v32  ;;  %v7451_v1 = vpop.f32.mrf.mxu1  ;;  %v5114_v43 = vld [vmem:[%s7630_s3 + $0x114] sm:$0xf]  ;;  %v4723_v29 = vor.u32 %v5141_v23, %v4722_v63  ;;  %v5139_v32 = vld [vmem:[%s7630_s3 + $0x1d4] sm:$0xf0] }
 0x213   :  { %v4623_v49 = vor.u32 %v5114_v43, %v4620_v2  ;;  %v4715_v35 = vor.u32 %v5139_v32, %v4714_v31  ;;  %v5136_v43 = vld [vmem:[%s7630_s3 + $0x1c4] sm:$0xf]  ;;  %v4708_v2 = vld [vmem:[%s7630_s3 + $0x1c8] sm:$0xf0] }
 0x214   :  { %v2467_v5 = vpop.f32.mrf.mxu3  ;;  %3104 = vmatmul.bf16.vlgmr.msra.gmra.mxu1 %v2690_v3 }
 0x215   :  { %3114 = vmatpush.bf16.msra.mxu2 %v4627_v4  ;;  %v4706_v4 = vld [vmem:[%s7630_s3 + $0x1c0] sm:$0xf]  ;;  %v5137_v5 = vld [vmem:[%s7630_s3 + $0x1c4] sm:$0xf0] }
 0x216   :  { %3155 = vmatpush.bf16.msrb.mxu1 %v4551_v62  ;;  %v4731_v62 = vor.u32 %v5143_v20, %v4730_v60  ;;  %v4707_v7 = vor.u32 %v5137_v5, %v4706_v4  ;;  %v976_v20 = vperm.slane %v7367_v9, 3  ;;  %v5128_v9 = vld [vmem:[%s7630_s3 + $0x184] sm:$0xf] }
 0x217   :  { %v2504_v30 = vpop.f32.mrf.mxu2 }
 0x218   :  { %v2505_v54 = vadd.f32 %v2504_v30, %v2492_v25  ;;  %3122 = vmatpush.bf16.msra.mxu3 %v4731_v62  ;;  %v5134_v25 = vld [vmem:[%s7630_s3 + $0x1b4] sm:$0xf] }
 0x219   :  { %3115 = vmatpush.bf16.msra.mxu2 %v4619_v58  ;;  %v5130_v62 = vld [vmem:[%s7630_s3 + $0x194] sm:$0xf] }
 0x21a   :  { %v2545_v41 = vpop.f32.mrf.mxu1 }
 0x21b   :  { %v5131_v41 = vld [vmem:[%s7630_s3 + $0x194] sm:$0xf0] }
 0x21c   :  { %3123 = vmatpush.bf16.msra.mxu3 %v4723_v29 }
 0x21d   :  { %3116 = vmatpush.bf16.msra.mxu2 %v4611_v11 }
 0x21f   :  { %v2506_v8 = vpop.f32.mrf.mxu2 }
 0x220   :  { %v2517_v17 = vpop.f32.mrf.mxu3  ;;  %3124 = vmatpush.bf16.msra.mxu3 %v4715_v35  ;;  %v5129_v8 = vld [vmem:[%s7630_s3 + $0x184] sm:$0xf0] }
 0x221   :  { %3161 = vmatpush.bf16.msrb.mxu2 %v4671_v16  ;;  %v2518_v61 = vadd.f32 %v2517_v17, %v2505_v54  ;;  %v5133_v16 = vld [vmem:[%s7630_s3 + $0x1a4] sm:$0xf0]  ;;  %v4700_v54 = vld [vmem:[%s7630_s3 + $0x1b8] sm:$0xf0] }
 0x222   :  { %v4691_v14 = vor.u32 %v5133_v16, %v4690_v13  ;;  %v4703_v56 = vor.u32 %v5134_v25, %v4700_v54 }
 0x223   :  { %v2531_v27 = vadd.f32 %v7419_v28, %v2518_v61 }
 0x224   :  { %3156 = vmatmul.bf16.vlgmr.msrb.gmra.mxu1 %v2690_v3  ;;  %3125 = vmatpush.bf16.msra.mxu3 %v4707_v7 }
 0x225   :  { %3162 = vmatpush.bf16.msrb.mxu2 %v4663_v39  ;;  %v2544_v33 = vadd.f32 %v7451_v1, %v2531_v27  ;;  %v4698_v1 = vld [vmem:[%s7630_s3 + $0x1b0] sm:$0xf] }
 0x226   :  { %v4699_v12 = vor.u32 %v5135_v10, %v4698_v1  ;;  %v4682_v39 = vld [vmem:[%s7630_s3 + $0x190] sm:$0xf] }
 0x227   :  { %v4683_v19 = vor.u32 %v5131_v41, %v4682_v39 }
 0x228   :  { %v7477_v15 = vpop.f32.mrf.mxu0  ;;  %v2519_v53 = vpop.f32.mrf.mxu3  ;;  %3126 = vmatpush.bf16.msra.mxu3 %v4699_v12 }
 0x229   :  { %3163 = vmatpush.bf16.msrb.mxu2 %v4655_v21  ;;  %v4674_v21 = vld [vmem:[%s7630_s3 + $0x180] sm:$0xf]  ;;  %v2583_v23 = vadd.f32 %v7477_v15, %v976_v20 }
 0x22a   :  { %v4675_v17 = vor.u32 %v5129_v8, %v4674_v21  ;;  %v5159_v21 = vld [vmem:[#allocation5 + $0x78] sm:$0xff]  ;;  %v5150_v8 = vld [vmem:[#allocation5 + $0x30] sm:$0xff] }
 0x22b   :  { %3340 = vmatpush.bf16.msra.mxu1 %v5159_v21 }
 0x22c   :  { %3127 = vmatpush.bf16.msra.mxu3 %v4691_v14 }
 0x22d   :  { %3164 = vmatpush.bf16.msrb.mxu2 %v4647_v45  ;;  %v4735_v45 = vor.u32 %v5142_v26, %v4732_v44  ;;  %v5149_v26 = vld [vmem:[#allocation5 + $0x28] sm:$0xff] }
 0x230   :  { %v2584_v47 = vpop.f32.mrf.mxu0  ;;  %3128 = vmatpush.bf16.msra.mxu3 %v4683_v19 }
 0x231   :  { %3165 = vmatpush.bf16.msrb.mxu2 %v4639_v48  ;;  %v4727_v47 = vor.u32 %v5140_v46, %v4724_v42  ;;  %v5147_v46 = vld [vmem:[#allocation5 + $0x18] sm:$0xff] }
 0x234   :  { %3129 = vmatpush.bf16.msra.mxu3 %v4675_v17  ;;  %v5158_v17 = vld [vmem:[#allocation5 + $0x70] sm:$0xff] }
 0x235   :  { %3166 = vmatpush.bf16.msrb.mxu2 %v4631_v0  ;;  %v4716_v0 = vld [vmem:[%s7630_s3 + $0x1d8] sm:$0xf0]  ;;  %3341 = vmatpush.bf16.msra.mxu1 %v5158_v17 }
 0x236   :  { %v7506_v55 = vpop.f32.mrf.mxu1  ;;  %v4719_v52 = vor.u32 %v5138_v51, %v4716_v0  ;;  %v5145_v51 = vld [vmem:[#allocation5 + $0x8] sm:$0xff] }
 0x237   :  { %v2556_v40 = vpop.f32.mrf.mxu2  ;;  %v2596_v27 = vadd.f32 %v7506_v55, %v2583_v23  ;;  %v5157_v0 = vld [vmem:[#allocation5 + $0x68] sm:$0xff] }
 0x238   :  { %v2557_v36 = vadd.f32 %v2556_v40, %v2544_v33  ;;  %3174 = vmatpush.bf16.msrb.mxu3 %v4735_v45  ;;  %v4684_v40 = vld [vmem:[%s7630_s3 + $0x198] sm:$0xf0]  ;;  %v5148_v45 = vld [vmem:[#allocation5 + $0x20] sm:$0xff] }
 0x239   :  { %3167 = vmatpush.bf16.msrb.mxu2 %v4623_v49  ;;  %v4711_v49 = vor.u32 %v5136_v43, %v4708_v2  ;;  %v4687_v63 = vor.u32 %v5130_v62, %v4684_v40  ;;  %3342 = vmatpush.bf16.msra.mxu1 %v5157_v0  ;;  %v5154_v43 = vld [vmem:[#allocation5 + $0x50] sm:$0xff]  ;;  %v5153_v2 = vld [vmem:[#allocation5 + $0x48] sm:$0xff] }
 0x23c   :  { %3175 = vmatpush.bf16.msrb.mxu3 %v4727_v47  ;;  %v5146_v47 = vld [vmem:[#allocation5 + $0x10] sm:$0xff] }
 0x23d   :  { %3168 = vmatpush.bf16.msrb.mxu2 %v4615_v57  ;;  %v4692_v57 = vld [vmem:[%s7630_s3 + $0x1a8] sm:$0xf0] }
 0x23e   :  { %v2597_v59 = vpop.f32.mrf.mxu1  ;;  %v4695_v60 = vor.u32 %v5132_v18, %v4692_v57 }
 0x23f   :  { %v2558_v3 = vpop.f32.mrf.mxu2  ;;  %v4676_v59 = vld [vmem:[%s7630_s3 + $0x188] sm:$0xf0] }
 0x240   :  { %v2569_v28 = vpop.f32.mrf.mxu3  ;;  %3176 = vmatpush.bf16.msrb.mxu3 %v4719_v52  ;;  %v4679_v32 = vor.u32 %v5128_v9, %v4676_v59  ;;  %v5144_v52 = vld [vmem:[#allocation5] sm:$0xff] }
 0x241   :  { %v2570_v37 = vadd.f32 %v2569_v28, %v2557_v36 }
 0x243   :  { %vm2679_vm10 = vcmp.gt.f32.partialorder %v2570_v37, 0.0  ;;  %v2683_v58 = vmul.f32 0.02, %v2570_v37 }
 0x244   :  { %3177 = vmatpush.bf16.msrb.mxu3 %v4711_v49  ;;  %v5152_v49 = vld [vmem:[#allocation5 + $0x40] sm:$0xff] }
 0x245   :  { %v2687_v6 = vsel %vm2679_vm10, %v2570_v37, %v2683_v58 }
 0x246   :  { %v2691_v30 = vpack.c.bf16 %v2687_v6, %v2687_v6  ;;  %v2757_v6 = vld [vmem:[%s7632_s5 + $0x5] sm:$0x3] }
 0x247   :  { %v2759_v12 = vperm.slane %v2757_v6, 0  ;;  %v2760_v14 = vperm.slane %v2757_v6, 1 }
 0x248   :  { %v7534_v34 = vpop.f32.mrf.mxu0  ;;  %v2571_v38 = vpop.f32.mrf.mxu3  ;;  %3117 = vmatmul.bf16.vlgmr.msra.gmra.mxu2 %v2691_v30  ;;  %3178 = vmatpush.bf16.msrb.mxu3 %v4703_v56 }
 0x24c   :  { %3179 = vmatpush.bf16.msrb.mxu3 %v4695_v60 }
 0x250   :  { %v2636_v11 = vpop.f32.mrf.mxu0  ;;  %3180 = vmatpush.bf16.msrb.mxu3 %v4687_v63 }
 0x254   :  { %3181 = vmatpush.bf16.msrb.mxu3 %v4679_v32 }
 0x256   :  { %v2647_v22 = vpop.f32.mrf.mxu1 }
 0x257   :  { %v2608_v48 = vpop.f32.mrf.mxu2 }
 0x258   :  { %3169 = vmatmul.bf16.vlgmr.msrb.gmra.mxu2 %v2691_v30  ;;  %v2609_v31 = vadd.f32 %v2608_v48, %v2596_v27 }
 0x25e   :  { %v2649_v50 = vpop.f32.mrf.mxu1 }
 0x25f   :  { %v2610_v53 = vpop.f32.mrf.mxu2 }
 0x260   :  { %v2621_v24 = vpop.f32.mrf.mxu3  ;;  %v5156_v53 = vld [vmem:[#allocation5 + $0x60] sm:$0xff] }
 0x261   :  { %v2622_v33 = vadd.f32 %v2621_v24, %v2609_v31  ;;  %3343 = vmatpush.bf16.msra.mxu1 %v5156_v53  ;;  %v5155_v24 = vld [vmem:[#allocation5 + $0x58] sm:$0xff]  ;;  %v5165_v31 = vld [vmem:[%s7632_s5 + $0x7] ss:$0 sm:$0xff] }
 0x263   :  { %v2635_v36 = vadd.f32 %v7534_v34, %v2622_v33 }
 0x265   :  { %v2648_v3 = vadd.f32 %v2647_v22, %v2635_v36  ;;  %v5151_v22 = vld [vmem:[#allocation5 + $0x38] sm:$0xff]  ;;  %3344 = vmatpush.bf16.msra.mxu1 %v5155_v24 }
 0x266   :  { %3327 = vmatpush.bf16.msra.mxu0 %v5151_v22 }
 0x268   :  { %v2623_v61 = vpop.f32.mrf.mxu3  ;;  %v3092_v29 = vpop.f32.mrf.mxu0 }
 0x269   :  { %v3093_v34 = vadd.f32 %v3092_v29, %v2759_v12  ;;  %3345 = vmatpush.bf16.msra.mxu1 %v5154_v43 }
 0x26a   :  { %3328 = vmatpush.bf16.msra.mxu0 %v5150_v8 }
 0x26d   :  { %3346 = vmatpush.bf16.msra.mxu1 %v5153_v2 }
 0x26e   :  { %3329 = vmatpush.bf16.msra.mxu0 %v5149_v26 }
 0x270   :  { %v3094_v15 = vpop.f32.mrf.mxu0 }
 0x271   :  { %3347 = vmatpush.bf16.msra.mxu1 %v5152_v49 }
 0x272   :  { %3330 = vmatpush.bf16.msra.mxu0 %v5148_v45 }
 0x276   :  { %v2660_v35 = vpop.f32.mrf.mxu2  ;;  %3331 = vmatpush.bf16.msra.mxu0 %v5147_v46 }
 0x277   :  { %v2661_v55 = vadd.f32 %v2660_v35, %v2648_v3 }
 0x27a   :  { %3332 = vmatpush.bf16.msra.mxu0 %v5146_v47 }
 0x27e   :  { %v2662_v28 = vpop.f32.mrf.mxu2  ;;  %3333 = vmatpush.bf16.msra.mxu0 %v5145_v51 }
 0x280   :  { %v2673_v4 = vpop.f32.mrf.mxu3 }
 0x281   :  { %v2674_v5 = vadd.f32 %v2673_v4, %v2661_v55 }
 0x282   :  { %3334 = vmatpush.bf16.msra.mxu0 %v5144_v52 }
 0x283   :  { %vm2680_vm11 = vcmp.gt.f32.partialorder %v2674_v5, 0.0  ;;  %v2684_v7 = vmul.f32 0.02, %v2674_v5 }
 0x285   :  { %v2688_v58 = vsel %vm2680_vm11, %v2674_v5, %v2684_v7 }
 0x286   :  { %v2692_v1 = vpack.c.bf16 %v2688_v58, %v2688_v58 }
 0x288   :  { %v3144_v37 = vpop.f32.mrf.mxu0  ;;  %v2675_v10 = vpop.f32.mrf.mxu3  ;;  %3130 = vmatmul.bf16.vlgmr.msra.gmra.mxu3 %v2692_v1 }
 0x289   :  { %v3145_v38 = vadd.f32 %v3144_v37, %v2760_v14 }
 0x290   :  { %v3146_v11 = vpop.f32.mrf.mxu0 }
 0x291   :  { %v3105_v13 = vpop.f32.mrf.mxu1 }
 0x292   :  { %v3106_v16 = vadd.f32 %v3105_v13, %v3093_v34 }
 0x298   :  { %3182 = vmatmul.bf16.vlgmr.msrb.gmra.mxu3 %v2692_v1 }
 0x299   :  { %v3107_v30 = vpop.f32.mrf.mxu1 }
 0x2a1   :  { %v3157_v39 = vpop.f32.mrf.mxu1 }
 0x2a2   :  { %v3158_v41 = vadd.f32 %v3157_v39, %v3145_v38 }
 0x2a9   :  { %v3159_v19 = vpop.f32.mrf.mxu1 }
 0x2cb   :  { %v3118_v44 = vpop.f32.mrf.mxu2 }
 0x2cc   :  { %v3119_v25 = vadd.f32 %v3118_v44, %v3106_v16 }
 0x2d3   :  { %v3120_v42 = vpop.f32.mrf.mxu2 }
 0x2db   :  { %v3170_v48 = vpop.f32.mrf.mxu2 }
 0x2dc   :  { %v3171_v61 = vadd.f32 %v3170_v48, %v3158_v41 }
 0x2e3   :  { %v3172_v50 = vpop.f32.mrf.mxu2 }
 0x30b   :  { %v3131_v54 = vpop.f32.mrf.mxu3 }
 0x30c   :  { %v3132_v56 = vadd.f32 %v3131_v54, %v3119_v25 }
 0x30e   :  { %vm3187_vm12 = vcmp.gt.f32.partialorder %v3132_v56, 0.0  ;;  %v3189_v18 = vmul.f32 0.02, %v3132_v56 }
 0x310   :  { %v3191_v57 = vsel %vm3187_vm12, %v3132_v56, %v3189_v18 }
 0x311   :  { %v3193_v60 = vpack.c.bf16 %v3191_v57, %v3191_v57 }
 0x313   :  { %v3133_v20 = vpop.f32.mrf.mxu3  ;;  %3335 = vmatmul.bf16.vlgmr.msra.gmra.mxu0 %v3193_v60 }
 0x31b   :  { %v3183_v62 = vpop.f32.mrf.mxu3 }
 0x31c   :  { %v3184_v40 = vadd.f32 %v3183_v62, %v3171_v61 }
 0x31e   :  { %vm3188_vm13 = vcmp.gt.f32.partialorder %v3184_v40, 0.0  ;;  %v3190_v63 = vmul.f32 0.02, %v3184_v40 }
 0x320   :  { %v3192_v23 = vsel %vm3188_vm13, %v3184_v40, %v3190_v63 }
 0x321   :  { %v3194_v27 = vpack.c.bf16 %v3192_v23, %v3192_v23 }
 0x323   :  { %v3185_v29 = vpop.f32.mrf.mxu3  ;;  %3348 = vmatmul.bf16.vlgmr.msra.gmra.mxu1 %v3194_v27 }
 0x390   :  { %v3336_v9 = vpop.f32.mrf.mxu0 }
 0x391   :  { %v3337_v32 = vadd.f32 %v5165_v31, %v3336_v9 }
 0x398   :  { %v3338_v59 = vpop.f32.mrf.mxu0 }
 0x3a0   :  { %v3349_v33 = vpop.f32.mrf.mxu1 }
 0x3a1   :  { %v3350_v35 = vadd.f32 %v3349_v33, %v3337_v32 }
 0x3a3   :  { %3353 = vst [vmem:[%s7633_s6] sm:$0xff] %v3350_v35 }
 0x3a8   :  { %v3351_v36 = vpop.f32.mrf.mxu1 }
 0x3a9   :  { %3358 = vsyncpa [#allocation4], 1 }
 0x3aa   :  { %3359 = vsyncpa [#allocation6], 1 }

</bundles_post_ra>
